<compile_context>
chip_gen: v5e
topology: v5e:2x2
jax: 0.10.0
libtpu: 0.0.40
codegen_flags: <defaults>
</compile_context>

<pallas_src>
import functools

import jax
import jax.numpy as jnp
from jax.experimental import pallas as pl
from jax.experimental.pallas import tpu as pltpu


def _pick_batch_block(n):
    """Images per grid step: amortize per-step overhead while keeping >=2
    (preferably >=4) grid steps so both v7x TensorCores have pipelined work."""
    for min_steps in (4, 2, 1):
        for b in (8, 4, 2, 1):
            if n % b == 0 and n // b >= min_steps:
                return b
    return 1


def _basic_block_kernel(x_ref, w1_ref, w2_ref,
                        bn1_scale_ref, bn1_bias_ref, bn2_bias_ref, bn3_bias_ref,
                        out_ref, slab_ref, *, H, W, B):
    """Processes B images per grid step.

    x_ref   : (B, M, Cp)    bf16, M = H*W tokens, Cp = 128-padded channels
    w*_ref  : (3, 3*Cp, Cp) bf16, ky-major; rows are kx-major Cp blocks
    out_ref : (B, M, Cp)    bf16
    slab_ref: (T, 3*Cp)     scratch, T = (H+2)*W row-padded tokens with the
              three kx-shifted channel blocks adjacent per token.
    """
    M = H * W
    Cp = bn1_scale_ref.shape[-1]
    slab_dt = slab_ref.dtype

    # Column-boundary masks, built on-chip (cheap iota + compare, no HBM input).
    wpos = jax.lax.broadcasted_iota(jnp.int32, (M, 1), 0) % W
    mask_l = wpos != 0            # token not in column 0
    mask_r = wpos != (W - 1)      # token not in the last column

    # Zero the top/bottom halo rows once per step (covers all three kx blocks).
    zero_halo = jnp.zeros((W, 3 * Cp), slab_dt)
    slab_ref[pl.ds(0, W), :] = zero_halo
    slab_ref[pl.ds(M + W, W), :] = zero_halo

    def fill_slab(y):
        # y: (M, Cp) f32 conv input (interior tokens).  Column shifts use the
        # XLU rotate; the single wrapped row is zeroed by the boundary mask.
        # Elementwise math stays f32 (v5e-friendly); cast only at the store.
        left = jnp.where(mask_l, pltpu.roll(y, shift=1, axis=0), 0.0)
        right = jnp.where(mask_r, pltpu.roll(y, shift=M - 1, axis=0), 0.0)
        slab_ref[pl.ds(W, M), pl.ds(0, Cp)] = left.astype(slab_dt)         # kx = 0
        slab_ref[pl.ds(W, M), pl.ds(Cp, Cp)] = y.astype(slab_dt)           # kx = 1
        slab_ref[pl.ds(W, M), pl.ds(2 * Cp, Cp)] = right.astype(slab_dt)   # kx = 2

    def conv3x3(w_ref):
        # 3 K-merged matmuls (K = 3*Cp) instead of 9 K=Cp taps; the tap sum is
        # carried in registers (f32) -- no accumulator-scratch round trips.
        acc = jnp.dot(slab_ref[pl.ds(0, M), :], w_ref[0],
                      preferred_element_type=jnp.float32)
        acc = acc + jnp.dot(slab_ref[pl.ds(W, M), :], w_ref[1],
                            preferred_element_type=jnp.float32)
        acc = acc + jnp.dot(slab_ref[pl.ds(2 * W, M), :], w_ref[2],
                            preferred_element_type=jnp.float32)
        return acc

    for b in range(B):                    # unrolled; amortizes per-step overhead
        # ---- stage 1: BN1 -> conv1  (BN2 scale folded into w1) -------------
        y1 = x_ref[b].astype(jnp.float32) * bn1_scale_ref[...] + bn1_bias_ref[...]
        fill_slab(y1)
        h1 = conv3x3(w1_ref)

        # ---- stage 2: BN2 bias + ReLU -> conv2 (BN3 scale * (1-p) in w2) ---
        mid = jnp.maximum(h1 + bn2_bias_ref[...], 0.0)
        fill_slab(mid)
        h2 = conv3x3(w2_ref)

        # ---- BN3 bias (pre-scaled by 1-p) + zero-padded identity shortcut --
        # x is channel-padded with zeros, so adding it directly is exactly
        # `out += concat(x, zeros)`; the store is full-lane dense bf16.
        out_ref[b] = (h2 + bn3_bias_ref[...]
                      + x_ref[b].astype(jnp.float32)).astype(out_ref.dtype)


def basic_block_forward(x_nchw, params, p_shakedrop=0.5, eps=1e-5):
    """BasicBlock forward (eval mode) via one Pallas call."""
    x = jnp.transpose(x_nchw, (0, 2, 3, 1)).astype(jnp.float32)   # NCHW -> NHWC
    N, H, W, Cin = x.shape
    w1 = params["w1"].astype(jnp.float32)          # (3,3,Cin,Cm) HWIO
    w2 = params["w2"].astype(jnp.float32)          # (3,3,Cm,Cm)
    Cm = w1.shape[-1]
    assert Cin <= Cm, "PyramidNet always grows channels (zero-padded shortcut)"

    Cp = max(128, ((max(Cin, Cm) + 127) // 128) * 128)   # lane-dense channel pad
    M = H * W                                            # output tokens per image
    T = M + 2 * W                                        # (H+2)*W padded tokens
    B = _pick_batch_block(N)                             # images per grid step
    shake = 1.0 - float(p_shakedrop)
    # bf16 slab needs 16-row tap alignment (ky*W offsets); fall back to f32.
    slab_dt = jnp.bfloat16 if W % 16 == 0 else jnp.float32

    def bn_affine(g, b, m, v):
        s = g / jnp.sqrt(v + eps)
        return s, b - m * s

    s1, b1 = bn_affine(*params["bn1"])             # (Cin,)
    s2, b2 = bn_affine(*params["bn2"])             # (Cm,)
    s3, b3 = bn_affine(*params["bn3"])             # (Cm,)

    # Weight-side constant folds (no extra work on the activation path).
    w1f = w1 * s2[None, None, None, :]                     # BN2 scale -> w1
    w2f = w2 * (s3 * shake)[None, None, None, :]           # BN3 scale * (1-p) -> w2
    b3f = b3 * shake

    def pad_c(a, c):
        return jnp.pad(a, [(0, 0)] * (a.ndim - 1) + [(0, c - a.shape[-1])])

    # K-merged weight layout: (ky, kx*Cp + cin, cout), bf16.
    w1p = jnp.pad(w1f, ((0, 0), (0, 0), (0, Cp - Cin), (0, Cp - Cm))
                  ).reshape(3, 3 * Cp, Cp).astype(jnp.bfloat16)
    w2p = jnp.pad(w2f, ((0, 0), (0, 0), (0, Cp - Cm), (0, Cp - Cm))
                  ).reshape(3, 3 * Cp, Cp).astype(jnp.bfloat16)
    s1p = pad_c(s1, Cp).reshape(1, Cp)
    b1p = pad_c(b1, Cp).reshape(1, Cp)
    b2p = pad_c(b2, Cp).reshape(1, Cp)
    b3p = pad_c(b3f, Cp).reshape(1, Cp)
    # Activations travel bf16 (halves per-step HBM traffic); accumulation stays f32.
    xp = pad_c(x, Cp).reshape(N, M, Cp).astype(jnp.bfloat16)

    kern = functools.partial(_basic_block_kernel, H=H, W=W, B=B)

    def const_spec(shape):
        return pl.BlockSpec(shape, lambda n: (0,) * len(shape))

    out = pl.pallas_call(
        kern,
        out_shape=jax.ShapeDtypeStruct((N, M, Cp), jnp.bfloat16),
        grid_spec=pltpu.PrefetchScalarGridSpec(
            num_scalar_prefetch=0,
            grid=(N // B,),
            in_specs=[
                pl.BlockSpec((B, M, Cp), lambda n: (n, 0, 0)),   # x tokens (bf16)
                const_spec((3, 3 * Cp, Cp)),                     # w1 (folded, bf16)
                const_spec((3, 3 * Cp, Cp)),                     # w2 (folded, bf16)
                const_spec((1, Cp)),                             # bn1 scale
                const_spec((1, Cp)),                             # bn1 bias
                const_spec((1, Cp)),                             # bn2 bias
                const_spec((1, Cp)),                             # bn3 bias * (1-p)
            ],
            out_specs=pl.BlockSpec((B, M, Cp), lambda n: (n, 0, 0)),
            scratch_shapes=[
                pltpu.VMEM((T, 3 * Cp), slab_dt),                # shared conv-input slab
            ]),
        compiler_params=pltpu.CompilerParams(
            dimension_semantics=("parallel",),                   # spread steps across TCs
            vmem_limit_bytes=32 * 1024 * 1024),
    )(xp, w1p, w2p, s1p, b1p, b2p, b3p)

    out = out.astype(jnp.float32).reshape(N, H, W, Cp)[..., :Cm]  # drop channel pad
    return jnp.transpose(out, (0, 3, 1, 2))                       # NHWC -> NCHW


def basic_block_reference(x_nchw, params, p_shakedrop=0.5, eps=1e-5):
    """Pure-JAX f32 reference (same eval-mode semantics) for verification."""
    x = jnp.transpose(x_nchw, (0, 2, 3, 1)).astype(jnp.float32)
    Cin = x.shape[-1]
    Cm = params["w1"].shape[-1]

    def bn(v, p):
        g, b, m, var = p
        return (v - m) / jnp.sqrt(var + eps) * g + b

    def conv(v, w):
        return jax.lax.conv_general_dilated(
            v, w, window_strides=(1, 1), padding="SAME",
            dimension_numbers=("NHWC", "HWIO", "NHWC"))

    o = bn(x, params["bn1"])
    o = conv(o, params["w1"])
    o = jnp.maximum(bn(o, params["bn2"]), 0.0)
    o = conv(o, params["w2"])
    o = bn(o, params["bn3"]) * (1.0 - p_shakedrop)
    shortcut = jnp.pad(x, ((0, 0), (0, 0), (0, 0), (0, Cm - Cin)))
    return jnp.transpose(o + shortcut, (0, 3, 1, 2))


def make_params(key, inplanes, planes):
    ks = jax.random.split(key, 14)

    def bn_params(k0, k1, k2, k3, c):
        gamma = jax.random.uniform(k0, (c,), jnp.float32, 0.5, 1.5)
        beta = 0.1 * jax.random.normal(k1, (c,), jnp.float32)
        mean = 0.1 * jax.random.normal(k2, (c,), jnp.float32)
        var = jax.random.uniform(k3, (c,), jnp.float32, 0.5, 1.5)
        return (gamma, beta, mean, var)

    params = {
        "w1": 0.1 * jax.random.normal(ks[0], (3, 3, inplanes, planes), jnp.float32),
        "w2": 0.1 * jax.random.normal(ks[1], (3, 3, planes, planes), jnp.float32),
        "bn1": bn_params(ks[2], ks[3], ks[4], ks[5], inplanes),
        "bn2": bn_params(ks[6], ks[7], ks[8], ks[9], planes),
        "bn3": bn_params(ks[10], ks[11], ks[12], ks[13], planes),
    }
    return params


if __name__ == "__main__":
    key = jax.random.PRNGKey(0)
    kx, kp = jax.random.split(key)

    N, Cin, H, W = 2, 4, 16, 16
    planes = 8            # residual channels > shortcut channels -> zero-pad path
    p_shakedrop = 0.5

    x = jax.random.normal(kx, (N, Cin, H, W), jnp.float32)   # NCHW like PyTorch
    params = make_params(kp, Cin, planes)

    out = basic_block_forward(x, params, p_shakedrop)
    out = jax.block_until_ready(out)

    ref = basic_block_reference(x, params, p_shakedrop)
    assert out.shape == (N, planes, H, W), out.shape
    # Kernel uses bf16 matmul operands / bf16 activation I/O with f32
    # accumulation; tolerance is relaxed vs the pure-f32 reference.
    assert jnp.allclose(out, ref, rtol=5e-2, atol=5e-2), \
        float(jnp.max(jnp.abs(out - ref)))

    print("KERNEL_OK")
</pallas_src>

<mosaic_0001>
module attributes {stable_mosaic.version = 11 : i64} {
  func.func @_basic_block_kernel(%arg0: i32, %arg1: memref<1x256x128xbf16, #tpu.memory_space<vmem>>, %arg2: memref<3x384x128xbf16, #tpu.memory_space<vmem>>, %arg3: memref<3x384x128xbf16, #tpu.memory_space<vmem>>, %arg4: memref<1x128xf32, #tpu.memory_space<vmem>>, %arg5: memref<1x128xf32, #tpu.memory_space<vmem>>, %arg6: memref<1x128xf32, #tpu.memory_space<vmem>>, %arg7: memref<1x128xf32, #tpu.memory_space<vmem>>, %arg8: memref<1x256x128xbf16, #tpu.memory_space<vmem>>, %arg9: memref<288x384xbf16, #tpu.memory_space<vmem>>) attributes {dimension_semantics = [#tpu.dimension_semantics<parallel>], iteration_bounds = array<i64: 2>, scalar_prefetch = 0 : i64, scratch_operands = 1 : i64, tpu.core_type = #tpu.core_type<tc>, window_params = [{transform_indices = @transform_0, window_bounds = array<i64: 1, 256, 128>}, {pipeline_mode = #tpu.pipeline_mode<synchronous>, transform_indices = @transform_1, window_bounds = array<i64: 3, 384, 128>}, {pipeline_mode = #tpu.pipeline_mode<synchronous>, transform_indices = @transform_2, window_bounds = array<i64: 3, 384, 128>}, {pipeline_mode = #tpu.pipeline_mode<synchronous>, transform_indices = @transform_3, window_bounds = array<i64: 1, 128>}, {pipeline_mode = #tpu.pipeline_mode<synchronous>, transform_indices = @transform_4, window_bounds = array<i64: 1, 128>}, {pipeline_mode = #tpu.pipeline_mode<synchronous>, transform_indices = @transform_5, window_bounds = array<i64: 1, 128>}, {pipeline_mode = #tpu.pipeline_mode<synchronous>, transform_indices = @transform_6, window_bounds = array<i64: 1, 128>}, {transform_indices = @transform_7, window_bounds = array<i64: 1, 256, 128>}]} {
    %0 = tpu.iota {dimensions = array<i32: 0>} : vector<256x1xi32>
    %c16_i32 = arith.constant 16 : i32
    %c0_i32 = arith.constant 0 : i32
    %1 = arith.cmpi eq, %c16_i32, %c0_i32 : i32
    %c1_i32 = arith.constant 1 : i32
    %2 = arith.select %1, %c1_i32, %c16_i32 : i32
    %3 = vector.broadcast %2 : i32 to vector<256x1xi32>
    %4 = arith.remsi %0, %3 : vector<256x1xi32>
    %c0_i32_0 = arith.constant 0 : i32
    %5 = vector.broadcast %c0_i32_0 : i32 to vector<256x1xi32>
    %6 = arith.cmpi ne, %4, %5 : vector<256x1xi32>
    %c0_i32_1 = arith.constant 0 : i32
    %7 = vector.broadcast %c0_i32_1 : i32 to vector<256x1xi32>
    %8 = arith.cmpi slt, %4, %7 : vector<256x1xi32>
    %c0_i32_2 = arith.constant 0 : i32
    %9 = arith.cmpi slt, %2, %c0_i32_2 : i32
    %10 = vector.broadcast %9 : i1 to vector<256x1xi1>
    %11 = vector.broadcast %10 : vector<256x1xi1> to vector<256x1xi1>
    %12 = arith.xori %8, %11 : vector<256x1xi1>
    %13 = arith.andi %12, %6 : vector<256x1xi1>
    %14 = vector.broadcast %2 : i32 to vector<256x1xi32>
    %15 = arith.addi %4, %14 : vector<256x1xi32>
    %16 = arith.select %13, %15, %4 : vector<256x1xi1>, vector<256x1xi32>
    %c0_i32_3 = arith.constant 0 : i32
    %17 = vector.broadcast %c0_i32_3 : i32 to vector<256x1xi32>
    %18 = arith.cmpi ne, %16, %17 : vector<256x1xi32>
    %c15_i32 = arith.constant 15 : i32
    %19 = vector.broadcast %c15_i32 : i32 to vector<256x1xi32>
    %20 = arith.cmpi ne, %16, %19 : vector<256x1xi32>
    %cst = arith.constant 0.000000e+00 : bf16
    %21 = vector.broadcast %cst : bf16 to vector<16x384xbf16>
    %c0 = arith.constant 0 : index
    %c0_4 = arith.constant 0 : index
    %22 = vector.load %arg9[%c0, %c0_4] : memref<288x384xbf16, #tpu.memory_space<vmem>>, vector<16x384xbf16>
    tpu.vector_store %arg9[%c0, %c0_4], %21 {strides = array<i32>} : memref<288x384xbf16, #tpu.memory_space<vmem>>, vector<16x384xbf16>,
    %c272 = arith.constant 272 : index
    %c0_5 = arith.constant 0 : index
    %23 = vector.load %arg9[%c272, %c0_5] : memref<288x384xbf16, #tpu.memory_space<vmem>>, vector<16x384xbf16>
    tpu.vector_store %arg9[%c272, %c0_5], %21 {strides = array<i32>} : memref<288x384xbf16, #tpu.memory_space<vmem>>, vector<16x384xbf16>,
    %c0_6 = arith.constant 0 : index
    %c0_7 = arith.constant 0 : index
    %c0_8 = arith.constant 0 : index
    %24 = vector.load %arg1[%c0_6, %c0_7, %c0_8] : memref<1x256x128xbf16, #tpu.memory_space<vmem>>, vector<1x256x128xbf16>
    %25 = vector.shape_cast %24 : vector<1x256x128xbf16> to vector<256x128xbf16>
    %26 = arith.extf %25 : vector<256x128xbf16> to vector<256x128xf32>
    %c0_9 = arith.constant 0 : index
    %c0_10 = arith.constant 0 : index
    %27 = vector.load %arg4[%c0_9, %c0_10] : memref<1x128xf32, #tpu.memory_space<vmem>>, vector<1x128xf32>
    %28 = vector.broadcast %27 : vector<1x128xf32> to vector<256x128xf32>
    %29 = arith.mulf %26, %28 : vector<256x128xf32>
    %c0_11 = arith.constant 0 : index
    %c0_12 = arith.constant 0 : index
    %30 = vector.load %arg5[%c0_11, %c0_12] : memref<1x128xf32, #tpu.memory_space<vmem>>, vector<1x128xf32>
    %31 = vector.broadcast %30 : vector<1x128xf32> to vector<256x128xf32>
    %32 = arith.addf %29, %31 : vector<256x128xf32>
    %c1_i32_13 = arith.constant 1 : i32
    %33 = tpu.dynamic_rotate %32 by %c1_i32_13 dim 0 : vector<256x128xf32>, i32 -> vector<256x128xf32>
    %cst_14 = arith.constant 0.000000e+00 : f32
    %34 = vector.shape_cast %18 : vector<256x1xi1> to vector<256x1xi1>
    %35 = vector.broadcast %34 : vector<256x1xi1> to vector<256x128xi1>
    %36 = vector.broadcast %cst_14 : f32 to vector<256x128xf32>
    %37 = arith.select %35, %33, %36 : vector<256x128xi1>, vector<256x128xf32>
    %c255_i32 = arith.constant 255 : i32
    %38 = tpu.dynamic_rotate %32 by %c255_i32 dim 0 : vector<256x128xf32>, i32 -> vector<256x128xf32>
    %cst_15 = arith.constant 0.000000e+00 : f32
    %39 = vector.shape_cast %20 : vector<256x1xi1> to vector<256x1xi1>
    %40 = vector.broadcast %39 : vector<256x1xi1> to vector<256x128xi1>
    %41 = vector.broadcast %cst_15 : f32 to vector<256x128xf32>
    %42 = arith.select %40, %38, %41 : vector<256x128xi1>, vector<256x128xf32>
    %43 = arith.truncf %37 : vector<256x128xf32> to vector<256x128xbf16>
    %c16 = arith.constant 16 : index
    %c0_16 = arith.constant 0 : index
    %44 = vector.load %arg9[%c16, %c0_16] : memref<288x384xbf16, #tpu.memory_space<vmem>>, vector<256x128xbf16>
    tpu.vector_store %arg9[%c16, %c0_16], %43 {strides = array<i32>} : memref<288x384xbf16, #tpu.memory_space<vmem>>, vector<256x128xbf16>,
    %45 = arith.truncf %32 : vector<256x128xf32> to vector<256x128xbf16>
    %c16_17 = arith.constant 16 : index
    %c128 = arith.constant 128 : index
    %46 = vector.load %arg9[%c16_17, %c128] : memref<288x384xbf16, #tpu.memory_space<vmem>>, vector<256x128xbf16>
    tpu.vector_store %arg9[%c16_17, %c128], %45 {strides = array<i32>} : memref<288x384xbf16, #tpu.memory_space<vmem>>, vector<256x128xbf16>,
    %47 = arith.truncf %42 : vector<256x128xf32> to vector<256x128xbf16>
    %c16_18 = arith.constant 16 : index
    %c256 = arith.constant 256 : index
    %48 = vector.load %arg9[%c16_18, %c256] : memref<288x384xbf16, #tpu.memory_space<vmem>>, vector<256x128xbf16>
    tpu.vector_store %arg9[%c16_18, %c256], %47 {strides = array<i32>} : memref<288x384xbf16, #tpu.memory_space<vmem>>, vector<256x128xbf16>,
    %c0_19 = arith.constant 0 : index
    %c0_20 = arith.constant 0 : index
    %49 = vector.load %arg9[%c0_19, %c0_20] : memref<288x384xbf16, #tpu.memory_space<vmem>>, vector<256x384xbf16>
    %c0_21 = arith.constant 0 : index
    %c0_22 = arith.constant 0 : index
    %c0_23 = arith.constant 0 : index
    %50 = vector.load %arg2[%c0_21, %c0_22, %c0_23] : memref<3x384x128xbf16, #tpu.memory_space<vmem>>, vector<1x384x128xbf16>
    %51 = vector.shape_cast %50 : vector<1x384x128xbf16> to vector<384x128xbf16>
    %cst_24 = arith.constant dense<0.000000e+00> : vector<256x128xf32>
    %52 = tpu.matmul %49, %51, %cst_24 {dimension_numbers = #tpu.dot_dimension_numbers<[1], [0], [0], [1], [0, 0, 1, 1], [], []>} : vector<256x384xbf16>, vector<384x128xbf16>, vector<256x128xf32> -> vector<256x128xf32>
    %c16_25 = arith.constant 16 : index
    %c0_26 = arith.constant 0 : index
    %53 = vector.load %arg9[%c16_25, %c0_26] : memref<288x384xbf16, #tpu.memory_space<vmem>>, vector<256x384xbf16>
    %c1 = arith.constant 1 : index
    %c0_27 = arith.constant 0 : index
    %c0_28 = arith.constant 0 : index
    %54 = vector.load %arg2[%c1, %c0_27, %c0_28] : memref<3x384x128xbf16, #tpu.memory_space<vmem>>, vector<1x384x128xbf16>
    %55 = vector.shape_cast %54 : vector<1x384x128xbf16> to vector<384x128xbf16>
    %cst_29 = arith.constant dense<0.000000e+00> : vector<256x128xf32>
    %56 = tpu.matmul %53, %55, %cst_29 {dimension_numbers = #tpu.dot_dimension_numbers<[1], [0], [0], [1], [0, 0, 1, 1], [], []>} : vector<256x384xbf16>, vector<384x128xbf16>, vector<256x128xf32> -> vector<256x128xf32>
    %57 = arith.addf %52, %56 : vector<256x128xf32>
    %c32 = arith.constant 32 : index
    %c0_30 = arith.constant 0 : index
    %58 = vector.load %arg9[%c32, %c0_30] : memref<288x384xbf16, #tpu.memory_space<vmem>>, vector<256x384xbf16>
    %c2 = arith.constant 2 : index
    %c0_31 = arith.constant 0 : index
    %c0_32 = arith.constant 0 : index
    %59 = vector.load %arg2[%c2, %c0_31, %c0_32] : memref<3x384x128xbf16, #tpu.memory_space<vmem>>, vector<1x384x128xbf16>
    %60 = vector.shape_cast %59 : vector<1x384x128xbf16> to vector<384x128xbf16>
    %cst_33 = arith.constant dense<0.000000e+00> : vector<256x128xf32>
    %61 = tpu.matmul %58, %60, %cst_33 {dimension_numbers = #tpu.dot_dimension_numbers<[1], [0], [0], [1], [0, 0, 1, 1], [], []>} : vector<256x384xbf16>, vector<384x128xbf16>, vector<256x128xf32> -> vector<256x128xf32>
    %62 = arith.addf %57, %61 : vector<256x128xf32>
    %c0_34 = arith.constant 0 : index
    %c0_35 = arith.constant 0 : index
    %63 = vector.load %arg6[%c0_34, %c0_35] : memref<1x128xf32, #tpu.memory_space<vmem>>, vector<1x128xf32>
    %64 = vector.broadcast %63 : vector<1x128xf32> to vector<256x128xf32>
    %65 = arith.addf %62, %64 : vector<256x128xf32>
    %cst_36 = arith.constant 0.000000e+00 : f32
    %66 = vector.broadcast %cst_36 : f32 to vector<256x128xf32>
    %67 = arith.maximumf %65, %66 : vector<256x128xf32>
    %c1_i32_37 = arith.constant 1 : i32
    %68 = tpu.dynamic_rotate %67 by %c1_i32_37 dim 0 : vector<256x128xf32>, i32 -> vector<256x128xf32>
    %cst_38 = arith.constant 0.000000e+00 : f32
    %69 = vector.shape_cast %18 : vector<256x1xi1> to vector<256x1xi1>
    %70 = vector.broadcast %69 : vector<256x1xi1> to vector<256x128xi1>
    %71 = vector.broadcast %cst_38 : f32 to vector<256x128xf32>
    %72 = arith.select %70, %68, %71 : vector<256x128xi1>, vector<256x128xf32>
    %c255_i32_39 = arith.constant 255 : i32
    %73 = tpu.dynamic_rotate %67 by %c255_i32_39 dim 0 : vector<256x128xf32>, i32 -> vector<256x128xf32>
    %cst_40 = arith.constant 0.000000e+00 : f32
    %74 = vector.shape_cast %20 : vector<256x1xi1> to vector<256x1xi1>
    %75 = vector.broadcast %74 : vector<256x1xi1> to vector<256x128xi1>
    %76 = vector.broadcast %cst_40 : f32 to vector<256x128xf32>
    %77 = arith.select %75, %73, %76 : vector<256x128xi1>, vector<256x128xf32>
    %78 = arith.truncf %72 : vector<256x128xf32> to vector<256x128xbf16>
    %c16_41 = arith.constant 16 : index
    %c0_42 = arith.constant 0 : index
    %79 = vector.load %arg9[%c16_41, %c0_42] : memref<288x384xbf16, #tpu.memory_space<vmem>>, vector<256x128xbf16>
    tpu.vector_store %arg9[%c16_41, %c0_42], %78 {strides = array<i32>} : memref<288x384xbf16, #tpu.memory_space<vmem>>, vector<256x128xbf16>,
    %80 = arith.truncf %67 : vector<256x128xf32> to vector<256x128xbf16>
    %c16_43 = arith.constant 16 : index
    %c128_44 = arith.constant 128 : index
    %81 = vector.load %arg9[%c16_43, %c128_44] : memref<288x384xbf16, #tpu.memory_space<vmem>>, vector<256x128xbf16>
    tpu.vector_store %arg9[%c16_43, %c128_44], %80 {strides = array<i32>} : memref<288x384xbf16, #tpu.memory_space<vmem>>, vector<256x128xbf16>,
    %82 = arith.truncf %77 : vector<256x128xf32> to vector<256x128xbf16>
    %c16_45 = arith.constant 16 : index
    %c256_46 = arith.constant 256 : index
    %83 = vector.load %arg9[%c16_45, %c256_46] : memref<288x384xbf16, #tpu.memory_space<vmem>>, vector<256x128xbf16>
    tpu.vector_store %arg9[%c16_45, %c256_46], %82 {strides = array<i32>} : memref<288x384xbf16, #tpu.memory_space<vmem>>, vector<256x128xbf16>,
    %c0_47 = arith.constant 0 : index
    %c0_48 = arith.constant 0 : index
    %84 = vector.load %arg9[%c0_47, %c0_48] : memref<288x384xbf16, #tpu.memory_space<vmem>>, vector<256x384xbf16>
    %c0_49 = arith.constant 0 : index
    %c0_50 = arith.constant 0 : index
    %c0_51 = arith.constant 0 : index
    %85 = vector.load %arg3[%c0_49, %c0_50, %c0_51] : memref<3x384x128xbf16, #tpu.memory_space<vmem>>, vector<1x384x128xbf16>
    %86 = vector.shape_cast %85 : vector<1x384x128xbf16> to vector<384x128xbf16>
    %cst_52 = arith.constant dense<0.000000e+00> : vector<256x128xf32>
    %87 = tpu.matmul %84, %86, %cst_52 {dimension_numbers = #tpu.dot_dimension_numbers<[1], [0], [0], [1], [0, 0, 1, 1], [], []>} : vector<256x384xbf16>, vector<384x128xbf16>, vector<256x128xf32> -> vector<256x128xf32>
    %c16_53 = arith.constant 16 : index
    %c0_54 = arith.constant 0 : index
    %88 = vector.load %arg9[%c16_53, %c0_54] : memref<288x384xbf16, #tpu.memory_space<vmem>>, vector<256x384xbf16>
    %c1_55 = arith.constant 1 : index
    %c0_56 = arith.constant 0 : index
    %c0_57 = arith.constant 0 : index
    %89 = vector.load %arg3[%c1_55, %c0_56, %c0_57] : memref<3x384x128xbf16, #tpu.memory_space<vmem>>, vector<1x384x128xbf16>
    %90 = vector.shape_cast %89 : vector<1x384x128xbf16> to vector<384x128xbf16>
    %cst_58 = arith.constant dense<0.000000e+00> : vector<256x128xf32>
    %91 = tpu.matmul %88, %90, %cst_58 {dimension_numbers = #tpu.dot_dimension_numbers<[1], [0], [0], [1], [0, 0, 1, 1], [], []>} : vector<256x384xbf16>, vector<384x128xbf16>, vector<256x128xf32> -> vector<256x128xf32>
    %92 = arith.addf %87, %91 : vector<256x128xf32>
    %c32_59 = arith.constant 32 : index
    %c0_60 = arith.constant 0 : index
    %93 = vector.load %arg9[%c32_59, %c0_60] : memref<288x384xbf16, #tpu.memory_space<vmem>>, vector<256x384xbf16>
    %c2_61 = arith.constant 2 : index
    %c0_62 = arith.constant 0 : index
    %c0_63 = arith.constant 0 : index
    %94 = vector.load %arg3[%c2_61, %c0_62, %c0_63] : memref<3x384x128xbf16, #tpu.memory_space<vmem>>, vector<1x384x128xbf16>
    %95 = vector.shape_cast %94 : vector<1x384x128xbf16> to vector<384x128xbf16>
    %cst_64 = arith.constant dense<0.000000e+00> : vector<256x128xf32>
    %96 = tpu.matmul %93, %95, %cst_64 {dimension_numbers = #tpu.dot_dimension_numbers<[1], [0], [0], [1], [0, 0, 1, 1], [], []>} : vector<256x384xbf16>, vector<384x128xbf16>, vector<256x128xf32> -> vector<256x128xf32>
    %97 = arith.addf %92, %96 : vector<256x128xf32>
    %c0_65 = arith.constant 0 : index
    %c0_66 = arith.constant 0 : index
    %98 = vector.load %arg7[%c0_65, %c0_66] : memref<1x128xf32, #tpu.memory_space<vmem>>, vector<1x128xf32>
    %99 = vector.broadcast %98 : vector<1x128xf32> to vector<256x128xf32>
    %100 = arith.addf %97, %99 : vector<256x128xf32>
    %c0_67 = arith.constant 0 : index
    %c0_68 = arith.constant 0 : index
    %c0_69 = arith.constant 0 : index
    %101 = vector.load %arg1[%c0_67, %c0_68, %c0_69] : memref<1x256x128xbf16, #tpu.memory_space<vmem>>, vector<1x256x128xbf16>
    %102 = vector.shape_cast %101 : vector<1x256x128xbf16> to vector<256x128xbf16>
    %103 = arith.extf %102 : vector<256x128xbf16> to vector<256x128xf32>
    %104 = arith.addf %100, %103 : vector<256x128xf32>
    %105 = arith.truncf %104 : vector<256x128xf32> to vector<256x128xbf16>
    %c0_70 = arith.constant 0 : index
    %c0_71 = arith.constant 0 : index
    %c0_72 = arith.constant 0 : index
    %106 = vector.load %arg8[%c0_70, %c0_71, %c0_72] : memref<1x256x128xbf16, #tpu.memory_space<vmem>>, vector<1x256x128xbf16>
    %107 = vector.shape_cast %106 : vector<1x256x128xbf16> to vector<256x128xbf16>
    %108 = vector.shape_cast %105 : vector<256x128xbf16> to vector<1x256x128xbf16>
    tpu.vector_store %arg8[%c0_70, %c0_71, %c0_72], %108 {strides = array<i32>} : memref<1x256x128xbf16, #tpu.memory_space<vmem>>, vector<1x256x128xbf16>,
    return
  }
  func.func @transform_0(%arg0: i32) -> (i32, i32, i32) {
    %c0_i32 = arith.constant 0 : i32
    %c0_i32_0 = arith.constant 0 : i32
    %c0_i32_1 = arith.constant 0 : i32
    return %arg0, %c0_i32, %c0_i32_0 : i32, i32, i32
  }
  func.func @transform_1(%arg0: i32) -> (i32, i32, i32) {
    %c0_i32 = arith.constant 0 : i32
    %c0_i32_0 = arith.constant 0 : i32
    %c0_i32_1 = arith.constant 0 : i32
    %c0_i32_2 = arith.constant 0 : i32
    return %c0_i32, %c0_i32_0, %c0_i32_1 : i32, i32, i32
  }
  func.func @transform_2(%arg0: i32) -> (i32, i32, i32) {
    %c0_i32 = arith.constant 0 : i32
    %c0_i32_0 = arith.constant 0 : i32
    %c0_i32_1 = arith.constant 0 : i32
    %c0_i32_2 = arith.constant 0 : i32
    return %c0_i32, %c0_i32_0, %c0_i32_1 : i32, i32, i32
  }
  func.func @transform_3(%arg0: i32) -> (i32, i32) {
    %c0_i32 = arith.constant 0 : i32
    %c0_i32_0 = arith.constant 0 : i32
    %c0_i32_1 = arith.constant 0 : i32
    return %c0_i32, %c0_i32_0 : i32, i32
  }
  func.func @transform_4(%arg0: i32) -> (i32, i32) {
    %c0_i32 = arith.constant 0 : i32
    %c0_i32_0 = arith.constant 0 : i32
    %c0_i32_1 = arith.constant 0 : i32
    return %c0_i32, %c0_i32_0 : i32, i32
  }
  func.func @transform_5(%arg0: i32) -> (i32, i32) {
    %c0_i32 = arith.constant 0 : i32
    %c0_i32_0 = arith.constant 0 : i32
    %c0_i32_1 = arith.constant 0 : i32
    return %c0_i32, %c0_i32_0 : i32, i32
  }
  func.func @transform_6(%arg0: i32) -> (i32, i32) {
    %c0_i32 = arith.constant 0 : i32
    %c0_i32_0 = arith.constant 0 : i32
    %c0_i32_1 = arith.constant 0 : i32
    return %c0_i32, %c0_i32_0 : i32, i32
  }
  func.func @transform_7(%arg0: i32) -> (i32, i32, i32) {
    %c0_i32 = arith.constant 0 : i32
    %c0_i32_0 = arith.constant 0 : i32
    %c0_i32_1 = arith.constant 0 : i32
    return %arg0, %c0_i32, %c0_i32_0 : i32, i32, i32
  }
}

</mosaic_0001>

<bundles_post_ra>
// kernel: tpu_custom_call.1
= control target key start
LH: loop header
LB: loop body
LE: loop exit
PB: predicated region body
PF: predicated region fallthrough
CT: control target
= control target key end

     0   :  { %s10848_s0 = inlined_call_operand.hbm [shape: bf16[2,256,128], index: 0, kind: input, shape index: {}]   ;;  %s10849_s1 = inlined_call_operand.hbm [shape: bf16[3,384,128], index: 1, kind: input, shape index: {}]   ;;  %s10850_s2 = inlined_call_operand.hbm [shape: bf16[3,384,128], index: 2, kind: input, shape index: {}]   ;;  %s10851_s3 = inlined_call_operand.vmem [shape: f32[1,128], index: 3, kind: input, shape index: {}]   ;;  %s10852_s4 = inlined_call_operand.vmem [shape: f32[1,128], index: 4, kind: input, shape index: {}]   ;;  %s10853_s5 = inlined_call_operand.vmem [shape: f32[1,128], index: 5, kind: input, shape index: {}]   ;;  %s10854_s6 = inlined_call_operand.vmem [shape: f32[1,128], index: 6, kind: input, shape index: {}]   ;;  %s10855_s7 = inlined_call_operand.hbm [shape: bf16[2,256,128], index: 7, kind: output, shape index: {}]  }
   0x1   :  { %10948 = sst [smem:[#allocation55_spill]] %s10849_s1 }
   0x2   :  { %12 = vsyncpa [#allocation4], 0 }
   0x3   :  { %14 = vsyncpa [#allocation4 + $0x1], 0 }
   0x4   :  { %15 = vsyncpa [#allocation7], 0 }
   0x5   :  { %16 = vsyncpa [#allocation5], 0 }
   0x6   :  { %18 = vsyncpa [#allocation5 + $0x1], 0  ;;  %s8655_s24 = smov 0   ;;  %s8657_s25 = smov 0  }
   0x7   :  { %s8659_s26 = smov 0   ;;  %s8661_s27 = smov 0  }
   0x8 LB: > { %s8676_s28 = sadd.s32 4294967295, %s8606_s27   ;;  %s6370_s29 = sadd.s32 4294967294, %s8606_s27   ;;  %s8606_s27 = sphi %s8661_s27, %s11259_s27   ;;  %s8602_s26 = sphi %s8659_s26, %s11258_s26   ;;  %s8598_s25 = sphi %s8657_s25, %s11257_s25   ;;  %s8594_s24 = sphi %s8655_s24, %s11256_s24  }
   0x9   : > { %p44_p0 = scmp.ne.s32.totalorder %s8598_s25, %s8594_s24  ;;  %p45_p1 = scmp.eq.s32.totalorder %s8676_s28, 0 }
   0xa   : > { %p194_p2 = scmp.eq.s32.totalorder %s8676_s28, 1  ;;  %p200_p3 = scmp.eq.s32.totalorder %s6370_s29, 1 }
   0xb   : > { %p8685_p4 = por %p45_p1, %p44_p0  ;;  %p6371_p5 = scmp.ge.s32.totalorder %s8606_s27, 1 }
   0xc   : > { %p8690_p6 = por %p200_p3, %p44_p0  ;;  %p207_p7 = scmp.lt.s32.totalorder %s8606_s27, 3 }
   0xd   : > { %s10951_s1 = sld [smem:[#allocation55_spill]]  ;;  %s8608_s13 = smov [#allocation6]  }
   0xe   : > { %p8698_p8 = pnand %p6371_p5, %p207_p7  ;;  %s220_s14 = sshll.u32 %s8608_s13, 4  ;;  %s221_s14 = int_to_ptr.vmem [resolvable:$true] %s220_s14 }
   0xf   : > { %s232_s17 = sshll.u32 %s10850_s2, 4  ;;  %s10856_s18 = smov 64   ;;  %s233_s17 = int_to_ptr.hbm [resolvable:$true] %s232_s17 }
  0x10   : > { %p8381_p9 = pneg %p8698_p8  ;;  %s10857_s19 = smov 4  }
  0x11   : > { %s8611_s20 = smov [#allocation8]   ;;  %s8717_s22 = sadd.s32 1, %s8606_s27  }
  0x12   : > { %p8382_p10 = pnand %p8381_p9, %p45_p1  ;;  %s234_s21 = sshll.u32 %s8611_s20, 4  ;;  %s235_s21 = int_to_ptr.vmem [resolvable:$true] %s234_s21 }
  0x13   : > { %s218_s11 = sshll.u32 %s10951_s1, 4  ;;  %s31_s23 = sadd.s32 1, %s8602_s26  ;;  %s219_s11 = int_to_ptr.hbm [resolvable:$true] %s218_s11 }
  0x14   : > { %8384 = dma.hbm_to_vmem [thread:$0]  (!%p8382_p10), %s219_s11, 9216, %s221_s14, [#allocation7], %s10856_s18, %s10856_s18, %s10857_s19  }
  0x15   : > { %8387 = dma.hbm_to_vmem [thread:$0]  (!%p8382_p10), %s233_s17, 9216, %s235_s21, [#allocation7], %s10856_s18, %s10856_s18, %s10857_s19  }
  0x16   : > { %s28_s29 = ssub.s32 %s8606_s27, %s8717_s22  ;;  %p38_p12 = scmp.ne.s32.totalorder %s8602_s26, %s8598_s25 }
  0x17   : > { %p29_p13 = scmp.eq.s32.totalorder %s28_s29, 0  ;;  %p39_p0 = scmp.eq.s32.totalorder %s8606_s27, 0 }
  0x18   : > { %p8727_p3 = por %p194_p2, %p38_p12  ;;  %p8398_p5 = scmp.lt.s32.totalorder %s8606_s27, 2 }
  0x19   : > { %s8733_s10 = scalar_select %p29_p13, %s8602_s26, %s31_s23  }
  0x1a   : > { %p40_p7 = por %p39_p0, %p38_p12  ;;  %s260_s11 = sand.u32 1, %s8602_s26  }
  0x1b   : > { %s6375_s13 = sshll.u32 %s260_s11, 7  ;;  %s7756_s14 = sshll.u32 %s8606_s27, 7 }
  0x1c   : > { %s269_s17 = scalar_lea.hbm %s10848_s0, %s7756_s14  ;;  %s264_s20 = scalar_lea.vmem [#allocation3], %s6375_s13 }
  0x1d   : > { %s272_s21 = sshll.u32 %s264_s20, 4  ;;  %s270_s29 = sshll.u32 %s269_s17, 4  ;;  %s273_s21 = int_to_ptr.vmem [resolvable:$true] %s272_s21  ;;  %s271_s29 = int_to_ptr.hbm [resolvable:$true] %s270_s29 }
  0x1e   : > { %p8740_p2 = pnand %p8398_p5, %p40_p7  ;;  %s261_s23 = scalar_lea.sflag [#allocation4], %s260_s11 }
  0x1f   : > { %s8506_s19 = sshra.s32 %s271_s29, 4  ;;  %s8513_s15 = scalar_lea.hbm %s10848_s0, 256  ;;  %s8507_s19 = int_to_ptr.hbm [resolvable:$true] %s8506_s19 }
  0x20   : > { %s8508_s1 = scalar_lea.hbm %s8507_s19, 128  ;;  %p8510_p10 = pneg %p8740_p2 }
  0x21   : > { %p8509_p9 = scmp.ne.s32.totalorder %s8507_s19, %s8508_s1  ;;  %p8514_p0 = scmp.lt.s32.totalorder %s8507_s19, %s10848_s0 }
  0x22   : > { %p8515_p5 = scmp.lt.s32.totalorder %s8513_s15, %s8508_s1 }
  0x23   : > { %p8511_p12 = pnand %p8510_p10, %p8509_p9 }
  0x24   : > { %p8516_p7 = por %p8515_p5, %p8514_p0 }
  0x25   : > { %p8512_p13 = pneg %p8511_p12 }
  0x27   : > { %p8517_p11 = pnand %p8516_p7, %p8512_p13 }
  0x29   : > { %8520 = shalt.err (!%p8517_p11)
}
  0x2a   : > { %s10955_s11 = smov 4   ;;  %s10956_s20 = smov 64  }
  0x2b   : > { %8391 = dma.hbm_to_vmem [thread:$0]  (!%p8740_p2), %s271_s29, 2048, %s273_s21, %s261_s23, %s10956_s20, %s10956_s20, %s10955_s11  }
  0x2c   : > { %284 = sbr.rel (%p8698_p8) target bundleno = 1780 (0x6f4), region = 48 }
  0x31   : > { %s8760_s14 = sand.u32 1, %s8598_s25  }
  0x32   : > { %s6379_s1 = sshll.u32 %s8760_s14, 7  ;;  %s287_s19 = scalar_lea.sflag [#allocation4], %s8760_s14 }
  0x33   : > { %s8766_s13 = scalar_lea.vmem [#allocation3], %s6379_s1 }
  0x34   : > { %8581 = dma.done.wait (%p8685_p4), %s287_s19, 2048  }
  0x35   : > { %8583 = vsyncadd (%p8685_p4), %s287_s19, 4294965248 }
  0x36   : > { %8585 = dma.done.wait (%p45_p1), [#allocation7], 18432  }
  0x37   : > { %8587 = vsyncadd (%p45_p1), [#allocation7], 4294948864  ;;  %v333_v0 = vlaneseq  ;;  %v7839_v2 = vld [vmem:[#allocation6 + $0xf8] sm:$0xff]  ;;  %v7838_v5 = vld [vmem:[#allocation6 + $0xf0] sm:$0xff]  ;;  %v10957_v19 = vmov 0  ;;  %v10960_v28 = vmov 0 }
  0x38   : > { %v7847_v3 = vld [vmem:[#allocation6 + $0x138] sm:$0xff]  ;;  %2037 = vmatpush.bf16.msra.mxu0 %v7839_v2  ;;  %8353 = vmatpush.bf16.msra.mxu2 %v7839_v2  ;;  %v7846_v6 = vld [vmem:[#allocation6 + $0x130] sm:$0xff]  ;;  %v7837_v9 = vld [vmem:[#allocation6 + $0xe8] sm:$0xff]  ;;  %v10964_v47 = vmov 0  ;;  %s10650_s20 = scalar_lea.vmem [#allocation9], %s6379_s1  ;;  %s8099_s1 = sshll.u32 %s8676_s28, 7 }
  0x39   : > { %v8776_v1 = vshrl.u32 %v333_v0, 7  ;;  %2126 = vmatpush.bf16.msra.mxu1 %v7847_v3  ;;  %8361 = vmatpush.bf16.msra.mxu3 %v7847_v3  ;;  %v7845_v10 = vld [vmem:[#allocation6 + $0x128] sm:$0xff]  ;;  %v8101_v11 = vld [vmem:[%s8766_s13] sm:$0xff]   ;;  %v8783_v12 = vld [vmem:[%s8766_s13 + $0x78] sm:$0xff]   ;;  %s6274_s12 = scalar_lea.hbm %s10855_s7, %s8099_s1  ;;  %s6275_s28 = sshll.u32 %s10650_s20, 4  ;;  %s6276_s28 = int_to_ptr.vmem [resolvable:$true] %s6275_s28 }
  0x3a   : > { %v8102_v15 = vunpack.c.l.bf16 %v8101_v11  ;;  %v8103_v16 = vunpack.c.h.bf16 %v8101_v11  ;;  %v8163_v17 = vunpack.c.h.bf16 %v8783_v12  ;;  %v8793_v18 = vld [vmem:[%s10851_s3] ss:$0 sm:$0xff]  ;;  %v8805_v21 = vld [vmem:[%s8766_s13 + $0x38] sm:$0xff]   ;;  %v8315_v22 = vld [vmem:[%s8766_s13 + $0x40] sm:$0xff]   ;;  %s6263_s18 = scalar_lea.sflag [#allocation5], %s8760_s14  ;;  %s8556_s16 = scalar_lea.hbm %s10855_s7, 256 }
  0x3b   : > { %v350_v4 = vadd.s32 128, %v8776_v1  ;;  %v370_v7 = vand.u32 15, %v8776_v1  ;;  %v336_v8 = vadd.s32 16, %v8776_v1  ;;  %vm10890_vm0 = vcmp.lt.s32.totalorder %v8776_v1, 1  ;;  %v8802_v20 = vld [vmem:[%s10852_s4] ss:$0 sm:$0xff] }
  0x3c   : > { %v8787_v14 = vadd.s32 144, %v8776_v1  ;;  %2038 = vmatpush.bf16.msra.mxu0 %v7838_v5  ;;  %8354 = vmatpush.bf16.msra.mxu2 %v7838_v5  ;;  %v890_v24 = vmul.f32 %v8793_v18, %v8102_v15  ;;  %v891_v25 = vmul.f32 %v8793_v18, %v8103_v16  ;;  %v921_v26 = vmul.f32 %v8793_v18, %v8163_v17  ;;  %v8308_v31 = vld [vmem:[%s8766_s13 + $0x8] sm:$0xff]   ;;  %v7836_v33 = vld [vmem:[#allocation6 + $0xe0] sm:$0xff]  ;;  %v7835_v52 = vld [vmem:[#allocation6 + $0xd8] sm:$0xff] }
  0x3d   : > { %v482_v13 = vand.u32 15, %v350_v4  ;;  %2127 = vmatpush.bf16.msra.mxu1 %v7846_v6  ;;  %8362 = vmatpush.bf16.msra.mxu3 %v7846_v6  ;;  %vm8795_vm1 = vcmp.ne.s32.totalorder %v370_v7, 0  ;;  %v384_v23 = vand.u32 15, %v336_v8  ;;  %v8131_v27 = vunpack.c.h.bf16 %v8805_v21  ;;  %v7844_v38 = vld [vmem:[#allocation6 + $0x120] sm:$0xff]  ;;  %v8316_v56 = vld [vmem:[%s8766_s13 + $0x48] sm:$0xff]   ;;  %v7843_v57 = vld [vmem:[#allocation6 + $0x118] sm:$0xff] }
  0x3e   : > { %v10958_v19 = vsel %vm8795_vm1, 4294967295, %v10957_v19  ;;  %v8134_v29 = vunpack.c.l.bf16 %v8315_v22  ;;  %v8135_v30 = vunpack.c.h.bf16 %v8315_v22  ;;  %v496_v32 = vand.u32 15, %v8787_v14  ;;  %v7834_v7 = vld [vmem:[#allocation6 + $0xd0] sm:$0xff] }
  0x3f   : > { %10959 = vst [vmem:[#allocation13_spill] sm:$0xff] %v10958_v19  ;;  %vm8812_vm2 = vcmp.ne.s32.totalorder %v482_v13, 0  ;;  %v8819_v34 = vadd.f32 %v8802_v20, %v890_v24  ;;  %v8822_v35 = vadd.f32 %v8802_v20, %v891_v25  ;;  %v8825_v36 = vadd.f32 %v8802_v20, %v921_v26  ;;  %v8888_v13 = vld [vmem:[%s8766_s13 + $0x10] sm:$0xff]   ;;  %v7833_v26 = vld [vmem:[#allocation6 + $0xc8] sm:$0xff] }
  0x40   : > { %v10961_v28 = vsel %vm8812_vm2, 4294967295, %v10960_v28  ;;  %2039 = vmatpush.bf16.msra.mxu0 %v7837_v9  ;;  %8355 = vmatpush.bf16.msra.mxu2 %v7837_v9  ;;  %v8106_v37 = vunpack.c.l.bf16 %v8308_v31  ;;  %v905_v39 = vmul.f32 %v8793_v18, %v8131_v27  ;;  %v906_v40 = vmul.f32 %v8793_v18, %v8134_v29  ;;  %v7842_v14 = vld [vmem:[#allocation6 + $0x110] sm:$0xff]  ;;  %v8312_v19 = vld [vmem:[%s8766_s13 + $0x28] sm:$0xff]  }
  0x41   : > { %10962 = vst [vmem:[#allocation14_spill] sm:$0xff] %v10961_v28  ;;  %2128 = vmatpush.bf16.msra.mxu1 %v7845_v10  ;;  %8363 = vmatpush.bf16.msra.mxu3 %v7845_v10  ;;  %v907_v41 = vmul.f32 %v8793_v18, %v8135_v30  ;;  %v8107_v42 = vunpack.c.h.bf16 %v8308_v31  ;;  %v958_v43 = vrot.slane %v8819_v34, 7  ;;  %v959_v44 = vrot.slane %v8822_v35, 7 }
  0x42   : > { %10963 = vst [vmem:[#allocation15_spill] sm:$0xff] %v8819_v34  ;;  %v10858_v45 = vrot.slane %v8825_v36, 7  ;;  %v1344_v46 = vpack.c.bf16 %v8819_v34, %v8819_v34  ;;  %vm8835_vm3 = vcmp.ne.s32.totalorder %v384_v23, 0  ;;  %v8840_v48 = vadd.f32 %v8802_v20, %v905_v39 }
  0x43   : > { %v10965_v47 = vsel %vm8835_vm3, 4294967295, %v10964_v47  ;;  %v8843_v49 = vadd.f32 %v8802_v20, %v906_v40  ;;  %v8846_v50 = vadd.f32 %v8802_v20, %v907_v41  ;;  %v1345_v51 = vpack.c.bf16 %v8822_v35, %v8822_v35  ;;  %v7841_v40 = vld [vmem:[#allocation6 + $0x108] sm:$0xff] }
  0x44   : > { %10966 = vst [vmem:[#allocation16_spill] sm:$0xff] %v10965_v47  ;;  %2040 = vmatpush.bf16.msra.mxu0 %v7836_v33  ;;  %8356 = vmatpush.bf16.msra.mxu2 %v7836_v33  ;;  %v1021_v53 = vsel %vm10890_vm0, %v958_v43, %v959_v44  ;;  %v1022_v54 = vsel %vm10890_vm0, %v10858_v45, %v958_v43  ;;  %v10859_v60 = vrot.slane %v8840_v48, 7  ;;  %v8138_v6 = vunpack.c.l.bf16 %v8316_v56 }
  0x45   : > { %1376 = vst [vmem:[#allocation2 + $0x1c] sm:$0xf] %v1344_v46  ;;  %v892_v55 = vmul.f32 %v8793_v18, %v8106_v37  ;;  %2129 = vmatpush.bf16.msra.mxu1 %v7844_v38  ;;  %8364 = vmatpush.bf16.msra.mxu3 %v7844_v38  ;;  %v1087_v58 = vsel %vm8795_vm1, %v1022_v54, 0.0  ;;  %v1281_v59 = vpack.c.bf16 %v1021_v53, %v1021_v53  ;;  %v974_v61 = vrot.slane %v8843_v49, 7  ;;  %v7832_v46 = vld [vmem:[#allocation6 + $0xc0] sm:$0xff] }
  0x46   : > { %1377 = vst [vmem:[#allocation2 + $0x28] sm:$0xf] %v1345_v51  ;;  %v1280_v62 = vpack.c.bf16 %v1087_v58, %v1087_v58  ;;  %v975_v63 = vrot.slane %v8846_v50, 7  ;;  %v1360_v0 = vpack.c.bf16 %v8843_v49, %v8843_v49  ;;  %v1361_v2 = vpack.c.bf16 %v8846_v50, %v8846_v50 }
  0x47   : > { %1313 = vst [vmem:[#allocation2 + $0x24] sm:$0xf] %v1281_v59  ;;  %v1006_v3 = vsel %vm10890_vm0, %v10859_v60, %v974_v61  ;;  %v893_v4 = vmul.f32 %v8793_v18, %v8107_v42  ;;  %v8875_v5 = vadd.f32 %v8802_v20, %v892_v55  ;;  %vm8883_vm4 = vcmp.ne.s32.totalorder %v496_v32, 0  ;;  %v7840_v55 = vld [vmem:[#allocation6 + $0x100] sm:$0xff] }
  0x48   : > { %2041 = vmatpush.bf16.msra.mxu0 %v7835_v52  ;;  %8357 = vmatpush.bf16.msra.mxu2 %v7835_v52  ;;  %1312 = vst [vmem:[#allocation2 + $0x18] sm:$0xf] %v1280_v62  ;;  %v1005_v8 = vsel %vm10890_vm0, %v974_v61, %v975_v63  ;;  %v1103_v9 = vsel %vm8812_vm2, %v1006_v3, 0.0  ;;  %v10967_v10 = vmov 0  ;;  %v8139_v11 = vunpack.c.h.bf16 %v8316_v56  ;;  %v8317_v61 = vld [vmem:[%s8766_s13 + $0x50] sm:$0xff]   ;;  %v7812_v3 = vld [vmem:[#allocation6 + $0x38] sm:$0xff] }
  0x49   : > { %v10968_v10 = vsel %vm8883_vm4, 4294967295, %v10967_v10  ;;  %2130 = vmatpush.bf16.msra.mxu1 %v7843_v57  ;;  %8365 = vmatpush.bf16.msra.mxu3 %v7843_v57  ;;  %v1296_v15 = vpack.c.bf16 %v1103_v9, %v1103_v9  ;;  %v1297_v16 = vpack.c.bf16 %v1005_v8, %v1005_v8  ;;  %1392 = vst [vmem:[#allocation2 + $0xdc] sm:$0xf] %v1360_v0  ;;  %v960_v22 = vrot.slane %v8875_v5, 7 }
  0x4a   : > { %10969 = vst [vmem:[#allocation17_spill] sm:$0xff] %v10968_v10  ;;  %v8891_v17 = vadd.f32 %v8802_v20, %v893_v4  ;;  %v908_v23 = vmul.f32 %v8793_v18, %v8138_v6  ;;  %v909_v24 = vmul.f32 %v8793_v18, %v8139_v11  ;;  %v1346_v25 = vpack.c.bf16 %v8875_v5, %v8875_v5 }
  0x4b   : > { %1393 = vst [vmem:[#allocation2 + $0xe8] sm:$0xf] %v1361_v2  ;;  %v338_v30 = vadd.s32 32, %v8776_v1  ;;  %v8110_v31 = vunpack.c.l.bf16 %v8888_v13  ;;  %v1020_v37 = vsel %vm10890_vm0, %v959_v44, %v960_v22  ;;  %v8111_v44 = vunpack.c.h.bf16 %v8888_v13  ;;  %v7855_v2 = vld [vmem:[#allocation6 + $0x178] sm:$0xff] }
  0x4c   : > { %1328 = vst [vmem:[#allocation2 + $0xd8] sm:$0xf] %v1296_v15  ;;  %v961_v27 = vrot.slane %v8891_v17, 7  ;;  %v1347_v29 = vpack.c.bf16 %v8891_v17, %v8891_v17  ;;  %2042 = vmatpush.bf16.msra.mxu0 %v7834_v7  ;;  %8358 = vmatpush.bf16.msra.mxu2 %v7834_v7  ;;  %v7760_v32 = vld [vmem:[#allocation2 + $0x1c] sm:$0xf]  ;;  %v8908_v38 = vadd.f32 %v8802_v20, %v908_v23  ;;  %v1089_v42 = vsel %vm8835_vm3, %v1020_v37, 0.0 }
  0x4d   : > { %1329 = vst [vmem:[#allocation2 + $0xe4] sm:$0xf] %v1297_v16  ;;  %v6387_v33 = vld [vmem:[#allocation2 + $0x24] sm:$0xf0]  ;;  %v8911_v39 = vadd.f32 %v8802_v20, %v909_v24  ;;  %2131 = vmatpush.bf16.msra.mxu1 %v7842_v14  ;;  %8366 = vmatpush.bf16.msra.mxu3 %v7842_v14  ;;  %v398_v43 = vand.u32 15, %v338_v30  ;;  %v1282_v51 = vpack.c.bf16 %v1089_v42, %v1089_v42  ;;  %v354_v14 = vadd.s32 160, %v8776_v1 }
  0x4e   : > { %v1019_v41 = vsel %vm10890_vm0, %v960_v22, %v961_v27  ;;  %1378 = vst [vmem:[#allocation2 + $0x34] sm:$0xf] %v1346_v25  ;;  %v976_v53 = vrot.slane %v8908_v38, 7  ;;  %v7761_v56 = vld [vmem:[#allocation2 + $0x20] sm:$0xf0]  ;;  %v8922_v57 = vor.u32 %v7760_v32, %v6387_v33  ;;  %v1362_v58 = vpack.c.bf16 %v8908_v38, %v8908_v38  ;;  %v8950_v24 = vld [vmem:[%s8766_s13 + $0x18] sm:$0xff]  }
  0x4f   : > { %v1283_v52 = vpack.c.bf16 %v1019_v41, %v1019_v41  ;;  %v977_v54 = vrot.slane %v8911_v39, 7  ;;  %1379 = vst [vmem:[#allocation2 + $0x40] sm:$0xf] %v1347_v29  ;;  %v894_v59 = vmul.f32 %v8793_v18, %v8110_v31  ;;  %v6385_v62 = vld [vmem:[#allocation2 + $0x18] sm:$0xf]  ;;  %v1363_v7 = vpack.c.bf16 %v8911_v39, %v8911_v39  ;;  %v7820_v41 = vld [vmem:[#allocation6 + $0x78] sm:$0xff] }
  0x50   : > { %2043 = vmatpush.bf16.msra.mxu0 %v7833_v26  ;;  %8359 = vmatpush.bf16.msra.mxu2 %v7833_v26  ;;  %v7784_v0 = vld [vmem:[#allocation2 + $0xdc] sm:$0xf]  ;;  %1314 = vst [vmem:[#allocation2 + $0x30] sm:$0xf] %v1282_v51  ;;  %v1004_v6 = vsel %vm10890_vm0, %v975_v63, %v976_v53  ;;  %v895_v13 = vmul.f32 %v8793_v18, %v8111_v44  ;;  %vm8942_vm5 = vcmp.ne.s32.totalorder %v398_v43, 0  ;;  %v10970_v63 = vmov 0 }
  0x51   : > { %v1003_v4 = vsel %vm10890_vm0, %v976_v53, %v977_v54  ;;  %2132 = vmatpush.bf16.msra.mxu1 %v7841_v40  ;;  %8367 = vmatpush.bf16.msra.mxu3 %v7841_v40  ;;  %1315 = vst [vmem:[#allocation2 + $0x3c] sm:$0xf] %v1283_v52  ;;  %v1105_v9 = vsel %vm8883_vm4, %v1004_v6, 0.0  ;;  %v10971_v63 = vsel %vm8942_vm5, 4294967295, %v10970_v63  ;;  %v8947_v22 = vadd.f32 %v8802_v20, %v894_v59  ;;  %v7854_v51 = vld [vmem:[#allocation6 + $0x170] sm:$0xff]  ;;  %v8318_v59 = vld [vmem:[%s8766_s13 + $0x58] sm:$0xff]  }
  0x52   : > { %v6483_v8 = vld [vmem:[#allocation2 + $0xe4] sm:$0xf0]  ;;  %v1299_v11 = vpack.c.bf16 %v1003_v4, %v1003_v4  ;;  %v1298_v16 = vpack.c.bf16 %v1105_v9, %v1105_v9  ;;  %1394 = vst [vmem:[#allocation2 + $0xf4] sm:$0xf] %v1362_v58  ;;  %v8142_v23 = vunpack.c.l.bf16 %v8317_v61  ;;  %v8952_v25 = vor.u32 %v7761_v56, %v6385_v62  ;;  %v7811_v52 = vld [vmem:[#allocation6 + $0x30] sm:$0xff] }
  0x53   : > { %v6481_v15 = vld [vmem:[#allocation2 + $0xd8] sm:$0xf]  ;;  %10972 = vst [vmem:[#allocation18_spill] sm:$0xff] %v10971_v63  ;;  %v8954_v29 = vor.u32 %v7784_v0, %v6483_v8  ;;  %v8957_v30 = vadd.f32 %v8802_v20, %v895_v13  ;;  %v8143_v31 = vunpack.c.h.bf16 %v8317_v61  ;;  %v962_v33 = vrot.slane %v8947_v22, 7 }
  0x54   : > { %v7785_v26 = vld [vmem:[#allocation2 + $0xe0] sm:$0xf0]  ;;  %1331 = vst [vmem:[#allocation2 + $0xfc] sm:$0xf] %v1299_v11  ;;  %2044 = vmatpush.bf16.msra.mxu0 %v7832_v46  ;;  %8360 = vmatpush.bf16.msra.mxu2 %v7832_v46  ;;  %v510_v37 = vand.u32 15, %v354_v14  ;;  %v910_v40 = vmul.f32 %v8793_v18, %v8142_v23  ;;  %v1348_v44 = vpack.c.bf16 %v8947_v22, %v8947_v22  ;;  %v8114_v46 = vunpack.c.l.bf16 %v8950_v24 }
  0x55   : > { %v8959_v32 = vor.u32 %v7785_v26, %v6481_v15  ;;  %1330 = vst [vmem:[#allocation2 + $0xf0] sm:$0xf] %v1298_v16  ;;  %2133 = vmatpush.bf16.msra.mxu1 %v7840_v55  ;;  %8368 = vmatpush.bf16.msra.mxu3 %v7840_v55  ;;  %v963_v42 = vrot.slane %v8957_v30, 7  ;;  %v911_v43 = vmul.f32 %v8793_v18, %v8143_v31  ;;  %v340_v56 = vadd.s32 48, %v8776_v1  ;;  %v7853_v15 = vld [vmem:[#allocation6 + $0x168] sm:$0xff] }
  0x56   : > { %1395 = vst [vmem:[#allocation2 + $0x100] sm:$0xf] %v1363_v7  ;;  %v1018_v53 = vsel %vm10890_vm0, %v961_v27, %v962_v33  ;;  %v8973_v55 = vadd.f32 %v8802_v20, %v910_v40  ;;  %v8115_v58 = vunpack.c.h.bf16 %v8950_v24  ;;  %v1349_v0 = vpack.c.bf16 %v8957_v30, %v8957_v30  ;;  %v7819_v7 = vld [vmem:[#allocation6 + $0x70] sm:$0xff]  ;;  %v7810_v16 = vld [vmem:[#allocation6 + $0x28] sm:$0xff] }
  0x57   : > { %2045 = vmatmul.bf16.vlgmr.msra.gmra.mxu0 %v8952_v25  ;;  %2085 = vmatmul.bf16.vlgmr.msra.gmra.mxu2 %v8959_v32  ;;  %v1017_v61 = vsel %vm10890_vm0, %v962_v33, %v963_v42  ;;  %v1091_v27 = vsel %vm8942_vm5, %v1018_v53, 0.0  ;;  %v8987_v62 = vadd.f32 %v8802_v20, %v911_v43  ;;  %vm8993_vm6 = vcmp.ne.s32.totalorder %v510_v37, 0  ;;  %1380 = vst [vmem:[#allocation2 + $0x4c] sm:$0xf] %v1348_v44 }
  0x58   : > { %2215 = vmatpush.bf16.msrb.mxu2 %v7855_v2  ;;  %2134 = vmatmul.bf16.vlgmr.msra.gmra.mxu1 %v8922_v57  ;;  %v1284_v2 = vpack.c.bf16 %v1091_v27, %v1091_v27  ;;  %v10973_v4 = vmov 0  ;;  %v978_v6 = vrot.slane %v8973_v55, 7  ;;  %1381 = vst [vmem:[#allocation2 + $0x58] sm:$0xf] %v1349_v0  ;;  %v1364_v9 = vpack.c.bf16 %v8973_v55, %v8973_v55 }
  0x59   : > { %2464 = vmatpush.bf16.msrb.mxu3 %v7812_v3  ;;  %v1285_v3 = vpack.c.bf16 %v1017_v61, %v1017_v61  ;;  %v10974_v4 = vsel %vm8993_vm6, 4294967295, %v10973_v4  ;;  %2553 = vmatpush.bf16.msrb.mxu0 %v7820_v41  ;;  %v979_v8 = vrot.slane %v8987_v62, 7  ;;  %v1365_v11 = vpack.c.bf16 %v8987_v62, %v8987_v62  ;;  %v6399_v41 = vld [vmem:[#allocation2 + $0x3c] sm:$0xf0]  ;;  %v7787_v0 = vld [vmem:[#allocation2 + $0xf4] sm:$0xf] }
  0x5a   : > { %2174 = vmatmul.bf16.vlgmr.msra.gmra.mxu3 %v8954_v29  ;;  %10975 = vst [vmem:[#allocation19_spill] sm:$0xff] %v10974_v4  ;;  %v8146_v13 = vunpack.c.l.bf16 %v8318_v59  ;;  %v1002_v14 = vsel %vm10890_vm0, %v977_v54, %v978_v6  ;;  %v412_v23 = vand.u32 15, %v340_v56  ;;  %v896_v24 = vmul.f32 %v8793_v18, %v8114_v46  ;;  %v7763_v54 = vld [vmem:[#allocation2 + $0x34] sm:$0xf]  ;;  %v6397_v46 = vld [vmem:[#allocation2 + $0x30] sm:$0xf] }
  0x5b   : > { %1316 = vst [vmem:[#allocation2 + $0x48] sm:$0xf] %v1284_v2  ;;  %v8147_v26 = vunpack.c.h.bf16 %v8318_v59  ;;  %v1001_v31 = vsel %vm10890_vm0, %v978_v6, %v979_v8  ;;  %v1107_v33 = vsel %vm8993_vm6, %v1002_v14, 0.0  ;;  %v897_v37 = vmul.f32 %v8793_v18, %v8115_v58  ;;  %v7764_v59 = vld [vmem:[#allocation2 + $0x38] sm:$0xf0] }
  0x5c   : > { %2216 = vmatpush.bf16.msrb.mxu2 %v7854_v51  ;;  %1317 = vst [vmem:[#allocation2 + $0x54] sm:$0xf] %v1285_v3  ;;  %v356_v40 = vadd.s32 176, %v8776_v1  ;;  %v1300_v43 = vpack.c.bf16 %v1107_v33, %v1107_v33  ;;  %v1301_v44 = vpack.c.bf16 %v1001_v31, %v1001_v31  ;;  %v7818_v51 = vld [vmem:[#allocation6 + $0x68] sm:$0xff]  ;;  %vm9022_vm7 = vcmp.ne.s32.totalorder %v412_v23, 0  ;;  %v8311_v33 = vld [vmem:[%s8766_s13 + $0x20] sm:$0xff]  }
  0x5d   : > { %2465 = vmatpush.bf16.msrb.mxu3 %v7811_v52  ;;  %1396 = vst [vmem:[#allocation2 + $0x10c] sm:$0xf] %v1364_v9  ;;  %2554 = vmatpush.bf16.msrb.mxu0 %v7819_v7  ;;  %v9017_v52 = vadd.f32 %v8802_v20, %v896_v24  ;;  %v9020_v53 = vadd.f32 %v8802_v20, %v897_v37  ;;  %v10976_v58 = vmov 0  ;;  %v6493_v9 = vld [vmem:[#allocation2 + $0xf0] sm:$0xf]  ;;  %v10979_v31 = vmov 0 }
  0x5e   : > { %1397 = vst [vmem:[#allocation2 + $0x118] sm:$0xf] %v1365_v11  ;;  %v524_v56 = vand.u32 15, %v356_v40  ;;  %v10977_v58 = vsel %vm9022_vm7, 4294967295, %v10976_v58  ;;  %v912_v61 = vmul.f32 %v8793_v18, %v8146_v13  ;;  %v913_v27 = vmul.f32 %v8793_v18, %v8147_v26  ;;  %v7788_v11 = vld [vmem:[#allocation2 + $0xf8] sm:$0xf0] }
  0x5f   : > { %1332 = vst [vmem:[#allocation2 + $0x108] sm:$0xf] %v1300_v43  ;;  %v964_v2 = vrot.slane %v9017_v52, 7  ;;  %v965_v3 = vrot.slane %v9020_v53, 7  ;;  %v1350_v6 = vpack.c.bf16 %v9017_v52, %v9017_v52  ;;  %v1351_v7 = vpack.c.bf16 %v9020_v53, %v9020_v53  ;;  %v6495_v13 = vld [vmem:[#allocation2 + $0xfc] sm:$0xf0] }
  0x60   : > { %2217 = vmatpush.bf16.msrb.mxu2 %v7853_v15  ;;  %10978 = vst [vmem:[#allocation20_spill] sm:$0xff] %v10977_v58  ;;  %v9034_v14 = vor.u32 %v7763_v54, %v6399_v41  ;;  %v9037_v15 = vadd.f32 %v8802_v20, %v912_v61  ;;  %v9042_v23 = vor.u32 %v7764_v59, %v6397_v46  ;;  %vm9052_vm8 = vcmp.ne.s32.totalorder %v524_v56, 0  ;;  %v8319_v43 = vld [vmem:[%s8766_s13 + $0x60] sm:$0xff]  }
  0x61   : > { %2466 = vmatpush.bf16.msrb.mxu3 %v7810_v16  ;;  %1333 = vst [vmem:[#allocation2 + $0x114] sm:$0xf] %v1301_v44  ;;  %v9040_v16 = vadd.f32 %v8802_v20, %v913_v27  ;;  %2555 = vmatpush.bf16.msrb.mxu0 %v7818_v51  ;;  %v1015_v24 = vsel %vm10890_vm0, %v964_v2, %v965_v3  ;;  %v10980_v31 = vsel %vm9052_vm8, 4294967295, %v10979_v31  ;;  %v8118_v61 = vunpack.c.l.bf16 %v8311_v33 }
  0x62   : > { %v1016_v26 = vsel %vm10890_vm0, %v963_v42, %v964_v2  ;;  %10981 = vst [vmem:[#allocation21_spill] sm:$0xff] %v10980_v31  ;;  %v1287_v40 = vpack.c.bf16 %v1015_v24, %v1015_v24  ;;  %v980_v54 = vrot.slane %v9037_v15, 7  ;;  %v9062_v44 = vor.u32 %v7788_v11, %v6493_v9  ;;  %v8320_v31 = vld [vmem:[%s8766_s13 + $0x68] sm:$0xff]  }
  0x63   : > { %1382 = vst [vmem:[#allocation2 + $0x64] sm:$0xf] %v1350_v6  ;;  %v1093_v37 = vsel %vm9022_vm7, %v1016_v26, 0.0  ;;  %v981_v41 = vrot.slane %v9040_v16, 7  ;;  %v9064_v46 = vor.u32 %v7787_v0, %v6495_v13  ;;  %v1366_v51 = vpack.c.bf16 %v9037_v15, %v9037_v15 }
  0x64   : > { %10982 = vst [vmem:[#allocation22_spill] sm:$0xff] %v9062_v44  ;;  %v1286_v42 = vpack.c.bf16 %v1093_v37, %v1093_v37  ;;  %v1000_v59 = vsel %vm10890_vm0, %v979_v8, %v980_v54  ;;  %v8119_v27 = vunpack.c.h.bf16 %v8311_v33  ;;  %v1367_v6 = vpack.c.bf16 %v9040_v16, %v9040_v16  ;;  %v7852_v37 = vld [vmem:[#allocation6 + $0x160] sm:$0xff] }
  0x65   : > { %1383 = vst [vmem:[#allocation2 + $0x70] sm:$0xf] %v1351_v7  ;;  %v999_v56 = vsel %vm10890_vm0, %v980_v54, %v981_v41  ;;  %v1109_v0 = vsel %vm9052_vm8, %v1000_v59, 0.0  ;;  %v8150_v7 = vunpack.c.l.bf16 %v8319_v43  ;;  %v342_v11 = vadd.s32 64, %v8776_v1  ;;  %2218 = vmatpush.bf16.msrb.mxu2 %v7852_v37  ;;  %v6409_v37 = vld [vmem:[#allocation2 + $0x48] sm:$0xf] }
  0x66   : > { %1319 = vst [vmem:[#allocation2 + $0x6c] sm:$0xf] %v1287_v40  ;;  %v1303_v2 = vpack.c.bf16 %v999_v56, %v999_v56  ;;  %v1302_v9 = vpack.c.bf16 %v1109_v0, %v1109_v0  ;;  %v898_v13 = vmul.f32 %v8793_v18, %v8118_v61  ;;  %v899_v24 = vmul.f32 %v8793_v18, %v8119_v27  ;;  %v7809_v40 = vld [vmem:[#allocation6 + $0x20] sm:$0xff] }
  0x67   : > { %1318 = vst [vmem:[#allocation2 + $0x60] sm:$0xf] %v1286_v42  ;;  %2050 = vmatmul.bf16.gmra.mxu0 %v9042_v23  ;;  %2090 = vmatmul.bf16.gmra.mxu2 %v9062_v44  ;;  %v358_v8 = vadd.s32 192, %v8776_v1  ;;  %v8151_v26 = vunpack.c.h.bf16 %v8319_v43  ;;  %v914_v33 = vmul.f32 %v8793_v18, %v8150_v7  ;;  %v426_v56 = vand.u32 15, %v342_v11 }
  0x68   : > { %1398 = vst [vmem:[#allocation2 + $0x124] sm:$0xf] %v1366_v51  ;;  %2139 = vmatmul.bf16.gmra.mxu1 %v9034_v14  ;;  %v9088_v54 = vadd.f32 %v8802_v20, %v898_v13  ;;  %v9091_v42 = vadd.f32 %v8802_v20, %v899_v24  ;;  %v7817_v51 = vld [vmem:[#allocation6 + $0x60] sm:$0xff]  ;;  %2467 = vmatpush.bf16.msrb.mxu3 %v7809_v40 }
  0x69   : > { %1335 = vst [vmem:[#allocation2 + $0x12c] sm:$0xf] %v1303_v2  ;;  %v538_v59 = vand.u32 15, %v358_v8  ;;  %v915_v43 = vmul.f32 %v8793_v18, %v8151_v26  ;;  %v9095_v61 = vadd.f32 %v8802_v20, %v914_v33  ;;  %2556 = vmatpush.bf16.msrb.mxu0 %v7817_v51  ;;  %vm9099_vm9 = vcmp.ne.s32.totalorder %v426_v56, 0  ;;  %v7767_v40 = vld [vmem:[#allocation2 + $0x50] sm:$0xf0] }
  0x6a   : > { %2179 = vmatmul.bf16.gmra.mxu3 %v9064_v46  ;;  %1334 = vst [vmem:[#allocation2 + $0x120] sm:$0xf] %v1302_v9  ;;  %v966_v27 = vrot.slane %v9088_v54, 7  ;;  %v10860_v0 = vrot.slane %v9091_v42, 7  ;;  %v10983_v2 = vmov 0  ;;  %v1352_v24 = vpack.c.bf16 %v9088_v54, %v9088_v54 }
  0x6b   : > { %1399 = vst [vmem:[#allocation2 + $0x130] sm:$0xf] %v1367_v6  ;;  %v10984_v2 = vsel %vm9099_vm9, 4294967295, %v10983_v2  ;;  %vm9103_vm10 = vcmp.ne.s32.totalorder %v538_v59, 0  ;;  %v10986_v6 = vmov 0  ;;  %v9108_v7 = vadd.f32 %v8802_v20, %v915_v43 }
  0x6c   : > { %10985 = vst [vmem:[#allocation23_spill] sm:$0xff] %v10984_v2  ;;  %v10987_v6 = vsel %vm9103_vm10, 4294967295, %v10986_v6  ;;  %v1013_v9 = vsel %vm10890_vm0, %v966_v27, %v10860_v0  ;;  %v1014_v11 = vsel %vm10890_vm0, %v965_v3, %v966_v27  ;;  %v982_v13 = vrot.slane %v9095_v61, 7  ;;  %v7766_v59 = vld [vmem:[#allocation2 + $0x4c] sm:$0xf] }
  0x6d   : > { %10988 = vst [vmem:[#allocation24_spill] sm:$0xff] %v10987_v6  ;;  %v1095_v8 = vsel %vm9099_vm9, %v1014_v11, 0.0  ;;  %v1289_v26 = vpack.c.bf16 %v1013_v9, %v1013_v9  ;;  %v10863_v33 = vrot.slane %v9108_v7, 7  ;;  %v1353_v3 = vpack.c.bf16 %v9091_v42, %v9091_v42  ;;  %v6411_v43 = vld [vmem:[#allocation2 + $0x54] sm:$0xf0] }
  0x6e   : > { %v1288_v51 = vpack.c.bf16 %v1095_v8, %v1095_v8  ;;  %v998_v56 = vsel %vm10890_vm0, %v981_v41, %v982_v13  ;;  %1384 = vst [vmem:[#allocation2 + $0x7c] sm:$0xf] %v1352_v24  ;;  %v7790_v27 = vld [vmem:[#allocation2 + $0x10c] sm:$0xf]  ;;  %v6505_v8 = vld [vmem:[#allocation2 + $0x108] sm:$0xf]  ;;  %v1368_v24 = vpack.c.bf16 %v9095_v61, %v9095_v61  ;;  %v9140_v6 = vor.u32 %v7767_v40, %v6409_v37 }
  0x6f   : > { %1321 = vst [vmem:[#allocation2 + $0x84] sm:$0xf] %v1289_v26  ;;  %v997_v9 = vsel %vm10890_vm0, %v982_v13, %v10863_v33  ;;  %v1111_v11 = vsel %vm9103_vm10, %v998_v56, 0.0  ;;  %v7791_v41 = vld [vmem:[#allocation2 + $0x110] sm:$0xf0]  ;;  %v1369_v26 = vpack.c.bf16 %v9108_v7, %v9108_v7  ;;  %v8122_v13 = vunpack.c.l.bf16 %v8312_v19 }
  0x70   : > { %1320 = vst [vmem:[#allocation2 + $0x78] sm:$0xf] %v1288_v51  ;;  %v1304_v45 = vpack.c.bf16 %v1111_v11, %v1111_v11  ;;  %v1305_v60 = vpack.c.bf16 %v997_v9, %v997_v9  ;;  %v6507_v0 = vld [vmem:[#allocation2 + $0x114] sm:$0xf0]  ;;  %v8154_v33 = vunpack.c.l.bf16 %v8320_v31  ;;  %v9142_v56 = vor.u32 %v7791_v41, %v6505_v8  ;;  %v7816_v8 = vld [vmem:[#allocation6 + $0x58] sm:$0xff] }
  0x71   : > { %1385 = vst [vmem:[#allocation2 + $0x88] sm:$0xf] %v1353_v3  ;;  %v8123_v51 = vunpack.c.h.bf16 %v8312_v19  ;;  %v8155_v9 = vunpack.c.h.bf16 %v8320_v31  ;;  %v9144_v11 = vor.u32 %v7766_v59, %v6411_v43  ;;  %v9146_v4 = vor.u32 %v7790_v27, %v6507_v0  ;;  %v7851_v59 = vld [vmem:[#allocation6 + $0x158] sm:$0xff]  ;;  %2557 = vmatpush.bf16.msrb.mxu0 %v7816_v8  ;;  %v7793_v28 = vld [vmem:[#allocation2 + $0x124] sm:$0xf] }
  0x72   : > { %1336 = vst [vmem:[#allocation2 + $0x138] sm:$0xf] %v1304_v45  ;;  %v900_v3 = vmul.f32 %v8793_v18, %v8122_v13  ;;  %v916_v10 = vmul.f32 %v8793_v18, %v8154_v33  ;;  %v344_v40 = vadd.s32 80, %v8776_v1  ;;  %v360_v19 = vadd.s32 208, %v8776_v1  ;;  %v7808_v43 = vld [vmem:[#allocation6 + $0x18] sm:$0xff]  ;;  %2219 = vmatpush.bf16.msrb.mxu2 %v7851_v59 }
  0x73   : > { %10989 = vst [vmem:[#allocation25_spill] sm:$0xff] %v9142_v56  ;;  %v901_v45 = vmul.f32 %v8793_v18, %v8123_v51  ;;  %v917_v37 = vmul.f32 %v8793_v18, %v8155_v9  ;;  %2468 = vmatpush.bf16.msrb.mxu3 %v7808_v43  ;;  %v10992_v13 = vmov 0  ;;  %v10995_v51 = vrot.slane %v9091_v42, 7 }
  0x74   : > { %1337 = vst [vmem:[#allocation2 + $0x144] sm:$0xf] %v1305_v60  ;;  %v9154_v60 = vadd.f32 %v8802_v20, %v900_v3  ;;  %v9158_v31 = vadd.f32 %v8802_v20, %v916_v10  ;;  %v440_v27 = vand.u32 15, %v344_v40  ;;  %v10996_v40 = vmov 0 }
  0x75   : > { %10990 = vst [vmem:[#allocation26_spill] sm:$0xff] %v9146_v4  ;;  %v9163_v0 = vadd.f32 %v8802_v20, %v901_v45  ;;  %v9166_v33 = vadd.f32 %v8802_v20, %v917_v37 }
  0x76   : > { %1400 = vst [vmem:[#allocation2 + $0x13c] sm:$0xf] %v1368_v24  ;;  %v968_v10 = vrot.slane %v9154_v60, 7  ;;  %v552_v24 = vand.u32 15, %v360_v19  ;;  %vm9173_vm11 = vcmp.ne.s32.totalorder %v440_v27, 0  ;;  %v10999_v27 = vrot.slane %v9108_v7, 7 }
  0x77   : > { %1401 = vst [vmem:[#allocation2 + $0x148] sm:$0xf] %v1369_v26  ;;  %2055 = vmatmul.bf16.gmra.mxu0 %v9140_v6  ;;  %2095 = vmatmul.bf16.gmra.mxu2 %v9142_v56  ;;  %v10867_v41 = vrot.slane %v9163_v0, 7  ;;  %v984_v26 = vrot.slane %v9158_v31, 7  ;;  %v10993_v13 = vsel %vm9173_vm11, 4294967295, %v10992_v13  ;;  %v10868_v3 = vrot.slane %v9166_v33, 7 }
  0x78   : > { %10991 = vst [vmem:[#allocation27_spill] sm:$0xff] %v9166_v33  ;;  %2144 = vmatmul.bf16.gmra.mxu1 %v9144_v11  ;;  %v1012_v9 = vsel %vm10890_vm0, %v10995_v51, %v968_v10  ;;  %vm9188_vm12 = vcmp.ne.s32.totalorder %v552_v24, 0  ;;  %v7770_v24 = vld [vmem:[#allocation2 + $0x68] sm:$0xf0] }
  0x79   : > { %10994 = vst [vmem:[#allocation28_spill] sm:$0xff] %v10993_v13  ;;  %v1011_v45 = vsel %vm10890_vm0, %v968_v10, %v10867_v41  ;;  %v1097_v37 = vsel %vm9173_vm11, %v1012_v9, 0.0  ;;  %v10997_v40 = vsel %vm9188_vm12, 4294967295, %v10996_v40  ;;  %v995_v43 = vsel %vm10890_vm0, %v984_v26, %v10868_v3  ;;  %v7769_v41 = vld [vmem:[#allocation2 + $0x64] sm:$0xf] }
  0x7a   : > { %2184 = vmatmul.bf16.gmra.mxu3 %v9146_v4  ;;  %10998 = vst [vmem:[#allocation29_spill] sm:$0xff] %v10997_v40  ;;  %v1290_v19 = vpack.c.bf16 %v1097_v37, %v1097_v37  ;;  %v1291_v59 = vpack.c.bf16 %v1011_v45, %v1011_v45  ;;  %v996_v8 = vsel %vm10890_vm0, %v10999_v27, %v984_v26  ;;  %v6421_v37 = vld [vmem:[#allocation2 + $0x60] sm:$0xf]  ;;  %v6423_v3 = vld [vmem:[#allocation2 + $0x6c] sm:$0xf0] }
  0x7b   : > { %v1113_v10 = vsel %vm9188_vm12, %v996_v8, 0.0  ;;  %v1307_v51 = vpack.c.bf16 %v995_v43, %v995_v43  ;;  %v1354_v45 = vpack.c.bf16 %v9154_v60, %v9154_v60  ;;  %v1355_v26 = vpack.c.bf16 %v9163_v0, %v9163_v0  ;;  %v6517_v27 = vld [vmem:[#allocation2 + $0x120] sm:$0xf]  ;;  %v7794_v40 = vld [vmem:[#allocation2 + $0x128] sm:$0xf0] }
  0x7c   : > { %1322 = vst [vmem:[#allocation2 + $0x90] sm:$0xf] %v1290_v19  ;;  %v1306_v9 = vpack.c.bf16 %v1113_v10, %v1113_v10  ;;  %v1370_v19 = vpack.c.bf16 %v9158_v31, %v9158_v31  ;;  %v6519_v43 = vld [vmem:[#allocation2 + $0x12c] sm:$0xf0]  ;;  %v1371_v8 = vpack.c.bf16 %v9166_v33, %v9166_v33  ;;  %v8313_v10 = vld [vmem:[%s8766_s13 + $0x30] sm:$0xff]   ;;  %v9214_v63 = vor.u32 %v7794_v40, %v6517_v27 }
  0x7d   : > { %1323 = vst [vmem:[#allocation2 + $0x9c] sm:$0xf] %v1291_v59  ;;  %v8321_v13 = vld [vmem:[%s8766_s13 + $0x70] sm:$0xff]   ;;  %v8126_v2 = vunpack.c.l.bf16 %v8313_v10  ;;  %v9212_v59 = vor.u32 %v7770_v24, %v6421_v37  ;;  %v8127_v47 = vunpack.c.h.bf16 %v8313_v10  ;;  %v9216_v56 = vor.u32 %v7769_v41, %v6423_v3 }
  0x7e   : > { %1338 = vst [vmem:[#allocation2 + $0x150] sm:$0xf] %v1306_v9  ;;  %v8158_v58 = vunpack.c.l.bf16 %v8321_v13  ;;  %v8159_v9 = vunpack.c.h.bf16 %v8321_v13  ;;  %v9218_v4 = vor.u32 %v7793_v28, %v6519_v43  ;;  %v346_v40 = vadd.s32 96, %v8776_v1  ;;  %v7807_v13 = vld [vmem:[#allocation6 + $0x10] sm:$0xff] }
  0x7f   : > { %1339 = vst [vmem:[#allocation2 + $0x15c] sm:$0xf] %v1307_v51  ;;  %v902_v51 = vmul.f32 %v8793_v18, %v8126_v2  ;;  %v362_v41 = vadd.s32 224, %v8776_v1  ;;  %v7850_v2 = vld [vmem:[#allocation6 + $0x150] sm:$0xff]  ;;  %2469 = vmatpush.bf16.msrb.mxu3 %v7807_v13  ;;  %v11006_v10 = vrot.slane %v9163_v0, 7 }
  0x80   : > { %1386 = vst [vmem:[#allocation2 + $0x94] sm:$0xf] %v1354_v45  ;;  %v918_v44 = vmul.f32 %v8793_v18, %v8158_v58  ;;  %v903_v45 = vmul.f32 %v8793_v18, %v8127_v47  ;;  %v919_v24 = vmul.f32 %v8793_v18, %v8159_v9  ;;  %v454_v3 = vand.u32 15, %v346_v40  ;;  %2220 = vmatpush.bf16.msrb.mxu2 %v7850_v2 }
  0x81   : > { %11000 = vst [vmem:[#allocation30_spill] sm:$0xff] %v9214_v63  ;;  %v9226_v37 = vadd.f32 %v8802_v20, %v902_v51  ;;  %v11007_v40 = vmov 0 }
  0x82   : > { %1387 = vst [vmem:[#allocation2 + $0xa0] sm:$0xf] %v1355_v26  ;;  %v9230_v28 = vadd.f32 %v8802_v20, %v918_v44  ;;  %v9235_v58 = vadd.f32 %v8802_v20, %v903_v45  ;;  %v9238_v47 = vadd.f32 %v8802_v20, %v919_v24  ;;  %v7815_v26 = vld [vmem:[#allocation6 + $0x50] sm:$0xff]  ;;  %vm9245_vm13 = vcmp.ne.s32.totalorder %v454_v3, 0 }
  0x83   : > { %11001 = vst [vmem:[#allocation31_spill] sm:$0xff] %v9218_v4  ;;  %v970_v44 = vrot.slane %v9226_v37, 7  ;;  %2558 = vmatpush.bf16.msrb.mxu0 %v7815_v26  ;;  %v11010_v3 = vrot.slane %v9166_v33, 7 }
  0x84   : > { %1402 = vst [vmem:[#allocation2 + $0x154] sm:$0xf] %v1370_v19  ;;  %v10879_v27 = vrot.slane %v9235_v58, 7  ;;  %v566_v19 = vand.u32 15, %v362_v41  ;;  %v986_v43 = vrot.slane %v9230_v28, 7  ;;  %v10881_v51 = vrot.slane %v9238_v47, 7 }
  0x85   : > { %1403 = vst [vmem:[#allocation2 + $0x160] sm:$0xf] %v1371_v8  ;;  %v11003_v8 = vmov 0  ;;  %v1010_v9 = vsel %vm10890_vm0, %v11006_v10, %v970_v44 }
  0x86   : > { %11002 = vst [vmem:[#allocation32_spill] sm:$0xff] %v9230_v28  ;;  %v11004_v8 = vsel %vm9245_vm13, 4294967295, %v11003_v8  ;;  %v1009_v45 = vsel %vm10890_vm0, %v970_v44, %v10879_v27  ;;  %v1099_v24 = vsel %vm9245_vm13, %v1010_v9, 0.0  ;;  %vm9260_vm14 = vcmp.ne.s32.totalorder %v566_v19, 0  ;;  %v7773_v19 = vld [vmem:[#allocation2 + $0x80] sm:$0xf0] }
  0x87   : > { %2060 = vmatmul.bf16.gmra.mxu0 %v9212_v59  ;;  %2100 = vmatmul.bf16.gmra.mxu2 %v9214_v63  ;;  %11005 = vst [vmem:[#allocation33_spill] sm:$0xff] %v11004_v8  ;;  %v11008_v40 = vsel %vm9260_vm14, 4294967295, %v11007_v40  ;;  %v1292_v41 = vpack.c.bf16 %v1099_v24, %v1099_v24  ;;  %v1293_v2 = vpack.c.bf16 %v1009_v45, %v1009_v45  ;;  %v6433_v24 = vld [vmem:[#allocation2 + $0x78] sm:$0xf]  ;;  %v7772_v27 = vld [vmem:[#allocation2 + $0x7c] sm:$0xf] }
  0x88   : > { %2149 = vmatmul.bf16.gmra.mxu1 %v9216_v56  ;;  %11009 = vst [vmem:[#allocation34_spill] sm:$0xff] %v11008_v40  ;;  %v993_v13 = vsel %vm10890_vm0, %v986_v43, %v10881_v51  ;;  %v994_v26 = vsel %vm10890_vm0, %v11010_v3, %v986_v43  ;;  %v1356_v45 = vpack.c.bf16 %v9226_v37, %v9226_v37  ;;  %v6435_v8 = vld [vmem:[#allocation2 + $0x84] sm:$0xf0]  ;;  %v6529_v63 = vld [vmem:[#allocation2 + $0x138] sm:$0xf] }
  0x89   : > { %v1115_v44 = vsel %vm9260_vm14, %v994_v26, 0.0  ;;  %v1309_v10 = vpack.c.bf16 %v993_v13, %v993_v13  ;;  %1324 = vst [vmem:[#allocation2 + $0xa8] sm:$0xf] %v1292_v41  ;;  %v1357_v51 = vpack.c.bf16 %v9235_v58, %v9235_v58  ;;  %v1372_v43 = vpack.c.bf16 %v9230_v28, %v9230_v28  ;;  %v7796_v13 = vld [vmem:[#allocation2 + $0x13c] sm:$0xf] }
  0x8a   : > { %2189 = vmatmul.bf16.gmra.mxu3 %v9218_v4  ;;  %v1308_v9 = vpack.c.bf16 %v1115_v44, %v1115_v44  ;;  %1325 = vst [vmem:[#allocation2 + $0xb4] sm:$0xf] %v1293_v2  ;;  %v7797_v4 = vld [vmem:[#allocation2 + $0x140] sm:$0xf0]  ;;  %v6531_v3 = vld [vmem:[#allocation2 + $0x144] sm:$0xf0]  ;;  %v1373_v41 = vpack.c.bf16 %v9238_v47, %v9238_v47  ;;  %v8130_v26 = vunpack.c.l.bf16 %v8805_v21  ;;  %v8162_v2 = vunpack.c.l.bf16 %v8783_v12 }
  0x8b   : > { %1341 = vst [vmem:[#allocation2 + $0x174] sm:$0xf] %v1309_v10  ;;  %v9284_v44 = vor.u32 %v7773_v19, %v6433_v24  ;;  %v9286_v40 = vor.u32 %v7797_v4, %v6529_v63  ;;  %v9290_v33 = vor.u32 %v7796_v13, %v6531_v3  ;;  %v364_v12 = vadd.s32 240, %v8776_v1  ;;  %v7806_v4 = vld [vmem:[#allocation6 + $0x8] sm:$0xff]  ;;  %v7828_v19 = vld [vmem:[#allocation6 + $0xb8] sm:$0xff] }
  0x8c   : > { %1340 = vst [vmem:[#allocation2 + $0x168] sm:$0xf] %v1308_v9  ;;  %v9288_v9 = vor.u32 %v7772_v27, %v6435_v8  ;;  %v904_v10 = vmul.f32 %v8793_v18, %v8130_v26  ;;  %v920_v28 = vmul.f32 %v8793_v18, %v8162_v2  ;;  %v7849_v18 = vld [vmem:[#allocation6 + $0x148] sm:$0xff]  ;;  %2470 = vmatpush.bf16.msrb.mxu3 %v7806_v4  ;;  %v11017_v3 = vrot.slane %v9235_v58, 7 }
  0x8d   : > { %1388 = vst [vmem:[#allocation2 + $0xac] sm:$0xf] %v1356_v45  ;;  %v348_v45 = vadd.s32 112, %v8776_v1  ;;  %v580_v24 = vand.u32 15, %v364_v12  ;;  %2221 = vmatpush.bf16.msrb.mxu2 %v7849_v18  ;;  %2642 = vmatpush.bf16.msrb.mxu1 %v7828_v19  ;;  %v11021_v12 = vrot.slane %v8825_v36, 7  ;;  %v11022_v4 = vrot.slane %v9238_v47, 7 }
  0x8e   : > { %11011 = vst [vmem:[#allocation35_spill] sm:$0xff] %v9286_v40  ;;  %v9296_v21 = vadd.f32 %v8802_v20, %v904_v10  ;;  %v9300_v63 = vadd.f32 %v8802_v20, %v920_v28  ;;  %v11013_v20 = vmov 0  ;;  %v11016_v28 = vrot.slane %v8840_v48, 7 }
  0x8f   : > { %1389 = vst [vmem:[#allocation2 + $0xb8] sm:$0xf] %v1357_v51  ;;  %v468_v27 = vand.u32 15, %v348_v45  ;;  %v7814_v51 = vld [vmem:[#allocation6 + $0x48] sm:$0xff]  ;;  %vm9322_vm1 = vcmp.ne.s32.totalorder %v580_v24, 0  ;;  %v11018_v10 = vmov 0 }
  0x90   : > { %11012 = vst [vmem:[#allocation36_spill] sm:$0xff] %v9290_v33  ;;  %v972_v8 = vrot.slane %v9296_v21, 7  ;;  %2559 = vmatpush.bf16.msrb.mxu0 %v7814_v51  ;;  %v11019_v10 = vsel %vm9322_vm1, 4294967295, %v11018_v10  ;;  %v1358_v19 = vpack.c.bf16 %v9296_v21, %v9296_v21  ;;  %v6445_v24 = vld [vmem:[#allocation2 + $0x90] sm:$0xf]  ;;  %vm11033_vm14 = vcmp.lt.s32.totalorder %v8776_v1, 7 }
  0x91   : > { %1404 = vst [vmem:[#allocation2 + $0x16c] sm:$0xf] %v1372_v43  ;;  %v988_v43 = vrot.slane %v9300_v63, 7  ;;  %vm9308_vm15 = vcmp.ne.s32.totalorder %v468_v27, 0  ;;  %vm11034_vm12 = vmmov %vm11033_vm14 }
  0x92   : > { %1405 = vst [vmem:[#allocation2 + $0x178] sm:$0xf] %v1373_v41  ;;  %v11014_v20 = vsel %vm9308_vm15, 4294967295, %v11013_v20  ;;  %v1007_v13 = vsel %vm10890_vm0, %v972_v8, %v11016_v28  ;;  %v1008_v41 = vsel %vm10890_vm0, %v11017_v3, %v972_v8  ;;  %v7776_v28 = vld [vmem:[#allocation2 + $0x98] sm:$0xf0]  ;;  %v1359_v3 = vpack.c.bf16 %v8840_v48, %v8840_v48  ;;  %vm11038_vm10 = vmmov %vm11033_vm14 }
  0x93   : > { %11015 = vst [vmem:[#allocation37_spill] sm:$0xff] %v11014_v20  ;;  %v1101_v26 = vsel %vm9308_vm15, %v1008_v41, 0.0  ;;  %v1295_v2 = vpack.c.bf16 %v1007_v13, %v1007_v13  ;;  %v991_v18 = vsel %vm10890_vm0, %v988_v43, %v11021_v12  ;;  %v992_v27 = vsel %vm10890_vm0, %v11022_v4, %v988_v43  ;;  %v6541_v41 = vld [vmem:[#allocation2 + $0x150] sm:$0xf]  ;;  %v6447_v12 = vld [vmem:[#allocation2 + $0x9c] sm:$0xf0]  ;;  %vm11042_vm8 = vmmov %vm11033_vm14 }
  0x94   : > { %11020 = vst [vmem:[#allocation38_spill] sm:$0xff] %v11019_v10  ;;  %v1294_v45 = vpack.c.bf16 %v1101_v26, %v1101_v26  ;;  %v1117_v8 = vsel %vm9322_vm1, %v992_v27, 0.0  ;;  %v1311_v51 = vpack.c.bf16 %v991_v18, %v991_v18  ;;  %v7800_v26 = vld [vmem:[#allocation2 + $0x158] sm:$0xf0]  ;;  %v1374_v43 = vpack.c.bf16 %v9300_v63, %v9300_v63  ;;  %v7799_v4 = vld [vmem:[#allocation2 + $0x154] sm:$0xf]  ;;  %vm11046_vm6 = vmmov %vm11033_vm14 }
  0x95   : > { %1327 = vst [vmem:[#allocation2 + $0xcc] sm:$0xf] %v1295_v2  ;;  %v1310_v13 = vpack.c.bf16 %v1117_v8, %v1117_v8  ;;  %v7775_v2 = vld [vmem:[#allocation2 + $0x94] sm:$0xf]  ;;  %v1375_v18 = vpack.c.bf16 %v8825_v36, %v8825_v36  ;;  %v6543_v27 = vld [vmem:[#allocation2 + $0x15c] sm:$0xf0]  ;;  %v9346_v8 = vor.u32 %v7800_v26, %v6541_v41  ;;  %vm11050_vm4 = vmmov %vm11033_vm14 }
  0x96   : > { %1326 = vst [vmem:[#allocation2 + $0xc0] sm:$0xf] %v1294_v45  ;;  %v9344_v45 = vor.u32 %v7776_v28, %v6445_v24  ;;  %v9348_v10 = vor.u32 %v7775_v2, %v6447_v12  ;;  %v335_v20 = vadd.s32 8, %v8776_v1  ;;  %v7805_v24 = vld [vmem:[#allocation6] sm:$0xff]  ;;  %v7826_v41 = vld [vmem:[#allocation6 + $0xa8] sm:$0xff]  ;;  %v1121_v2 = vrot.slane %v8875_v5, 1  ;;  %vm11054_vm2 = vmmov %vm11033_vm14 }
  0x97   : > { %2065 = vmatmul.bf16.gmra.mxu0 %v9284_v44  ;;  %2105 = vmatmul.bf16.gmra.mxu2 %v9286_v40  ;;  %1343 = vst [vmem:[#allocation2 + $0x18c] sm:$0xf] %v1311_v51  ;;  %v9350_v51 = vor.u32 %v7799_v4, %v6543_v27  ;;  %v7813_v26 = vld [vmem:[#allocation6 + $0x40] sm:$0xff]  ;;  %v11025_v12 = vmov 0  ;;  %vm10896_vm1 = vcmp.lt.s32.totalorder %v8776_v1, 7 }
  0x98   : > { %2154 = vmatmul.bf16.gmra.mxu1 %v9288_v9  ;;  %1342 = vst [vmem:[#allocation2 + $0x180] sm:$0xf] %v1310_v13  ;;  %v7827_v13 = vld [vmem:[#allocation6 + $0xb0] sm:$0xff]  ;;  %v377_v28 = vand.u32 15, %v335_v20  ;;  %2471 = vmatpush.bf16.msrb.mxu3 %v7805_v24  ;;  %v7825_v4 = vld [vmem:[#allocation6 + $0xa0] sm:$0xff] }
  0x99   : > { %1390 = vst [vmem:[#allocation2 + $0xc4] sm:$0xf] %v1358_v19  ;;  %v7848_v19 = vld [vmem:[#allocation6 + $0x140] sm:$0xff]  ;;  %2643 = vmatpush.bf16.msrb.mxu1 %v7827_v13  ;;  %2560 = vmatpush.bf16.msrb.mxu0 %v7813_v26  ;;  %v6457_v13 = vld [vmem:[#allocation2 + $0xa8] sm:$0xf] }
  0x9a   : > { %2194 = vmatmul.bf16.gmra.mxu3 %v9290_v33  ;;  %1391 = vst [vmem:[#allocation2 + $0xd0] sm:$0xf] %v1359_v3  ;;  %v1120_v3 = vrot.slane %v8822_v35, 1  ;;  %2222 = vmatpush.bf16.msrb.mxu2 %v7848_v19  ;;  %vm9360_vm0 = vcmp.ne.s32.totalorder %v377_v28, 15  ;;  %v7779_v19 = vld [vmem:[#allocation2 + $0xb0] sm:$0xf0] }
  0x9b   : > { %11023 = vst [vmem:[#allocation39_spill] sm:$0xff] %v9346_v8  ;;  %v11026_v12 = vsel %vm9360_vm0, 4294967295, %v11025_v12  ;;  %v6553_v24 = vld [vmem:[#allocation2 + $0x168] sm:$0xf]  ;;  %v7803_v28 = vld [vmem:[#allocation2 + $0x170] sm:$0xf0] }
  0x9c   : > { %1406 = vst [vmem:[#allocation2 + $0x184] sm:$0xf] %v1374_v43  ;;  %v10899_v43 = vrot.slane %v8819_v34, 1  ;;  %v1181_v20 = vsel %vm10896_vm1, %v1120_v3, %v1121_v2  ;;  %v7778_v26 = vld [vmem:[#allocation2 + $0xac] sm:$0xf] }
  0x9d   : > { %11024 = vst [vmem:[#allocation40_spill] sm:$0xff] %v9350_v51  ;;  %v1249_v5 = vsel %vm9360_vm0, %v1181_v20, 0.0  ;;  %2644 = vmatpush.bf16.msrb.mxu1 %v7826_v41  ;;  %v7802_v40 = vld [vmem:[#allocation2 + $0x16c] sm:$0xf]  ;;  %v6555_v33 = vld [vmem:[#allocation2 + $0x174] sm:$0xf0]  ;;  %v9375_v41 = vor.u32 %v7803_v28, %v6553_v24 }
  0x9e   : > { %1407 = vst [vmem:[#allocation2 + $0x190] sm:$0xf] %v1375_v18  ;;  %v1182_v35 = vsel %vm10896_vm1, %v10899_v43, %v1120_v3  ;;  %v1409_v27 = vpack.c.bf16 %v1249_v5, %v1249_v5  ;;  %v9373_v3 = vor.u32 %v7779_v19, %v6457_v13  ;;  %v7824_v20 = vld [vmem:[#allocation6 + $0x98] sm:$0xff]  ;;  %v9379_v5 = vor.u32 %v7802_v40, %v6555_v33  ;;  %v7823_v33 = vld [vmem:[#allocation6 + $0x90] sm:$0xff] }
  0x9f   : > { %11027 = vst [vmem:[#allocation41_spill] sm:$0xff] %v11026_v12  ;;  %v1408_v18 = vpack.c.bf16 %v1182_v35, %v1182_v35  ;;  %v1122_v40 = vrot.slane %v8891_v17, 1  ;;  %v1123_v13 = vrot.slane %v8947_v22, 1  ;;  %v11030_v19 = vmov 0  ;;  %v7782_v22 = vld [vmem:[#allocation2 + $0xc8] sm:$0xf0] }
  0xa0   : > { %1441 = vst [vmem:[#allocation2 + $0x2c] sm:$0xf] %v1409_v27  ;;  %v7919_v27 = vld [vmem:[#allocation6 + $0x1f8] sm:$0xff]  ;;  %v7781_v43 = vld [vmem:[#allocation2 + $0xc4] sm:$0xf] }
  0xa1   : > { %1440 = vst [vmem:[#allocation2 + $0x20] sm:$0xf] %v1408_v18  ;;  %2645 = vmatpush.bf16.msrb.mxu1 %v7825_v4  ;;  %v337_v18 = vadd.s32 24, %v8776_v1  ;;  %v7911_v4 = vld [vmem:[#allocation6 + $0x1b8] sm:$0xff]  ;;  %3333 = vmatpush.bf16.msra.mxu3 %v7919_v27  ;;  %v1179_v24 = vsel %vm11033_vm14, %v1122_v40, %v1123_v13  ;;  %v1180_v28 = vsel %vm11034_vm12, %v1121_v2, %v1122_v40  ;;  %v6565_v27 = vld [vmem:[#allocation2 + $0x180] sm:$0xf] }
  0xa2   : > { %11028 = vst [vmem:[#allocation42_spill] sm:$0xff] %v9375_v41  ;;  %3244 = vmatpush.bf16.msra.mxu2 %v7911_v4  ;;  %v1410_v17 = vpack.c.bf16 %v1180_v28, %v1180_v28  ;;  %v6469_v4 = vld [vmem:[#allocation2 + $0xc0] sm:$0xf]  ;;  %v6471_v12 = vld [vmem:[#allocation2 + $0xcc] sm:$0xf0] }
  0xa3   : > { %11029 = vst [vmem:[#allocation43_spill] sm:$0xff] %v9379_v5  ;;  %v9398_v2 = vor.u32 %v7782_v22, %v6469_v4  ;;  %v11035_v22 = vmov 0 }
  0xa4   : > { %1442 = vst [vmem:[#allocation2 + $0x38] sm:$0xf] %v1410_v17  ;;  %v1124_v17 = vrot.slane %v8957_v30, 1 }
  0xa5   : > { %2646 = vmatpush.bf16.msrb.mxu1 %v7824_v20 }
  0xa7   : > { %2070 = vmatmul.bf16.gmra.mxu0 %v9344_v45  ;;  %2110 = vmatmul.bf16.gmra.mxu2 %v9346_v8  ;;  %v6459_v8 = vld [vmem:[#allocation2 + $0xb4] sm:$0xf0]  ;;  %v7762_v30 = vld [vmem:[#allocation2 + $0x28] sm:$0xf0] }
  0xa8   : > { %2159 = vmatmul.bf16.gmra.mxu1 %v9348_v10  ;;  %v9377_v35 = vor.u32 %v7778_v26, %v6459_v8  ;;  %v391_v8 = vand.u32 15, %v337_v18  ;;  %v7927_v18 = vld [vmem:[#allocation6 + $0x238] sm:$0xff]  ;;  %v6393_v4 = vld [vmem:[#allocation2 + $0x20] sm:$0xf] }
  0xa9   : > { %2647 = vmatpush.bf16.msrb.mxu1 %v7823_v33  ;;  %v7830_v33 = vld [vmem:[#allocation2 + $0x188] sm:$0xf0]  ;;  %3422 = vmatpush.bf16.msra.mxu0 %v7927_v18 }
  0xaa   : > { %2199 = vmatmul.bf16.gmra.mxu3 %v9350_v51  ;;  %v8612_v51 = vmov 0   ;;  %vm9388_vm1 = vcmp.ne.s32.totalorder %v391_v8, 15  ;;  %v7821_v8 = vld [vmem:[#allocation6 + $0x80] sm:$0xff]  ;;  %v6566_v40 = vor.u32 %v7830_v33, %v6565_v27 }
  0xab   : > { %814 = vst [vmem:[#allocation2] sm:$0xff] %v8612_v51  ;;  %v11031_v19 = vsel %vm9388_vm1, 4294967295, %v11030_v19  ;;  %v1251_v26 = vsel %vm9388_vm1, %v1179_v24, 0.0  ;;  %v9400_v24 = vor.u32 %v7781_v43, %v6471_v12  ;;  %v1178_v12 = vsel %vm11038_vm10, %v1123_v13, %v1124_v17 }
  0xac   : > { %816 = vst [vmem:[#allocation2 + $0xc] sm:$0xff] %v8612_v51  ;;  %v1411_v20 = vpack.c.bf16 %v1251_v26, %v1251_v26  ;;  %v339_v26 = vadd.s32 40, %v8776_v1 }
  0xad   : > { %815 = vst [vmem:[#allocation2 + $0x8] sm:$0xf] %v8612_v51 }
  0xae   : > { %817 = vst [vmem:[#allocation2 + $0x14] sm:$0xf] %v8612_v51 }
  0xaf   : > { %818 = vst [vmem:[#allocation2 + $0x198] sm:$0xff] %v8612_v51 }
  0xb0   : > { %819 = vst [vmem:[#allocation2 + $0x1a0] sm:$0xf] %v8612_v51 }
  0xb1   : > { %820 = vst [vmem:[#allocation2 + $0x1a4] sm:$0xff] %v8612_v51 }
  0xb2   : > { %821 = vst [vmem:[#allocation2 + $0x1ac] sm:$0xf] %v8612_v51  ;;  %v7822_v51 = vld [vmem:[#allocation6 + $0x88] sm:$0xff] }
  0xb3   : > { %11032 = vst [vmem:[#allocation44_spill] sm:$0xff] %v11031_v19  ;;  %2648 = vmatpush.bf16.msrb.mxu1 %v7822_v51  ;;  %v405_v51 = vand.u32 15, %v339_v26  ;;  %v6675_v27 = vld [vmem:[#allocation2 + $0xc] sm:$0xf0]  ;;  %v7758_v33 = vld [vmem:[#allocation2 + $0x8] sm:$0xf0]  ;;  %v6394_v26 = vor.u32 %v7762_v30, %v6393_v4 }
  0xb4   : > { %1443 = vst [vmem:[#allocation2 + $0x44] sm:$0xf] %v1411_v20  ;;  %v1125_v20 = vrot.slane %v9017_v52, 1  ;;  %v6673_v52 = vld [vmem:[#allocation2] sm:$0xf]  ;;  %v1127_v4 = vrot.slane %v9088_v54, 1 }
  0xb5   : > { %vm9407_vm12 = vcmp.ne.s32.totalorder %v405_v51, 15  ;;  %v6674_v34 = vor.u32 %v7758_v33, %v6673_v52  ;;  %v11039_v52 = vmov 0 }
  0xb6   : > { %v11036_v22 = vsel %vm9407_vm12, 4294967295, %v11035_v22  ;;  %v1177_v43 = vsel %vm11033_vm14, %v1124_v17, %v1125_v20 }
  0xb7   : > { %2075 = vmatmul.bf16.gmra.mxu0 %v9373_v3  ;;  %2115 = vmatmul.bf16.gmra.mxu2 %v9375_v41  ;;  %v7829_v41 = vld [vmem:[#allocation2 + $0x184] sm:$0xf]  ;;  %11037 = vst [vmem:[#allocation45_spill] sm:$0xff] %v11036_v22 }
  0xb8   : > { %2164 = vmatmul.bf16.gmra.mxu1 %v9377_v35 }
  0xb9   : > { %2649 = vmatpush.bf16.msrb.mxu1 %v7821_v8  ;;  %v7757_v8 = vld [vmem:[#allocation2 + $0x4] sm:$0xf] }
  0xba   : > { %2204 = vmatmul.bf16.gmra.mxu3 %v9379_v5  ;;  %v6567_v5 = vld [vmem:[#allocation2 + $0x18c] sm:$0xf0]  ;;  %v6678_v51 = vor.u32 %v7757_v8, %v6675_v27 }
  0xbb   : > { %v6570_v28 = vor.u32 %v7829_v41, %v6567_v5  ;;  %v1253_v41 = vsel %vm9407_vm12, %v1177_v43, 0.0  ;;  %v1412_v5 = vpack.c.bf16 %v1178_v12, %v1178_v12  ;;  %v341_v43 = vadd.s32 56, %v8776_v1  ;;  %v7910_v12 = vld [vmem:[#allocation6 + $0x1b0] sm:$0xff] }
  0xbc   : > { %v1413_v18 = vpack.c.bf16 %v1253_v41, %v1253_v41  ;;  %v7918_v41 = vld [vmem:[#allocation6 + $0x1f0] sm:$0xff]  ;;  %3245 = vmatpush.bf16.msra.mxu2 %v7910_v12 }
  0xbd   : > { %1444 = vst [vmem:[#allocation2 + $0x50] sm:$0xf] %v1412_v5  ;;  %v419_v5 = vand.u32 15, %v341_v43  ;;  %3334 = vmatpush.bf16.msra.mxu3 %v7918_v41  ;;  %v7765_v43 = vld [vmem:[#allocation2 + $0x40] sm:$0xf0] }
  0xbe   : > { %1445 = vst [vmem:[#allocation2 + $0x5c] sm:$0xf] %v1413_v18  ;;  %v1126_v18 = vrot.slane %v9020_v53, 1 }
  0xbf   : > { %vm9422_vm10 = vcmp.ne.s32.totalorder %v419_v5, 15 }
  0xc0   : > { %v11040_v52 = vsel %vm9422_vm10, 4294967295, %v11039_v52 }
  0xc1   : > { %11041 = vst [vmem:[#allocation46_spill] sm:$0xff] %v11040_v52 }
  0xc7   : > { %2080 = vmatmul.bf16.gmra.mxu0 %v9398_v2  ;;  %2120 = vmatmul.bf16.gmra.mxu2 %v6566_v40  ;;  %v6681_v40 = vld [vmem:[#allocation2 + $0x8] sm:$0xf] }
  0xc8   : > { %2169 = vmatmul.bf16.gmra.mxu1 %v9400_v24 }
  0xca   : > { %2209 = vmatmul.bf16.gmra.mxu3 %v6570_v28  ;;  %v7759_v28 = vld [vmem:[#allocation2 + $0x10] sm:$0xf0] }
  0xcb   : > { %v6682_v13 = vor.u32 %v7759_v28, %v6681_v40 }
  0xd4   : > { %v2046_v19 = vpop.f32.mrf.mxu0 }
  0xd5   : > { %v2135_v17 = vpop.f32.mrf.mxu1 }
  0xd6   : > { %v9417_v22 = vadd.f32 %v2135_v17, %v2046_v19  ;;  %v1175_v19 = vsel %vm11033_vm14, %v1126_v18, %v1127_v4  ;;  %v6405_v17 = vld [vmem:[#allocation2 + $0x38] sm:$0xf] }
  0xd7   : > { %2223 = vmatmul.bf16.vlgmr.msrb.gmra.mxu2 %v6394_v26  ;;  %2561 = vmatmul.bf16.vlgmr.msrb.gmra.mxu0 %v6678_v51  ;;  %v1255_v27 = vsel %vm9422_vm10, %v1175_v19, 0.0 }
  0xd8   : > { %2650 = vmatmul.bf16.vlgmr.msrb.gmra.mxu1 %v6682_v13  ;;  %v1415_v40 = vpack.c.bf16 %v1255_v27, %v1255_v27  ;;  %v7926_v13 = vld [vmem:[#allocation6 + $0x230] sm:$0xff]  ;;  %v1128_v27 = vrot.slane %v9091_v42, 1 }
  0xd9   : > { %3423 = vmatpush.bf16.msra.mxu0 %v7926_v13 }
  0xda   : > { %2472 = vmatmul.bf16.vlgmr.msrb.gmra.mxu3 %v6674_v34  ;;  %v2086_v30 = vpop.f32.mrf.mxu2  ;;  %v1176_v34 = vsel %vm11042_vm8, %v1125_v20, %v1126_v18  ;;  %1447 = vst [vmem:[#allocation2 + $0x74] sm:$0xf] %v1415_v40  ;;  %v6406_v20 = vor.u32 %v7765_v43, %v6405_v17  ;;  %v11043_v40 = vmov 0 }
  0xdb   : > { %v1414_v33 = vpack.c.bf16 %v1176_v34, %v1176_v34 }
  0xdc   : > { %v2048_v54 = vpop.f32.mrf.mxu0 }
  0xdd   : > { %v2175_v8 = vpop.f32.mrf.mxu3  ;;  %v2137_v28 = vpop.f32.mrf.mxu1  ;;  %1446 = vst [vmem:[#allocation2 + $0x68] sm:$0xf] %v1414_v33 }
  0xde   : > { %v9432_v53 = vadd.f32 %v2175_v8, %v2086_v30  ;;  %v9434_v51 = vadd.f32 %v2137_v28, %v2048_v54  ;;  %v343_v8 = vadd.s32 72, %v8776_v1  ;;  %v1129_v54 = vrot.slane %v9154_v60, 1 }
  0xe0   : > { %v433_v34 = vand.u32 15, %v343_v8  ;;  %v1173_v28 = vsel %vm11033_vm14, %v1128_v27, %v1129_v54 }
  0xe2   : > { %v2088_v12 = vpop.f32.mrf.mxu2  ;;  %vm9445_vm8 = vcmp.ne.s32.totalorder %v433_v34, 15 }
  0xe3   : > { %v11044_v40 = vsel %vm9445_vm8, 4294967295, %v11043_v40 }
  0xe4   : > { %v2051_v18 = vpop.f32.mrf.mxu0  ;;  %11045 = vst [vmem:[#allocation47_spill] sm:$0xff] %v11044_v40 }
  0xe5   : > { %v2177_v41 = vpop.f32.mrf.mxu3  ;;  %v2140_v30 = vpop.f32.mrf.mxu1 }
  0xe6   : > { %v9436_v5 = vadd.f32 %v2177_v41, %v2088_v12  ;;  %v9438_v19 = vadd.f32 %v2140_v30, %v2051_v18  ;;  %v6417_v41 = vld [vmem:[#allocation2 + $0x50] sm:$0xf]  ;;  %v7768_v18 = vld [vmem:[#allocation2 + $0x58] sm:$0xf0] }
  0xe7   : > { %2228 = vmatmul.bf16.gmra.mxu2 %v6406_v20  ;;  %2566 = vmatmul.bf16.gmra.mxu0 %v8922_v57  ;;  %v1174_v57 = vsel %vm11046_vm6, %v1127_v4, %v1128_v27  ;;  %v6418_v34 = vor.u32 %v7768_v18, %v6417_v41 }
  0xe8   : > { %2655 = vmatmul.bf16.gmra.mxu1 %v6394_v26  ;;  %v1416_v17 = vpack.c.bf16 %v1174_v57, %v1174_v57  ;;  %v7917_v57 = vld [vmem:[#allocation6 + $0x1e8] sm:$0xff] }
  0xe9   : > { %3335 = vmatpush.bf16.msra.mxu3 %v7917_v57 }
  0xea   : > { %2477 = vmatmul.bf16.gmra.mxu3 %v8952_v25  ;;  %v2091_v33 = vpop.f32.mrf.mxu2  ;;  %v1257_v25 = vsel %vm9445_vm8, %v1173_v28, 0.0  ;;  %1448 = vst [vmem:[#allocation2 + $0x80] sm:$0xf] %v1416_v17  ;;  %v1131_v17 = vrot.slane %v9226_v37, 1 }
  0xeb   : > { %v1417_v60 = vpack.c.bf16 %v1257_v25, %v1257_v25 }
  0xec   : > { %v2053_v42 = vpop.f32.mrf.mxu0 }
  0xed   : > { %v2180_v13 = vpop.f32.mrf.mxu3  ;;  %v2142_v43 = vpop.f32.mrf.mxu1  ;;  %1449 = vst [vmem:[#allocation2 + $0x8c] sm:$0xf] %v1417_v60 }
  0xee   : > { %v9455_v26 = vadd.f32 %v2180_v13, %v2091_v33  ;;  %v9457_v12 = vadd.f32 %v2142_v43, %v2053_v42  ;;  %v345_v33 = vadd.s32 88, %v8776_v1  ;;  %v7909_v13 = vld [vmem:[#allocation6 + $0x1a8] sm:$0xff]  ;;  %v1130_v42 = vrot.slane %v9163_v0, 1 }
  0xef   : > { %3246 = vmatpush.bf16.msra.mxu2 %v7909_v13  ;;  %v11047_v43 = vmov 0  ;;  %v7771_v13 = vld [vmem:[#allocation2 + $0x70] sm:$0xf0] }
  0xf0   : > { %v447_v25 = vand.u32 15, %v345_v33  ;;  %v6429_v33 = vld [vmem:[#allocation2 + $0x68] sm:$0xf] }
  0xf2   : > { %v2093_v30 = vpop.f32.mrf.mxu2  ;;  %vm9468_vm6 = vcmp.ne.s32.totalorder %v447_v25, 15 }
  0xf3   : > { %v11048_v43 = vsel %vm9468_vm6, 4294967295, %v11047_v43 }
  0xf4   : > { %v2056_v4 = vpop.f32.mrf.mxu0  ;;  %11049 = vst [vmem:[#allocation48_spill] sm:$0xff] %v11048_v43 }
  0xf5   : > { %v2182_v8 = vpop.f32.mrf.mxu3  ;;  %v2145_v27 = vpop.f32.mrf.mxu1 }
  0xf6   : > { %v9459_v52 = vadd.f32 %v2182_v8, %v2093_v30  ;;  %v9461_v28 = vadd.f32 %v2145_v27, %v2056_v4  ;;  %v7925_v27 = vld [vmem:[#allocation6 + $0x228] sm:$0xff] }
  0xf7   : > { %2233 = vmatmul.bf16.gmra.mxu2 %v6418_v34  ;;  %2571 = vmatmul.bf16.gmra.mxu0 %v9034_v14  ;;  %v1171_v14 = vsel %vm11033_vm14, %v1130_v42, %v1131_v17 }
  0xf8   : > { %2660 = vmatmul.bf16.gmra.mxu1 %v6406_v20  ;;  %v1259_v20 = vsel %vm9468_vm6, %v1171_v14, 0.0  ;;  %3424 = vmatpush.bf16.msra.mxu0 %v7925_v27 }
  0xf9   : > { %v1419_v30 = vpack.c.bf16 %v1259_v20, %v1259_v20 }
  0xfa   : > { %2482 = vmatmul.bf16.gmra.mxu3 %v9042_v23  ;;  %v2096_v60 = vpop.f32.mrf.mxu2  ;;  %v1172_v23 = vsel %vm11050_vm4, %v1129_v54, %v1130_v42  ;;  %v6430_v54 = vor.u32 %v7771_v13, %v6429_v33 }
  0xfb   : > { %v1418_v18 = vpack.c.bf16 %v1172_v23, %v1172_v23  ;;  %1451 = vst [vmem:[#allocation2 + $0xa4] sm:$0xf] %v1419_v30  ;;  %v347_v23 = vadd.s32 104, %v8776_v1 }
  0xfc   : > { %v2058_v37 = vpop.f32.mrf.mxu0 }
  0xfd   : > { %v2185_v41 = vpop.f32.mrf.mxu3  ;;  %v2147_v8 = vpop.f32.mrf.mxu1  ;;  %1450 = vst [vmem:[#allocation2 + $0x98] sm:$0xf] %v1418_v18  ;;  %v461_v20 = vand.u32 15, %v347_v23  ;;  %v1133_v18 = vrot.slane %v9296_v21, 1 }
  0xfe   : > { %v9478_v0 = vadd.f32 %v2185_v41, %v2096_v60  ;;  %v9480_v4 = vadd.f32 %v2147_v8, %v2058_v37  ;;  %v1132_v37 = vrot.slane %v9235_v58, 1  ;;  %v11051_v8 = vmov 0 }
  0xff   : > { %vm9491_vm4 = vcmp.ne.s32.totalorder %v461_v20, 15 }
 0x100   : > { %v11052_v8 = vsel %vm9491_vm4, 4294967295, %v11051_v8  ;;  %v1169_v27 = vsel %vm11033_vm14, %v1132_v37, %v1133_v18 }
 0x101   : > { %11053 = vst [vmem:[#allocation49_spill] sm:$0xff] %v11052_v8 }
 0x102   : > { %v2098_v57 = vpop.f32.mrf.mxu2 }
 0x104   : > { %v2061_v14 = vpop.f32.mrf.mxu0 }
 0x105   : > { %v2187_v25 = vpop.f32.mrf.mxu3  ;;  %v2150_v60 = vpop.f32.mrf.mxu1 }
 0x106   : > { %v9482_v42 = vadd.f32 %v2187_v25, %v2098_v57  ;;  %v9484_v41 = vadd.f32 %v2150_v60, %v2061_v14  ;;  %v6441_v14 = vld [vmem:[#allocation2 + $0x80] sm:$0xf]  ;;  %v7774_v60 = vld [vmem:[#allocation2 + $0x88] sm:$0xf0] }
 0x107   : > { %2238 = vmatmul.bf16.gmra.mxu2 %v6430_v54  ;;  %2576 = vmatmul.bf16.gmra.mxu0 %v9144_v11  ;;  %v1170_v11 = vsel %vm11054_vm2, %v1131_v17, %v1132_v37  ;;  %v6442_v43 = vor.u32 %v7774_v60, %v6441_v14 }
 0x108   : > { %2665 = vmatmul.bf16.gmra.mxu1 %v6418_v34  ;;  %v1420_v13 = vpack.c.bf16 %v1170_v11, %v1170_v11  ;;  %v7916_v11 = vld [vmem:[#allocation6 + $0x1e0] sm:$0xff] }
 0x109   : > { %3336 = vmatpush.bf16.msra.mxu3 %v7916_v11 }
 0x10a   : > { %2487 = vmatmul.bf16.gmra.mxu3 %v9140_v6  ;;  %v2101_v30 = vpop.f32.mrf.mxu2  ;;  %v1261_v6 = vsel %vm9491_vm4, %v1169_v27, 0.0  ;;  %1452 = vst [vmem:[#allocation2 + $0xb0] sm:$0xf] %v1420_v13  ;;  %v1135_v13 = vrot.slane %v8843_v49, 1  ;;  %vm11058_vm4 = vmmov %vm11033_vm14 }
 0x10b   : > { %v1421_v21 = vpack.c.bf16 %v1261_v6, %v1261_v6 }
 0x10c   : > { %v2063_v58 = vpop.f32.mrf.mxu0 }
 0x10d   : > { %v2190_v33 = vpop.f32.mrf.mxu3  ;;  %v2152_v57 = vpop.f32.mrf.mxu1  ;;  %1453 = vst [vmem:[#allocation2 + $0xbc] sm:$0xf] %v1421_v21 }
 0x10e   : > { %v9501_v34 = vadd.f32 %v2190_v33, %v2101_v30  ;;  %v9503_v25 = vadd.f32 %v2152_v57, %v2063_v58  ;;  %v349_v30 = vadd.s32 120, %v8776_v1  ;;  %v7908_v33 = vld [vmem:[#allocation6 + $0x1a0] sm:$0xff]  ;;  %v1134_v58 = vrot.slane %v8840_v48, 1 }
 0x10f   : > { %3247 = vmatpush.bf16.msra.mxu2 %v7908_v33  ;;  %v11055_v57 = vmov 0  ;;  %v7777_v33 = vld [vmem:[#allocation2 + $0xa0] sm:$0xf0] }
 0x110   : > { %v475_v6 = vand.u32 15, %v349_v30  ;;  %v6453_v30 = vld [vmem:[#allocation2 + $0x98] sm:$0xf] }
 0x112   : > { %v2103_v23 = vpop.f32.mrf.mxu2  ;;  %vm9514_vm2 = vcmp.ne.s32.totalorder %v475_v6, 15 }
 0x113   : > { %v11056_v57 = vsel %vm9514_vm2, 4294967295, %v11055_v57 }
 0x114   : > { %v2066_v17 = vpop.f32.mrf.mxu0  ;;  %11057 = vst [vmem:[#allocation50_spill] sm:$0xff] %v11056_v57 }
 0x115   : > { %v2192_v20 = vpop.f32.mrf.mxu3  ;;  %v2155_v37 = vpop.f32.mrf.mxu1 }
 0x116   : > { %v9505_v40 = vadd.f32 %v2192_v20, %v2103_v23  ;;  %v9507_v27 = vadd.f32 %v2155_v37, %v2066_v17  ;;  %v7924_v37 = vld [vmem:[#allocation6 + $0x220] sm:$0xff] }
 0x117   : > { %2243 = vmatmul.bf16.gmra.mxu2 %v6442_v43  ;;  %2581 = vmatmul.bf16.gmra.mxu0 %v9216_v56  ;;  %v1167_v56 = vsel %vm11033_vm14, %v1134_v58, %v1135_v13 }
 0x118   : > { %2670 = vmatmul.bf16.gmra.mxu1 %v6430_v54  ;;  %v1263_v54 = vsel %vm9514_vm2, %v1167_v56, 0.0  ;;  %3425 = vmatpush.bf16.msra.mxu0 %v7924_v37  ;;  %vm11062_vm2 = vmmov %vm11033_vm14 }
 0x119   : > { %v1423_v23 = vpack.c.bf16 %v1263_v54, %v1263_v54 }
 0x11a   : > { %2492 = vmatmul.bf16.gmra.mxu3 %v9212_v59  ;;  %v2106_v21 = vpop.f32.mrf.mxu2  ;;  %v1168_v59 = vsel %vm11058_vm4, %v1133_v18, %v1134_v58  ;;  %v6454_v18 = vor.u32 %v7777_v33, %v6453_v30 }
 0x11b   : > { %v1422_v60 = vpack.c.bf16 %v1168_v59, %v1168_v59  ;;  %1455 = vst [vmem:[#allocation2 + $0xd4] sm:$0xf] %v1423_v23  ;;  %v351_v59 = vadd.s32 136, %v8776_v1 }
 0x11c   : > { %v2068_v49 = vpop.f32.mrf.mxu0 }
 0x11d   : > { %v2195_v14 = vpop.f32.mrf.mxu3  ;;  %v2157_v20 = vpop.f32.mrf.mxu1  ;;  %1454 = vst [vmem:[#allocation2 + $0xc8] sm:$0xf] %v1422_v60  ;;  %v489_v54 = vand.u32 15, %v351_v59  ;;  %v1137_v60 = vrot.slane %v8908_v38, 1 }
 0x11e   : > { %v9524_v48 = vadd.f32 %v2195_v14, %v2106_v21  ;;  %v9526_v17 = vadd.f32 %v2157_v20, %v2068_v49  ;;  %v1136_v49 = vrot.slane %v8846_v50, 1  ;;  %v11059_v20 = vmov 0 }
 0x11f   : > { %vm9537_vm4 = vcmp.ne.s32.totalorder %v489_v54, 15 }
 0x120   : > { %v11060_v20 = vsel %vm9537_vm4, 4294967295, %v11059_v20  ;;  %v1165_v37 = vsel %vm11033_vm14, %v1136_v49, %v1137_v60 }
 0x121   : > { %11061 = vst [vmem:[#allocation51_spill] sm:$0xff] %v11060_v20 }
 0x122   : > { %v2108_v11 = vpop.f32.mrf.mxu2 }
 0x124   : > { %v2071_v56 = vpop.f32.mrf.mxu0 }
 0x125   : > { %v2197_v6 = vpop.f32.mrf.mxu3  ;;  %v2160_v21 = vpop.f32.mrf.mxu1 }
 0x126   : > { %v9528_v58 = vadd.f32 %v2197_v6, %v2108_v11  ;;  %v9530_v14 = vadd.f32 %v2160_v21, %v2071_v56  ;;  %v6465_v56 = vld [vmem:[#allocation2 + $0xb0] sm:$0xf]  ;;  %v7780_v21 = vld [vmem:[#allocation2 + $0xb8] sm:$0xf0] }
 0x127   : > { %2248 = vmatmul.bf16.gmra.mxu2 %v6454_v18  ;;  %2586 = vmatmul.bf16.gmra.mxu0 %v9288_v9  ;;  %v1166_v9 = vsel %vm11062_vm2, %v1135_v13, %v1136_v49  ;;  %v6466_v57 = vor.u32 %v7780_v21, %v6465_v56 }
 0x128   : > { %2675 = vmatmul.bf16.gmra.mxu1 %v6442_v43  ;;  %v1424_v33 = vpack.c.bf16 %v1166_v9, %v1166_v9  ;;  %v7915_v9 = vld [vmem:[#allocation6 + $0x1d8] sm:$0xff] }
 0x129   : > { %3337 = vmatpush.bf16.msra.mxu3 %v7915_v9 }
 0x12a   : > { %2497 = vmatmul.bf16.gmra.mxu3 %v9284_v44  ;;  %v2111_v23 = vpop.f32.mrf.mxu2  ;;  %v1265_v44 = vsel %vm9537_vm4, %v1165_v37, 0.0  ;;  %1456 = vst [vmem:[#allocation2 + $0xe0] sm:$0xf] %v1424_v33  ;;  %v1139_v33 = vrot.slane %v8973_v55, 1  ;;  %vm11066_vm4 = vmmov %vm11033_vm14 }
 0x12b   : > { %v1425_v38 = vpack.c.bf16 %v1265_v44, %v1265_v44 }
 0x12c   : > { %v2073_v50 = vpop.f32.mrf.mxu0 }
 0x12d   : > { %v2200_v30 = vpop.f32.mrf.mxu3  ;;  %v2162_v11 = vpop.f32.mrf.mxu1  ;;  %1457 = vst [vmem:[#allocation2 + $0xec] sm:$0xf] %v1425_v38 }
 0x12e   : > { %v9547_v43 = vadd.f32 %v2200_v30, %v2111_v23  ;;  %v9549_v6 = vadd.f32 %v2162_v11, %v2073_v50  ;;  %v353_v23 = vadd.s32 152, %v8776_v1  ;;  %v7907_v30 = vld [vmem:[#allocation6 + $0x198] sm:$0xff]  ;;  %v1138_v50 = vrot.slane %v8911_v39, 1 }
 0x12f   : > { %3248 = vmatpush.bf16.msra.mxu2 %v7907_v30  ;;  %v11063_v11 = vmov 0  ;;  %v7783_v30 = vld [vmem:[#allocation2 + $0xd0] sm:$0xf0] }
 0x130   : > { %v503_v44 = vand.u32 15, %v353_v23  ;;  %v6477_v23 = vld [vmem:[#allocation2 + $0xc8] sm:$0xf] }
 0x132   : > { %v2113_v59 = vpop.f32.mrf.mxu2  ;;  %vm9560_vm2 = vcmp.ne.s32.totalorder %v503_v44, 15 }
 0x133   : > { %v11064_v11 = vsel %vm9560_vm2, 4294967295, %v11063_v11 }
 0x134   : > { %v2076_v13 = vpop.f32.mrf.mxu0  ;;  %11065 = vst [vmem:[#allocation52_spill] sm:$0xff] %v11064_v11 }
 0x135   : > { %v2202_v54 = vpop.f32.mrf.mxu3  ;;  %v2165_v49 = vpop.f32.mrf.mxu1 }
 0x136   : > { %v9551_v8 = vadd.f32 %v2202_v54, %v2113_v59  ;;  %v9553_v37 = vadd.f32 %v2165_v49, %v2076_v13  ;;  %v7923_v13 = vld [vmem:[#allocation6 + $0x218] sm:$0xff] }
 0x137   : > { %2253 = vmatmul.bf16.gmra.mxu2 %v6466_v57  ;;  %2591 = vmatmul.bf16.gmra.mxu0 %v9348_v10  ;;  %v1163_v10 = vsel %vm11033_vm14, %v1138_v50, %v1139_v33 }
 0x138   : > { %2680 = vmatmul.bf16.gmra.mxu1 %v6454_v18  ;;  %v1267_v18 = vsel %vm9560_vm2, %v1163_v10, 0.0  ;;  %3426 = vmatpush.bf16.msra.mxu0 %v7923_v13  ;;  %vm11070_vm2 = vmmov %vm11033_vm14 }
 0x139   : > { %v1427_v59 = vpack.c.bf16 %v1267_v18, %v1267_v18 }
 0x13a   : > { %2502 = vmatmul.bf16.gmra.mxu3 %v9344_v45  ;;  %v2116_v38 = vpop.f32.mrf.mxu2  ;;  %v1164_v45 = vsel %vm11066_vm4, %v1137_v60, %v1138_v50  ;;  %v6478_v60 = vor.u32 %v7783_v30, %v6477_v23 }
 0x13b   : > { %v1426_v21 = vpack.c.bf16 %v1164_v45, %v1164_v45  ;;  %1459 = vst [vmem:[#allocation2 + $0x104] sm:$0xf] %v1427_v59  ;;  %v355_v45 = vadd.s32 168, %v8776_v1 }
 0x13c   : > { %v2078_v55 = vpop.f32.mrf.mxu0 }
 0x13d   : > { %v2205_v56 = vpop.f32.mrf.mxu3  ;;  %v2167_v54 = vpop.f32.mrf.mxu1  ;;  %1458 = vst [vmem:[#allocation2 + $0xf8] sm:$0xf] %v1426_v21  ;;  %v517_v18 = vand.u32 15, %v355_v45  ;;  %v1141_v21 = vrot.slane %v9037_v15, 1 }
 0x13e   : > { %v9570_v39 = vadd.f32 %v2205_v56, %v2116_v38  ;;  %v9572_v49 = vadd.f32 %v2167_v54, %v2078_v55  ;;  %v1140_v55 = vrot.slane %v8987_v62, 1  ;;  %v11067_v54 = vmov 0 }
 0x13f   : > { %vm9583_vm4 = vcmp.ne.s32.totalorder %v517_v18, 15 }
 0x140   : > { %v11068_v54 = vsel %vm9583_vm4, 4294967295, %v11067_v54  ;;  %v1161_v13 = vsel %vm11033_vm14, %v1140_v55, %v1141_v21 }
 0x141   : > { %11069 = vst [vmem:[#allocation53_spill] sm:$0xff] %v11068_v54 }
 0x142   : > { %v2118_v9 = vpop.f32.mrf.mxu2 }
 0x144   : > { %v2081_v10 = vpop.f32.mrf.mxu0 }
 0x145   : > { %v2207_v44 = vpop.f32.mrf.mxu3  ;;  %v2170_v38 = vpop.f32.mrf.mxu1 }
 0x146   : > { %v9574_v50 = vadd.f32 %v2207_v44, %v2118_v9  ;;  %v9576_v56 = vadd.f32 %v2170_v38, %v2081_v10  ;;  %v6489_v10 = vld [vmem:[#allocation2 + $0xe0] sm:$0xf]  ;;  %v7786_v38 = vld [vmem:[#allocation2 + $0xe8] sm:$0xf0] }
 0x147   : > { %2258 = vmatmul.bf16.gmra.mxu2 %v6478_v60  ;;  %2596 = vmatmul.bf16.gmra.mxu0 %v9377_v35  ;;  %v1162_v35 = vsel %vm11070_vm2, %v1139_v33, %v1140_v55  ;;  %v6490_v11 = vor.u32 %v7786_v38, %v6489_v10 }
 0x148   : > { %2685 = vmatmul.bf16.gmra.mxu1 %v6466_v57  ;;  %v1428_v30 = vpack.c.bf16 %v1162_v35, %v1162_v35 }
 0x14a   : > { %2507 = vmatmul.bf16.gmra.mxu3 %v9373_v3  ;;  %v2121_v59 = vpop.f32.mrf.mxu2  ;;  %v1269_v3 = vsel %vm9583_vm4, %v1161_v13, 0.0  ;;  %1460 = vst [vmem:[#allocation2 + $0x110] sm:$0xf] %v1428_v30  ;;  %v7906_v13 = vld [vmem:[#allocation6 + $0x190] sm:$0xff]  ;;  %vm11074_vm4 = vmmov %vm11033_vm14 }
 0x14b   : > { %v1429_v15 = vpack.c.bf16 %v1269_v3, %v1269_v3  ;;  %v1142_v3 = vrot.slane %v9040_v16, 1  ;;  %3249 = vmatpush.bf16.msra.mxu2 %v7906_v13 }
 0x14c   : > { %v2083_v62 = vpop.f32.mrf.mxu0 }
 0x14d   : > { %v2210_v23 = vpop.f32.mrf.mxu3  ;;  %v2172_v9 = vpop.f32.mrf.mxu1  ;;  %1461 = vst [vmem:[#allocation2 + $0x11c] sm:$0xf] %v1429_v15  ;;  %v11071_v15 = vmov 0 }
 0x14e   : > { %v9593_v57 = vadd.f32 %v2210_v23, %v2121_v59  ;;  %v9595_v44 = vadd.f32 %v2172_v9, %v2083_v62  ;;  %v357_v59 = vadd.s32 184, %v8776_v1  ;;  %v7914_v23 = vld [vmem:[#allocation6 + $0x1d0] sm:$0xff]  ;;  %v1143_v62 = vrot.slane %v9095_v61, 1 }
 0x14f   : > { %3338 = vmatpush.bf16.msra.mxu3 %v7914_v23  ;;  %v1160_v9 = vsel %vm11074_vm4, %v1141_v21, %v1142_v3  ;;  %v6501_v23 = vld [vmem:[#allocation2 + $0xf8] sm:$0xf] }
 0x150   : > { %v531_v35 = vand.u32 15, %v357_v59  ;;  %v1430_v10 = vpack.c.bf16 %v1160_v9, %v1160_v9  ;;  %v7922_v59 = vld [vmem:[#allocation6 + $0x210] sm:$0xff] }
 0x151   : > { %3427 = vmatpush.bf16.msra.mxu0 %v7922_v59 }
 0x152   : > { %v2123_v45 = vpop.f32.mrf.mxu2  ;;  %vm9604_vm2 = vcmp.ne.s32.totalorder %v531_v35, 15  ;;  %1462 = vst [vmem:[#allocation2 + $0x128] sm:$0xf] %v1430_v10  ;;  %v7789_v35 = vld [vmem:[#allocation2 + $0x100] sm:$0xf0] }
 0x153   : > { %v11072_v15 = vsel %vm9604_vm2, 4294967295, %v11071_v15 }
 0x154   : > { %v2562_v33 = vpop.f32.mrf.mxu0  ;;  %11073 = vst [vmem:[#allocation54_spill] sm:$0xff] %v11072_v15  ;;  %v6502_v15 = vor.u32 %v7789_v35, %v6501_v23  ;;  %v6513_v23 = vld [vmem:[#allocation2 + $0x110] sm:$0xf]  ;;  %v7792_v35 = vld [vmem:[#allocation2 + $0x118] sm:$0xf0] }
 0x155   : > { %v2212_v18 = vpop.f32.mrf.mxu3  ;;  %v2651_v55 = vpop.f32.mrf.mxu1 }
 0x156   : > { %v9597_v20 = vadd.f32 %v2212_v18, %v2123_v45 }
 0x157   : > { %2263 = vmatmul.bf16.gmra.mxu2 %v6490_v11  ;;  %2601 = vmatmul.bf16.gmra.mxu0 %v9400_v24  ;;  %v1159_v24 = vsel %vm11033_vm14, %v1142_v3, %v1143_v62 }
 0x158   : > { %2690 = vmatmul.bf16.gmra.mxu1 %v6478_v60  ;;  %v1271_v16 = vsel %vm9604_vm2, %v1159_v24, 0.0  ;;  %vm11077_vm2 = vmmov %vm11033_vm14 }
 0x159   : > { %v1431_v38 = vpack.c.bf16 %v1271_v16, %v1271_v16  ;;  %v1145_v16 = vrot.slane %v9158_v31, 1 }
 0x15a   : > { %2512 = vmatmul.bf16.gmra.mxu3 %v9398_v2  ;;  %v2224_v30 = vpop.f32.mrf.mxu2 }
 0x15b   : > { %v2225_v2 = vadd.f32 %v2224_v30, %v9417_v22  ;;  %1463 = vst [vmem:[#allocation2 + $0x134] sm:$0xf] %v1431_v38  ;;  %v11075_v38 = vmov 0 }
 0x15c   : > { %v2564_v61 = vpop.f32.mrf.mxu0 }
 0x15d   : > { %v2473_v60 = vpop.f32.mrf.mxu3  ;;  %v2653_v18 = vpop.f32.mrf.mxu1 }
 0x15e   : > { %v2474_v45 = vadd.f32 %v2473_v60, %v2225_v2  ;;  %v359_v2 = vadd.s32 200, %v8776_v1 }
 0x160   : > { %v2563_v13 = vadd.f32 %v2562_v33, %v2474_v45  ;;  %v545_v60 = vand.u32 15, %v359_v2 }
 0x162   : > { %v9615_v22 = vadd.f32 %v2651_v55, %v2563_v13  ;;  %v2226_v30 = vpop.f32.mrf.mxu2  ;;  %v1144_v55 = vrot.slane %v9108_v7, 1  ;;  %vm9625_vm4 = vcmp.ne.s32.totalorder %v545_v60, 15  ;;  %v361_v60 = vadd.s32 216, %v8776_v1 }
 0x163   : > { %v2227_v21 = vadd.f32 %v2226_v30, %v9434_v51  ;;  %v11076_v38 = vsel %vm9625_vm4, 4294967295, %v11075_v38 }
 0x164   : > { %v2567_v24 = vpop.f32.mrf.mxu0  ;;  %v1157_v45 = vsel %vm11033_vm14, %v1144_v55, %v1145_v16 }
 0x165   : > { %v2475_v3 = vpop.f32.mrf.mxu3  ;;  %v2656_v9 = vpop.f32.mrf.mxu1  ;;  %v1273_v7 = vsel %vm9625_vm4, %v1157_v45, 0.0  ;;  %v7905_v45 = vld [vmem:[#allocation6 + $0x188] sm:$0xff]  ;;  %vm11083_vm4 = vmmov %vm11033_vm14 }
 0x166   : > { %v2476_v54 = vadd.f32 %v2475_v3, %v2227_v21  ;;  %3250 = vmatpush.bf16.msra.mxu2 %v7905_v45 }
 0x167   : > { %2268 = vmatmul.bf16.gmra.mxu2 %v6502_v15  ;;  %2606 = vmatmul.bf16.gmra.mxu0 %v8954_v29 }
 0x168   : > { %v2565_v33 = vadd.f32 %v2564_v61, %v2476_v54  ;;  %2695 = vmatmul.bf16.gmra.mxu1 %v6490_v11  ;;  %v1433_v61 = vpack.c.bf16 %v1273_v7, %v1273_v7 }
 0x16a   : > { %2517 = vmatmul.bf16.gmra.mxu3 %v8959_v32  ;;  %v9623_v51 = vadd.f32 %v2653_v18, %v2565_v33  ;;  %v2229_v10 = vpop.f32.mrf.mxu2  ;;  %v1158_v32 = vsel %vm11077_vm2, %v1143_v62, %v1144_v55  ;;  %1465 = vst [vmem:[#allocation2 + $0x14c] sm:$0xf] %v1433_v61  ;;  %v6514_v62 = vor.u32 %v7792_v35, %v6513_v23 }
 0x16b   : > { %v2230_v29 = vadd.f32 %v2229_v10, %v9438_v19  ;;  %v1432_v11 = vpack.c.bf16 %v1158_v32, %v1158_v32  ;;  %v11078_v10 = vld [vmem:[#allocation22_spill] sm:$0xff] }
 0x16c   : > { %v2569_v31 = vpop.f32.mrf.mxu0 }
 0x16d   : > { %v2478_v54 = vpop.f32.mrf.mxu3  ;;  %v2658_v59 = vpop.f32.mrf.mxu1  ;;  %1464 = vst [vmem:[#allocation2 + $0x140] sm:$0xf] %v1432_v11 }
 0x16e   : > { %v2479_v18 = vadd.f32 %v2478_v54, %v2230_v29  ;;  %v559_v29 = vand.u32 15, %v361_v60  ;;  %v11079_v54 = vld [vmem:[#allocation27_spill] sm:$0xff]  ;;  %v6525_v60 = vld [vmem:[#allocation2 + $0x128] sm:$0xf] }
 0x16f   : > { %v1146_v32 = vrot.slane %v11079_v54, 1 }
 0x170   : > { %v2568_v13 = vadd.f32 %v2567_v24, %v2479_v18  ;;  %vm9646_vm2 = vcmp.ne.s32.totalorder %v559_v29, 15  ;;  %v11081_v18 = vmov 0 }
 0x171   : > { %v11082_v18 = vsel %vm9646_vm2, 4294967295, %v11081_v18 }
 0x172   : > { %v9636_v30 = vadd.f32 %v2656_v9, %v2568_v13  ;;  %v2231_v19 = vpop.f32.mrf.mxu2  ;;  %v7913_v9 = vld [vmem:[#allocation6 + $0x1c8] sm:$0xff]  ;;  %v1156_v13 = vsel %vm11083_vm4, %v1145_v16, %v1146_v32 }
 0x173   : > { %v2232_v21 = vadd.f32 %v2231_v19, %v9457_v12  ;;  %v11080_v12 = vld [vmem:[#allocation32_spill] sm:$0xff]  ;;  %3339 = vmatpush.bf16.msra.mxu3 %v7913_v9  ;;  %v1434_v35 = vpack.c.bf16 %v1156_v13, %v1156_v13 }
 0x174   : > { %v2572_v2 = vpop.f32.mrf.mxu0  ;;  %v1147_v7 = vrot.slane %v11080_v12, 1  ;;  %v363_v12 = vadd.s32 232, %v8776_v1 }
 0x175   : > { %v2480_v3 = vpop.f32.mrf.mxu3  ;;  %v2661_v24 = vpop.f32.mrf.mxu1  ;;  %1466 = vst [vmem:[#allocation2 + $0x158] sm:$0xf] %v1434_v35 }
 0x176   : > { %v2481_v33 = vadd.f32 %v2480_v3, %v2232_v21  ;;  %v7921_v3 = vld [vmem:[#allocation6 + $0x208] sm:$0xff] }
 0x177   : > { %2273 = vmatmul.bf16.gmra.mxu2 %v6514_v62  ;;  %2611 = vmatmul.bf16.gmra.mxu0 %v9064_v46  ;;  %v1155_v46 = vsel %vm11033_vm14, %v1146_v32, %v1147_v7 }
 0x178   : > { %v2570_v55 = vadd.f32 %v2569_v31, %v2481_v33  ;;  %2700 = vmatmul.bf16.gmra.mxu1 %v6502_v15  ;;  %3428 = vmatpush.bf16.msra.mxu0 %v7921_v3 }
 0x17a   : > { %2522 = vmatmul.bf16.gmra.mxu3 %v11078_v10  ;;  %v9644_v11 = vadd.f32 %v2658_v59, %v2570_v55  ;;  %v2234_v61 = vpop.f32.mrf.mxu2  ;;  %v1275_v59 = vsel %vm9646_vm2, %v1155_v46, 0.0  ;;  %v7795_v55 = vld [vmem:[#allocation2 + $0x130] sm:$0xf0]  ;;  %vm11088_vm2 = vmmov %vm11033_vm14 }
 0x17b   : > { %v2235_v15 = vadd.f32 %v2234_v61, %v9461_v28  ;;  %v1435_v19 = vpack.c.bf16 %v1275_v59, %v1275_v59  ;;  %v6526_v29 = vor.u32 %v7795_v55, %v6525_v60  ;;  %v11084_v61 = vld [vmem:[#allocation26_spill] sm:$0xff]  ;;  %v11085_v46 = vld [vmem:[#allocation25_spill] sm:$0xff]  ;;  %v11086_v59 = vmov 0 }
 0x17c   : > { %v2574_v23 = vpop.f32.mrf.mxu0 }
 0x17d   : > { %v2483_v31 = vpop.f32.mrf.mxu3  ;;  %1467 = vst [vmem:[#allocation2 + $0x164] sm:$0xf] %v1435_v19  ;;  %v2663_v45 = vpop.f32.mrf.mxu1 }
 0x17e   : > { %v2484_v21 = vadd.f32 %v2483_v31, %v2235_v15  ;;  %v573_v15 = vand.u32 15, %v363_v12  ;;  %v1149_v31 = vrot.slane %v9300_v63, 1 }
 0x180   : > { %v2573_v33 = vadd.f32 %v2572_v2, %v2484_v21  ;;  %vm9667_vm4 = vcmp.ne.s32.totalorder %v573_v15, 15  ;;  %v11089_v15 = vld [vmem:[#allocation31_spill] sm:$0xff] }
 0x181   : > { %v11087_v59 = vsel %vm9667_vm4, 4294967295, %v11086_v59 }
 0x182   : > { %v9657_v10 = vadd.f32 %v2661_v24, %v2573_v33  ;;  %v2236_v28 = vpop.f32.mrf.mxu2  ;;  %v1148_v24 = vrot.slane %v9238_v47, 1 }
 0x183   : > { %v2237_v16 = vadd.f32 %v2236_v28, %v9480_v4  ;;  %v6537_v28 = vld [vmem:[#allocation2 + $0x140] sm:$0xf] }
 0x184   : > { %v2577_v54 = vpop.f32.mrf.mxu0  ;;  %v1153_v35 = vsel %vm11033_vm14, %v1148_v24, %v1149_v31 }
 0x185   : > { %v2485_v9 = vpop.f32.mrf.mxu3  ;;  %v1277_v47 = vsel %vm9667_vm4, %v1153_v35, 0.0  ;;  %v2666_v21 = vpop.f32.mrf.mxu1  ;;  %v7912_v35 = vld [vmem:[#allocation6 + $0x1c0] sm:$0xff]  ;;  %vm11095_vm4 = vmmov %vm11033_vm14 }
 0x186   : > { %v2486_v32 = vadd.f32 %v2485_v9, %v2237_v16  ;;  %v1437_v33 = vpack.c.bf16 %v1277_v47, %v1277_v47  ;;  %3340 = vmatpush.bf16.msra.mxu3 %v7912_v35 }
 0x187   : > { %2278 = vmatmul.bf16.gmra.mxu2 %v6526_v29  ;;  %2616 = vmatmul.bf16.gmra.mxu0 %v11084_v61 }
 0x188   : > { %v2575_v2 = vadd.f32 %v2574_v23, %v2486_v32  ;;  %2705 = vmatmul.bf16.gmra.mxu1 %v6514_v62  ;;  %v1154_v62 = vsel %vm11088_vm2, %v1147_v7, %v1148_v24  ;;  %1469 = vst [vmem:[#allocation2 + $0x17c] sm:$0xf] %v1437_v33 }
 0x189   : > { %v1436_v3 = vpack.c.bf16 %v1154_v62, %v1154_v62 }
 0x18a   : > { %2527 = vmatmul.bf16.gmra.mxu3 %v11085_v46  ;;  %v9665_v13 = vadd.f32 %v2663_v45, %v2575_v2  ;;  %v2239_v4 = vpop.f32.mrf.mxu2  ;;  %v7798_v45 = vld [vmem:[#allocation2 + $0x148] sm:$0xf0]  ;;  %v365_v46 = vadd.s32 248, %v8776_v1 }
 0x18b   : > { %v2240_v23 = vadd.f32 %v2239_v4, %v9484_v41  ;;  %1468 = vst [vmem:[#allocation2 + $0x170] sm:$0xf] %v1436_v3  ;;  %v6538_v7 = vor.u32 %v7798_v45, %v6537_v28  ;;  %v7904_v4 = vld [vmem:[#allocation6 + $0x180] sm:$0xff] }
 0x18c   : > { %v2579_v63 = vpop.f32.mrf.mxu0  ;;  %3251 = vmatpush.bf16.msra.mxu2 %v7904_v4  ;;  %v11096_v4 = vld [vmem:[#allocation36_spill] sm:$0xff] }
 0x18d   : > { %v2488_v19 = vpop.f32.mrf.mxu3  ;;  %v2668_v2 = vpop.f32.mrf.mxu1 }
 0x18e   : > { %v2489_v60 = vadd.f32 %v2488_v19, %v2240_v23  ;;  %v587_v23 = vand.u32 15, %v365_v46  ;;  %v1150_v19 = vrot.slane %v8825_v36, 1 }
 0x190   : > { %v2578_v55 = vadd.f32 %v2577_v54, %v2489_v60  ;;  %v11090_v54 = vld [vmem:[#allocation30_spill] sm:$0xff]  ;;  %vm9687_vm2 = vcmp.ne.s32.totalorder %v587_v23, 15  ;;  %v1152_v36 = vsel %vm11095_vm4, %v1149_v31, %v1150_v19  ;;  %v11097_v23 = vld [vmem:[#allocation35_spill] sm:$0xff]  ;;  %vm11102_vm4 = vcmp.lt.s32.totalorder %v8776_v1, 1 }
 0x191   : > { %v1438_v28 = vpack.c.bf16 %v1152_v36, %v1152_v36 }
 0x192   : > { %v9678_v16 = vadd.f32 %v2666_v21, %v2578_v55  ;;  %v2241_v41 = vpop.f32.mrf.mxu2  ;;  %v11093_v21 = vld [vmem:[#allocation15_spill] sm:$0xff] }
 0x193   : > { %v2242_v9 = vadd.f32 %v2241_v41, %v9503_v25  ;;  %v11094_v3 = vrot.slane %v11093_v21, 1  ;;  %1470 = vst [vmem:[#allocation2 + $0x188] sm:$0xf] %v1438_v28 }
 0x194   : > { %v2582_v12 = vpop.f32.mrf.mxu0 }
 0x195   : > { %v2490_v32 = vpop.f32.mrf.mxu3 }
 0x196   : > { %v2491_v61 = vadd.f32 %v2490_v32, %v2242_v9  ;;  %v7920_v9 = vld [vmem:[#allocation6 + $0x200] sm:$0xff] }
 0x197   : > { %2283 = vmatmul.bf16.gmra.mxu2 %v6538_v7  ;;  %2621 = vmatmul.bf16.gmra.mxu0 %v11089_v15 }
 0x198   : > { %v2580_v24 = vadd.f32 %v2579_v63, %v2491_v61  ;;  %2710 = vmatmul.bf16.gmra.mxu1 %v6526_v29  ;;  %v1183_v63 = vsel %vm11033_vm14, %v1150_v19, %v11094_v3  ;;  %3429 = vmatpush.bf16.msra.mxu0 %v7920_v9  ;;  %v6549_v61 = vld [vmem:[#allocation2 + $0x158] sm:$0xf] }
 0x199   : > { %v1279_v60 = vsel %vm9687_vm2, %v1183_v63, 0.0 }
 0x19a   : > { %2532 = vmatmul.bf16.gmra.mxu3 %v11090_v54  ;;  %v9685_v25 = vadd.f32 %v2668_v2, %v2580_v24  ;;  %v2244_v62 = vpop.f32.mrf.mxu2  ;;  %v1439_v45 = vpack.c.bf16 %v1279_v60, %v1279_v60  ;;  %v7801_v2 = vld [vmem:[#allocation2 + $0x160] sm:$0xf0] }
 0x19b   : > { %v2245_v29 = vadd.f32 %v2244_v62, %v9507_v27  ;;  %v6550_v31 = vor.u32 %v7801_v2, %v6549_v61 }
 0x19c   : > { %v2584_v55 = vpop.f32.mrf.mxu0  ;;  %1471 = vst [vmem:[#allocation2 + $0x194] sm:$0xf] %v1439_v45 }
 0x19d   : > { %v2493_v33 = vpop.f32.mrf.mxu3 }
 0x19e   : > { %v2494_v41 = vadd.f32 %v2493_v33, %v2245_v29  ;;  %v7804_v29 = vld [vmem:[#allocation2 + $0x178] sm:$0xf0] }
 0x1a0   : > { %v9700_v32 = vadd.f32 %v2582_v12, %v2494_v41  ;;  %v11098_v41 = vld [vmem:[#allocation40_spill] sm:$0xff] }
 0x1a2   : > { %v2246_v27 = vpop.f32.mrf.mxu2 }
 0x1a3   : > { %v2247_v46 = vadd.f32 %v2246_v27, %v9526_v17  ;;  %v6561_v17 = vld [vmem:[#allocation2 + $0x170] sm:$0xf] }
 0x1a4   : > { %v2587_v24 = vpop.f32.mrf.mxu0  ;;  %v6562_v28 = vor.u32 %v7804_v29, %v6561_v17 }
 0x1a5   : > { %v2495_v15 = vpop.f32.mrf.mxu3 }
 0x1a6   : > { %v2496_v54 = vadd.f32 %v2495_v15, %v2247_v46 }
 0x1a7   : > { %2288 = vmatmul.bf16.gmra.mxu2 %v6550_v31  ;;  %2626 = vmatmul.bf16.gmra.mxu0 %v11096_v4 }
 0x1a8   : > { %v9704_v35 = vadd.f32 %v2584_v55, %v2496_v54  ;;  %2715 = vmatmul.bf16.gmra.mxu1 %v6538_v7 }
 0x1aa   : > { %2537 = vmatmul.bf16.gmra.mxu3 %v11097_v23  ;;  %v2249_v12 = vpop.f32.mrf.mxu2 }
 0x1ab   : > { %v2250_v19 = vadd.f32 %v2249_v12, %v9530_v14  ;;  %v11099_v14 = vld [vmem:[#allocation39_spill] sm:$0xff] }
 0x1ac   : > { %v2589_v21 = vpop.f32.mrf.mxu0 }
 0x1ad   : > { %v2498_v62 = vpop.f32.mrf.mxu3 }
 0x1ae   : > { %v2499_v3 = vadd.f32 %v2498_v62, %v2250_v19 }
 0x1b0   : > { %v9708_v63 = vadd.f32 %v2587_v24, %v2499_v3  ;;  %v7831_v24 = vld [vmem:[#allocation2 + $0x190] sm:$0xf0] }
 0x1b2   : > { %v2251_v33 = vpop.f32.mrf.mxu2 }
 0x1b3   : > { %v2252_v36 = vadd.f32 %v2251_v33, %v9549_v6  ;;  %v6573_v6 = vld [vmem:[#allocation2 + $0x188] sm:$0xf] }
 0x1b4   : > { %v2592_v55 = vpop.f32.mrf.mxu0  ;;  %v6574_v12 = vor.u32 %v7831_v24, %v6573_v6 }
 0x1b5   : > { %v2500_v60 = vpop.f32.mrf.mxu3 }
 0x1b6   : > { %v2501_v45 = vadd.f32 %v2500_v60, %v2252_v36 }
 0x1b7   : > { %2293 = vmatmul.bf16.gmra.mxu2 %v6562_v28  ;;  %2631 = vmatmul.bf16.gmra.mxu0 %v11098_v41  ;;  %v7858_v41 = vld [vmem:[#allocation2 + $0x40] sm:$0xf0] }
 0x1b8   : > { %v9712_v7 = vadd.f32 %v2589_v21, %v2501_v45  ;;  %2720 = vmatmul.bf16.gmra.mxu1 %v6550_v31  ;;  %v11100_v21 = vld [vmem:[#allocation43_spill] sm:$0xff]  ;;  %v6789_v45 = vld [vmem:[#allocation2 + $0x38] sm:$0xf] }
 0x1ba   : > { %2542 = vmatmul.bf16.gmra.mxu3 %v11099_v14  ;;  %v2254_v9 = vpop.f32.mrf.mxu2  ;;  %v7856_v14 = vld [vmem:[#allocation2 + $0x34] sm:$0xf] }
 0x1bb   : > { %v2255_v61 = vadd.f32 %v2254_v9, %v9553_v37  ;;  %v11101_v37 = vld [vmem:[#allocation42_spill] sm:$0xff]  ;;  %v6783_v9 = vld [vmem:[#allocation2 + $0x3c] sm:$0xf0] }
 0x1bc   : > { %v2594_v27 = vpop.f32.mrf.mxu0  ;;  %v6786_v24 = vor.u32 %v7856_v14, %v6783_v9 }
 0x1bd   : > { %v2503_v2 = vpop.f32.mrf.mxu3 }
 0x1be   : > { %v2504_v46 = vadd.f32 %v2503_v2, %v2255_v61 }
 0x1c0   : > { %v9716_v15 = vadd.f32 %v2592_v55, %v2504_v46  ;;  %v7857_v55 = vld [vmem:[#allocation2 + $0x38] sm:$0xf0] }
 0x1c2   : > { %v2256_v54 = vpop.f32.mrf.mxu2 }
 0x1c3   : > { %v2257_v4 = vadd.f32 %v2256_v54, %v9572_v49  ;;  %v6781_v49 = vld [vmem:[#allocation2 + $0x30] sm:$0xf] }
 0x1c4   : > { %v2597_v19 = vpop.f32.mrf.mxu0  ;;  %v6782_v46 = vor.u32 %v7857_v55, %v6781_v49 }
 0x1c5   : > { %v2505_v23 = vpop.f32.mrf.mxu3 }
 0x1c6   : > { %v2506_v62 = vadd.f32 %v2505_v23, %v2257_v4 }
 0x1c7   : > { %2298 = vmatmul.bf16.gmra.mxu2 %v6574_v12  ;;  %2636 = vmatmul.bf16.gmra.mxu0 %v11100_v21 }
 0x1c8   : > { %v9720_v31 = vadd.f32 %v2594_v27, %v2506_v62  ;;  %2725 = vmatmul.bf16.gmra.mxu1 %v6562_v28  ;;  %v6790_v28 = vor.u32 %v7858_v41, %v6789_v45 }
 0x1ca   : > { %2547 = vmatmul.bf16.gmra.mxu3 %v11101_v37  ;;  %v2259_v3 = vpop.f32.mrf.mxu2  ;;  %v7860_v37 = vld [vmem:[#allocation2 + $0x50] sm:$0xf0] }
 0x1cb   : > { %v2260_v17 = vadd.f32 %v2259_v3, %v9576_v56  ;;  %v6801_v3 = vld [vmem:[#allocation2 + $0x50] sm:$0xf] }
 0x1cc   : > { %v2599_v33 = vpop.f32.mrf.mxu0 }
 0x1cd   : > { %v2508_v29 = vpop.f32.mrf.mxu3 }
 0x1ce   : > { %v2509_v36 = vadd.f32 %v2508_v29, %v2260_v17  ;;  %v7861_v17 = vld [vmem:[#allocation2 + $0x58] sm:$0xf0]  ;;  %v7859_v29 = vld [vmem:[#allocation2 + $0x4c] sm:$0xf] }
 0x1cf   : > { %v6802_v41 = vor.u32 %v7861_v17, %v6801_v3 }
 0x1d0   : > { %v9724_v60 = vadd.f32 %v2597_v19, %v2509_v36  ;;  %v6795_v36 = vld [vmem:[#allocation2 + $0x54] sm:$0xf0] }
 0x1d1   : > { %v6798_v9 = vor.u32 %v7859_v29, %v6795_v36 }
 0x1d2   : > { %v2261_v61 = vpop.f32.mrf.mxu2 }
 0x1d3   : > { %v2262_v2 = vadd.f32 %v2261_v61, %v9595_v44  ;;  %v6793_v44 = vld [vmem:[#allocation2 + $0x48] sm:$0xf] }
 0x1d4   : > { %v2602_v6 = vpop.f32.mrf.mxu0  ;;  %v6794_v45 = vor.u32 %v7860_v37, %v6793_v44 }
 0x1d5   : > { %v2510_v27 = vpop.f32.mrf.mxu3 }
 0x1d6   : > { %v2511_v56 = vadd.f32 %v2510_v27, %v2262_v2 }
 0x1d7   : > { %3252 = vmatmul.bf16.vlgmr.msra.gmra.mxu2 %v6782_v46  ;;  %3430 = vmatmul.bf16.vlgmr.msra.gmra.mxu0 %v6790_v28 }
 0x1d8   : > { %v9727_v54 = vadd.f32 %v2599_v33, %v2511_v56  ;;  %v7863_v56 = vld [vmem:[#allocation2 + $0x68] sm:$0xf0] }
 0x1da   : > { %3341 = vmatmul.bf16.vlgmr.msra.gmra.mxu3 %v6786_v24  ;;  %v2264_v4 = vpop.f32.mrf.mxu2 }
 0x1db   : > { %v2265_v23 = vadd.f32 %v2264_v4, %v9432_v53  ;;  %v6813_v4 = vld [vmem:[#allocation2 + $0x68] sm:$0xf] }
 0x1dc   : > { %v2604_v19 = vpop.f32.mrf.mxu0 }
 0x1dd   : > { %v2513_v12 = vpop.f32.mrf.mxu3 }
 0x1de   : > { %v2514_v62 = vadd.f32 %v2513_v12, %v2265_v23  ;;  %v7864_v23 = vld [vmem:[#allocation2 + $0x70] sm:$0xf0]  ;;  %v7862_v12 = vld [vmem:[#allocation2 + $0x64] sm:$0xf] }
 0x1df   : > { %v6814_v17 = vor.u32 %v7864_v23, %v6813_v4 }
 0x1e0   : > { %v9730_v21 = vadd.f32 %v2602_v6, %v2514_v62  ;;  %v6807_v62 = vld [vmem:[#allocation2 + $0x6c] sm:$0xf0] }
 0x1e1   : > { %v6810_v36 = vor.u32 %v7862_v12, %v6807_v62 }
 0x1e2   : > { %v2266_v49 = vpop.f32.mrf.mxu2 }
 0x1e3   : > { %v2267_v55 = vadd.f32 %v2266_v49, %v9436_v5  ;;  %v6805_v5 = vld [vmem:[#allocation2 + $0x60] sm:$0xf] }
 0x1e4   : > { %v2607_v14 = vpop.f32.mrf.mxu0  ;;  %v6806_v3 = vor.u32 %v7863_v56, %v6805_v5 }
 0x1e5   : > { %v2515_v33 = vpop.f32.mrf.mxu3 }
 0x1e6   : > { %v2516_v53 = vadd.f32 %v2515_v33, %v2267_v55 }
 0x1e7   : > { %3257 = vmatmul.bf16.gmra.mxu2 %v6794_v45  ;;  %3435 = vmatmul.bf16.gmra.mxu0 %v6802_v41 }
 0x1e8   : > { %v9733_v61 = vadd.f32 %v2604_v19, %v2516_v53  ;;  %v7866_v53 = vld [vmem:[#allocation2 + $0x80] sm:$0xf0] }
 0x1ea   : > { %3346 = vmatmul.bf16.gmra.mxu3 %v6798_v9  ;;  %v2269_v2 = vpop.f32.mrf.mxu2 }
 0x1eb   : > { %v2270_v27 = vadd.f32 %v2269_v2, %v9455_v26  ;;  %v6825_v2 = vld [vmem:[#allocation2 + $0x80] sm:$0xf] }
 0x1ec   : > { %v2609_v28 = vpop.f32.mrf.mxu0 }
 0x1ed   : > { %v2518_v46 = vpop.f32.mrf.mxu3 }
 0x1ee   : > { %v2519_v6 = vadd.f32 %v2518_v46, %v2270_v27  ;;  %v7867_v27 = vld [vmem:[#allocation2 + $0x88] sm:$0xf0]  ;;  %v7865_v46 = vld [vmem:[#allocation2 + $0x7c] sm:$0xf] }
 0x1ef   : > { %v6826_v23 = vor.u32 %v7867_v27, %v6825_v2 }
 0x1f0   : > { %v9736_v24 = vadd.f32 %v2607_v14, %v2519_v6  ;;  %v6819_v6 = vld [vmem:[#allocation2 + $0x84] sm:$0xf0] }
 0x1f1   : > { %v6822_v62 = vor.u32 %v7865_v46, %v6819_v6 }
 0x1f2   : > { %v2271_v44 = vpop.f32.mrf.mxu2 }
 0x1f3   : > { %v2272_v37 = vadd.f32 %v2271_v44, %v9459_v52  ;;  %v6817_v52 = vld [vmem:[#allocation2 + $0x78] sm:$0xf] }
 0x1f4   : > { %v2612_v29 = vpop.f32.mrf.mxu0  ;;  %v6818_v4 = vor.u32 %v7866_v53, %v6817_v52 }
 0x1f5   : > { %v2520_v19 = vpop.f32.mrf.mxu3 }
 0x1f6   : > { %v2521_v26 = vadd.f32 %v2520_v19, %v2272_v37 }
 0x1f7   : > { %3262 = vmatmul.bf16.gmra.mxu2 %v6806_v3  ;;  %3440 = vmatmul.bf16.gmra.mxu0 %v6814_v17 }
 0x1f8   : > { %v9739_v49 = vadd.f32 %v2609_v28, %v2521_v26  ;;  %v7869_v26 = vld [vmem:[#allocation2 + $0x98] sm:$0xf0] }
 0x1fa   : > { %3351 = vmatmul.bf16.gmra.mxu3 %v6810_v36  ;;  %v2274_v55 = vpop.f32.mrf.mxu2 }
 0x1fb   : > { %v2275_v33 = vadd.f32 %v2274_v55, %v9478_v0  ;;  %v6837_v55 = vld [vmem:[#allocation2 + $0x98] sm:$0xf] }
 0x1fc   : > { %v2614_v41 = vpop.f32.mrf.mxu0 }
 0x1fd   : > { %v2523_v45 = vpop.f32.mrf.mxu3 }
 0x1fe   : > { %v2524_v14 = vadd.f32 %v2523_v45, %v2275_v33  ;;  %v7870_v33 = vld [vmem:[#allocation2 + $0xa0] sm:$0xf0]  ;;  %v7868_v45 = vld [vmem:[#allocation2 + $0x94] sm:$0xf] }
 0x1ff   : > { %v6838_v27 = vor.u32 %v7870_v33, %v6837_v55 }
 0x200   : > { %v9742_v9 = vadd.f32 %v2612_v29, %v2524_v14  ;;  %v6831_v14 = vld [vmem:[#allocation2 + $0x9c] sm:$0xf0] }
 0x201   : > { %v6834_v6 = vor.u32 %v7868_v45, %v6831_v14 }
 0x202   : > { %v2276_v5 = vpop.f32.mrf.mxu2 }
 0x203   : > { %v2277_v56 = vadd.f32 %v2276_v5, %v9482_v42  ;;  %v6829_v42 = vld [vmem:[#allocation2 + $0x90] sm:$0xf] }
 0x204   : > { %v2617_v12 = vpop.f32.mrf.mxu0  ;;  %v6830_v2 = vor.u32 %v7869_v26, %v6829_v42 }
 0x205   : > { %v2525_v28 = vpop.f32.mrf.mxu3 }
 0x206   : > { %v2526_v0 = vadd.f32 %v2525_v28, %v2277_v56 }
 0x207   : > { %3267 = vmatmul.bf16.gmra.mxu2 %v6818_v4  ;;  %3445 = vmatmul.bf16.gmra.mxu0 %v6826_v23 }
 0x208   : > { %v9745_v44 = vadd.f32 %v2614_v41, %v2526_v0  ;;  %v7872_v0 = vld [vmem:[#allocation2 + $0xb0] sm:$0xf0] }
 0x20a   : > { %3356 = vmatmul.bf16.gmra.mxu3 %v6822_v62  ;;  %v2279_v37 = vpop.f32.mrf.mxu2 }
 0x20b   : > { %v2280_v19 = vadd.f32 %v2279_v37, %v9501_v34  ;;  %v6849_v37 = vld [vmem:[#allocation2 + $0xb0] sm:$0xf] }
 0x20c   : > { %v2619_v17 = vpop.f32.mrf.mxu0 }
 0x20d   : > { %v2528_v3 = vpop.f32.mrf.mxu3 }
 0x20e   : > { %v2529_v29 = vadd.f32 %v2528_v3, %v2280_v19  ;;  %v7873_v19 = vld [vmem:[#allocation2 + $0xb8] sm:$0xf0]  ;;  %v7871_v3 = vld [vmem:[#allocation2 + $0xac] sm:$0xf] }
 0x20f   : > { %v6850_v33 = vor.u32 %v7873_v19, %v6849_v37 }
 0x210   : > { %v9748_v36 = vadd.f32 %v2617_v12, %v2529_v29  ;;  %v6843_v29 = vld [vmem:[#allocation2 + $0xb4] sm:$0xf0] }
 0x211   : > { %v6846_v14 = vor.u32 %v7871_v3, %v6843_v29 }
 0x212   : > { %v2281_v52 = vpop.f32.mrf.mxu2 }
 0x213   : > { %v2282_v53 = vadd.f32 %v2281_v52, %v9505_v40  ;;  %v6841_v40 = vld [vmem:[#allocation2 + $0xa8] sm:$0xf] }
 0x214   : > { %v2622_v46 = vpop.f32.mrf.mxu0  ;;  %v6842_v55 = vor.u32 %v7872_v0, %v6841_v40 }
 0x215   : > { %v2530_v41 = vpop.f32.mrf.mxu3 }
 0x216   : > { %v2531_v34 = vadd.f32 %v2530_v41, %v2282_v53 }
 0x217   : > { %3272 = vmatmul.bf16.gmra.mxu2 %v6830_v2  ;;  %3450 = vmatmul.bf16.gmra.mxu0 %v6838_v27 }
 0x218   : > { %v9751_v5 = vadd.f32 %v2619_v17, %v2531_v34  ;;  %v7875_v34 = vld [vmem:[#allocation2 + $0xc8] sm:$0xf0] }
 0x21a   : > { %3361 = vmatmul.bf16.gmra.mxu3 %v6834_v6  ;;  %v2284_v56 = vpop.f32.mrf.mxu2 }
 0x21b   : > { %v2285_v28 = vadd.f32 %v2284_v56, %v9524_v48  ;;  %v6861_v56 = vld [vmem:[#allocation2 + $0xc8] sm:$0xf] }
 0x21c   : > { %v2624_v23 = vpop.f32.mrf.mxu0 }
 0x21d   : > { %v2533_v4 = vpop.f32.mrf.mxu3 }
 0x21e   : > { %v2534_v12 = vadd.f32 %v2533_v4, %v2285_v28  ;;  %v7876_v28 = vld [vmem:[#allocation2 + $0xd0] sm:$0xf0]  ;;  %v7874_v4 = vld [vmem:[#allocation2 + $0xc4] sm:$0xf] }
 0x21f   : > { %v6862_v19 = vor.u32 %v7876_v28, %v6861_v56 }
 0x220   : > { %v9754_v62 = vadd.f32 %v2622_v46, %v2534_v12  ;;  %v6855_v12 = vld [vmem:[#allocation2 + $0xcc] sm:$0xf0] }
 0x221   : > { %v6858_v29 = vor.u32 %v7874_v4, %v6855_v12 }
 0x222   : > { %v2286_v42 = vpop.f32.mrf.mxu2 }
 0x223   : > { %v2287_v26 = vadd.f32 %v2286_v42, %v9528_v58  ;;  %v6853_v58 = vld [vmem:[#allocation2 + $0xc0] sm:$0xf] }
 0x224   : > { %v2627_v45 = vpop.f32.mrf.mxu0  ;;  %v6854_v37 = vor.u32 %v7875_v34, %v6853_v58 }
 0x225   : > { %v2535_v17 = vpop.f32.mrf.mxu3 }
 0x226   : > { %v2536_v48 = vadd.f32 %v2535_v17, %v2287_v26 }
 0x227   : > { %3277 = vmatmul.bf16.gmra.mxu2 %v6842_v55  ;;  %3455 = vmatmul.bf16.gmra.mxu0 %v6850_v33 }
 0x228   : > { %v9757_v52 = vadd.f32 %v2624_v23, %v2536_v48  ;;  %v7878_v48 = vld [vmem:[#allocation2 + $0xe0] sm:$0xf0] }
 0x22a   : > { %3366 = vmatmul.bf16.gmra.mxu3 %v6846_v14  ;;  %v2289_v53 = vpop.f32.mrf.mxu2 }
 0x22b   : > { %v2290_v41 = vadd.f32 %v2289_v53, %v9547_v43  ;;  %v6873_v53 = vld [vmem:[#allocation2 + $0xe0] sm:$0xf] }
 0x22c   : > { %v2629_v27 = vpop.f32.mrf.mxu0 }
 0x22d   : > { %v2538_v2 = vpop.f32.mrf.mxu3 }
 0x22e   : > { %v2539_v46 = vadd.f32 %v2538_v2, %v2290_v41  ;;  %v7879_v41 = vld [vmem:[#allocation2 + $0xe8] sm:$0xf0]  ;;  %v7877_v2 = vld [vmem:[#allocation2 + $0xdc] sm:$0xf] }
 0x22f   : > { %v6874_v28 = vor.u32 %v7879_v41, %v6873_v53 }
 0x230   : > { %v9760_v6 = vadd.f32 %v2627_v45, %v2539_v46  ;;  %v6867_v46 = vld [vmem:[#allocation2 + $0xe4] sm:$0xf0] }
 0x231   : > { %v6870_v12 = vor.u32 %v7877_v2, %v6867_v46 }
 0x232   : > { %v2291_v40 = vpop.f32.mrf.mxu2 }
 0x233   : > { %v2292_v0 = vadd.f32 %v2291_v40, %v9551_v8  ;;  %v6865_v8 = vld [vmem:[#allocation2 + $0xd8] sm:$0xf] }
 0x234   : > { %v2632_v3 = vpop.f32.mrf.mxu0  ;;  %v6866_v56 = vor.u32 %v7878_v48, %v6865_v8 }
 0x235   : > { %v2540_v23 = vpop.f32.mrf.mxu3 }
 0x236   : > { %v2541_v43 = vadd.f32 %v2540_v23, %v2292_v0 }
 0x237   : > { %3282 = vmatmul.bf16.gmra.mxu2 %v6854_v37  ;;  %3460 = vmatmul.bf16.gmra.mxu0 %v6862_v19 }
 0x238   : > { %v9763_v42 = vadd.f32 %v2629_v27, %v2541_v43  ;;  %v7881_v43 = vld [vmem:[#allocation2 + $0xf8] sm:$0xf0] }
 0x23a   : > { %3371 = vmatmul.bf16.gmra.mxu3 %v6858_v29  ;;  %v2294_v26 = vpop.f32.mrf.mxu2 }
 0x23b   : > { %v2295_v17 = vadd.f32 %v2294_v26, %v9570_v39  ;;  %v6885_v26 = vld [vmem:[#allocation2 + $0xf8] sm:$0xf] }
 0x23c   : > { %v2634_v33 = vpop.f32.mrf.mxu0 }
 0x23d   : > { %v2543_v55 = vpop.f32.mrf.mxu3 }
 0x23e   : > { %v2544_v45 = vadd.f32 %v2543_v55, %v2295_v17  ;;  %v7882_v17 = vld [vmem:[#allocation2 + $0x100] sm:$0xf0]  ;;  %v7880_v55 = vld [vmem:[#allocation2 + $0xf4] sm:$0xf] }
 0x23f   : > { %v6886_v41 = vor.u32 %v7882_v17, %v6885_v26 }
 0x240   : > { %v9766_v14 = vadd.f32 %v2632_v3, %v2544_v45  ;;  %v6879_v45 = vld [vmem:[#allocation2 + $0xfc] sm:$0xf0] }
 0x241   : > { %v6882_v46 = vor.u32 %v7880_v55, %v6879_v45 }
 0x242   : > { %v2296_v58 = vpop.f32.mrf.mxu2 }
 0x243   : > { %v2297_v34 = vadd.f32 %v2296_v58, %v9574_v50  ;;  %v6877_v50 = vld [vmem:[#allocation2 + $0xf0] sm:$0xf] }
 0x244   : > { %v2637_v4 = vpop.f32.mrf.mxu0  ;;  %v6878_v53 = vor.u32 %v7881_v43, %v6877_v50  ;;  %v6891_v50 = vld [vmem:[#allocation2 + $0x114] sm:$0xf0] }
 0x245   : > { %v2545_v27 = vpop.f32.mrf.mxu3 }
 0x246   : > { %v2546_v39 = vadd.f32 %v2545_v27, %v2297_v34 }
 0x247   : > { %3287 = vmatmul.bf16.gmra.mxu2 %v6866_v56  ;;  %3465 = vmatmul.bf16.gmra.mxu0 %v6874_v28 }
 0x248   : > { %v9769_v40 = vadd.f32 %v2634_v33, %v2546_v39  ;;  %v6889_v39 = vld [vmem:[#allocation2 + $0x108] sm:$0xf] }
 0x24a   : > { %3376 = vmatmul.bf16.gmra.mxu3 %v6870_v12  ;;  %v2299_v0 = vpop.f32.mrf.mxu2 }
 0x24b   : > { %v2300_v23 = vadd.f32 %v2299_v0, %v9593_v57 }
 0x24c   : > { %v2639_v19 = vpop.f32.mrf.mxu0 }
 0x24d   : > { %v2548_v37 = vpop.f32.mrf.mxu3 }
 0x24e   : > { %v2549_v3 = vadd.f32 %v2548_v37, %v2300_v23  ;;  %v7884_v23 = vld [vmem:[#allocation2 + $0x110] sm:$0xf0]  ;;  %v6897_v37 = vld [vmem:[#allocation2 + $0x110] sm:$0xf] }
 0x24f   : > { %v6890_v55 = vor.u32 %v7884_v23, %v6889_v39 }
 0x250   : > { %v9772_v29 = vadd.f32 %v2637_v4, %v2549_v3  ;;  %v8010_v4 = vld [vmem:[#allocation8 + $0xf8] sm:$0xff] }
 0x251   : > { %4560 = vmatpush.bf16.msra.mxu1 %v8010_v4  ;;  %v7883_v3 = vld [vmem:[#allocation2 + $0x10c] sm:$0xf] }
 0x252   : > { %v2301_v8 = vpop.f32.mrf.mxu2 }
 0x253   : > { %v2302_v48 = vadd.f32 %v2301_v8, %v9597_v20  ;;  %v9780_v20 = vld [vmem:[%s10853_s5] ss:$0 sm:$0xff] }
 0x254   : > { %v3431_v2 = vpop.f32.mrf.mxu0 }
 0x255   : > { %v2550_v33 = vpop.f32.mrf.mxu3 }
 0x256   : > { %v2551_v57 = vadd.f32 %v2550_v33, %v2302_v48 }
 0x257   : > { %3292 = vmatmul.bf16.gmra.mxu2 %v6878_v53  ;;  %3470 = vmatmul.bf16.gmra.mxu0 %v6886_v41  ;;  %v6894_v53 = vor.u32 %v7883_v3, %v6891_v50  ;;  %v6901_v3 = vld [vmem:[#allocation2 + $0x120] sm:$0xf] }
 0x258   : > { %v9775_v58 = vadd.f32 %v2639_v19, %v2551_v57  ;;  %v7885_v19 = vld [vmem:[#allocation2 + $0x118] sm:$0xf0] }
 0x259   : > { %v6898_v45 = vor.u32 %v7885_v19, %v6897_v37 }
 0x25a   : > { %3381 = vmatmul.bf16.gmra.mxu3 %v6882_v46  ;;  %v3253_v34 = vpop.f32.mrf.mxu2 }
 0x25c   : > { %v3433_v28 = vpop.f32.mrf.mxu0 }
 0x25d   : > { %v3342_v27 = vpop.f32.mrf.mxu3 }
 0x25e   : > { %v3343_v56 = vadd.f32 %v3342_v27, %v3253_v34  ;;  %v9790_v27 = vpop.f32.mrf.mxu1 }
 0x260   : > { %v3432_v12 = vadd.f32 %v3431_v2, %v3343_v56 }
 0x262   : > { %v3511_v0 = vadd.f32 %v3432_v12, %v9615_v22  ;;  %v3255_v26 = vpop.f32.mrf.mxu2 }
 0x264   : > { %v3547_v43 = vadd.f32 %v9780_v20, %v3511_v0  ;;  %v3436_v33 = vpop.f32.mrf.mxu0 }
 0x265   : > { %v3344_v17 = vpop.f32.mrf.mxu3 }
 0x266   : > { %v9784_v8 = vmax.f32 %v3547_v43, 0.0  ;;  %v3345_v48 = vadd.f32 %v3344_v17, %v3255_v26  ;;  %v6909_v17 = vld [vmem:[#allocation2 + $0x128] sm:$0xf] }
 0x267   : > { %3297 = vmatmul.bf16.gmra.mxu2 %v6890_v55  ;;  %3475 = vmatmul.bf16.gmra.mxu0 %v6898_v45  ;;  %v7888_v55 = vld [vmem:[#allocation2 + $0x130] sm:$0xf0] }
 0x268   : > { %v3867_v41 = vpack.c.bf16 %v9784_v8, %v9784_v8  ;;  %v3434_v22 = vadd.f32 %v3433_v28, %v3345_v48  ;;  %v10930_v39 = vrot.slane %v9784_v8, 7  ;;  %v10929_v0 = vrot.slane %v9784_v8, 1 }
 0x26a   : > { %3899 = vst [vmem:[#allocation2 + $0x1c] sm:$0xf] %v3867_v41  ;;  %v3512_v2 = vadd.f32 %v3434_v22, %v9623_v51  ;;  %3386 = vmatmul.bf16.gmra.mxu3 %v6894_v53  ;;  %v3258_v57 = vpop.f32.mrf.mxu2  ;;  %v7887_v51 = vld [vmem:[#allocation2 + $0x128] sm:$0xf0]  ;;  %v6903_v53 = vld [vmem:[#allocation2 + $0x12c] sm:$0xf0] }
 0x26c   : > { %v3548_v46 = vadd.f32 %v9780_v20, %v3512_v2  ;;  %v3438_v12 = vpop.f32.mrf.mxu0 }
 0x26d   : > { %v3347_v34 = vpop.f32.mrf.mxu3 }
 0x26e   : > { %v3580_v56 = vmax.f32 %v3548_v46, 0.0  ;;  %v3348_v4 = vadd.f32 %v3347_v34, %v3258_v57  ;;  %v6902_v46 = vor.u32 %v7887_v51, %v6901_v3  ;;  %v6910_v57 = vor.u32 %v7888_v55, %v6909_v17  ;;  %v6921_v17 = vld [vmem:[#allocation2 + $0x140] sm:$0xf] }
 0x270   : > { %v3612_v28 = vrot.slane %v3580_v56, 7  ;;  %v3708_v23 = vrot.slane %v3580_v56, 1  ;;  %v3868_v37 = vpack.c.bf16 %v3580_v56, %v3580_v56  ;;  %v3437_v19 = vadd.f32 %v3436_v33, %v3348_v4  ;;  %v7886_v33 = vld [vmem:[#allocation2 + $0x124] sm:$0xf] }
 0x272   : > { %v3673_v50 = vsel %vm11102_vm4, %v10930_v39, %v3612_v28  ;;  %v3769_v43 = vsel %vm11033_vm14, %v10929_v0, %v3708_v23  ;;  %3900 = vst [vmem:[#allocation2 + $0x28] sm:$0xf] %v3868_v37  ;;  %v3513_v26 = vadd.f32 %v3437_v19, %v9636_v30  ;;  %v3260_v22 = vpop.f32.mrf.mxu2  ;;  %v6906_v37 = vor.u32 %v7886_v33, %v6903_v53  ;;  %v9804_v0 = vpop.f32.mrf.mxu1 }
 0x273   : > { %v3804_v45 = vpack.c.bf16 %v3673_v50, %v3673_v50  ;;  %v3931_v48 = vpack.c.bf16 %v3769_v43, %v3769_v43 }
 0x274   : > { %v3549_v41 = vadd.f32 %v9780_v20, %v3513_v26  ;;  %v3441_v4 = vpop.f32.mrf.mxu0 }
 0x275   : > { %3836 = vst [vmem:[#allocation2 + $0x24] sm:$0xf] %v3804_v45  ;;  %v3349_v2 = vpop.f32.mrf.mxu3 }
 0x276   : > { %3963 = vst [vmem:[#allocation2 + $0x20] sm:$0xf] %v3931_v48  ;;  %v3581_v34 = vmax.f32 %v3549_v41, 0.0  ;;  %v3350_v56 = vadd.f32 %v3349_v2, %v3260_v22 }
 0x277   : > { %3302 = vmatmul.bf16.gmra.mxu2 %v6902_v46  ;;  %3480 = vmatmul.bf16.gmra.mxu0 %v6910_v57  ;;  %v8009_v46 = vld [vmem:[#allocation8 + $0xf0] sm:$0xff] }
 0x278   : > { %v3613_v30 = vrot.slane %v3581_v34, 7  ;;  %v3709_v19 = vrot.slane %v3581_v34, 1  ;;  %v3869_v50 = vpack.c.bf16 %v3581_v34, %v3581_v34  ;;  %v3439_v43 = vadd.f32 %v3438_v12, %v3350_v56  ;;  %4561 = vmatpush.bf16.msra.mxu1 %v8009_v46 }
 0x27a   : > { %v3672_v26 = vsel %vm11102_vm4, %v3612_v28, %v3613_v30  ;;  %v3768_v3 = vsel %vm11033_vm14, %v3708_v23, %v3709_v19  ;;  %3901 = vst [vmem:[#allocation2 + $0x34] sm:$0xf] %v3869_v50  ;;  %v3514_v51 = vadd.f32 %v3439_v43, %v9644_v11  ;;  %3391 = vmatmul.bf16.gmra.mxu3 %v6906_v37  ;;  %v3263_v41 = vpop.f32.mrf.mxu2  ;;  %v6913_v37 = vld [vmem:[#allocation2 + $0x138] sm:$0xf]  ;;  %v7890_v50 = vld [vmem:[#allocation2 + $0x140] sm:$0xf0]  ;;  %v9816_v43 = vpop.f32.mrf.mxu1 }
 0x27b   : > { %v3677_v55 = vsel %vm8835_vm3, %v3672_v26, 0.0  ;;  %v3772_v48 = vsel %vm9360_vm0, %v3768_v3, 0.0  ;;  %vm11105_vm0 = vmmov %vm11102_vm4 }
 0x27c   : > { %v3805_v33 = vpack.c.bf16 %v3677_v55, %v3677_v55  ;;  %v3932_v12 = vpack.c.bf16 %v3772_v48, %v3772_v48  ;;  %v3550_v53 = vadd.f32 %v9780_v20, %v3514_v51  ;;  %v3443_v23 = vpop.f32.mrf.mxu0  ;;  %vm11106_vm3 = vmmov %vm11033_vm14  ;;  %v7891_v55 = vld [vmem:[#allocation2 + $0x148] sm:$0xf0] }
 0x27d   : > { %v3352_v22 = vpop.f32.mrf.mxu3  ;;  %vm11107_vm4 = vmmov %vm11105_vm0 }
 0x27e   : > { %3837 = vst [vmem:[#allocation2 + $0x30] sm:$0xf] %v3805_v33  ;;  %v3582_v28 = vmax.f32 %v3550_v53, 0.0  ;;  %v3353_v2 = vadd.f32 %v3352_v22, %v3263_v41  ;;  %v7889_v33 = vld [vmem:[#allocation2 + $0x13c] sm:$0xf]  ;;  %v6914_v22 = vor.u32 %v7890_v50, %v6913_v37  ;;  %vm11108_vm14 = vmmov %vm11106_vm3 }
 0x27f   : > { %3964 = vst [vmem:[#allocation2 + $0x2c] sm:$0xf] %v3932_v12 }
 0x280   : > { %v3614_v11 = vrot.slane %v3582_v28, 7  ;;  %v3710_v57 = vrot.slane %v3582_v28, 1  ;;  %v3870_v34 = vpack.c.bf16 %v3582_v28, %v3582_v28  ;;  %v3442_v56 = vadd.f32 %v3441_v4, %v3353_v2  ;;  %v6915_v4 = vld [vmem:[#allocation2 + $0x144] sm:$0xf0] }
 0x281   : > { %v6922_v28 = vor.u32 %v7891_v55, %v6921_v17  ;;  %v6918_v46 = vor.u32 %v7889_v33, %v6915_v4  ;;  %v6927_v17 = vld [vmem:[#allocation2 + $0x15c] sm:$0xf0] }
 0x282   : > { %v3671_v26 = vsel %vm11105_vm0, %v3613_v30, %v3614_v11  ;;  %v3767_v3 = vsel %vm11106_vm3, %v3709_v19, %v3710_v57  ;;  %3902 = vst [vmem:[#allocation2 + $0x40] sm:$0xf] %v3870_v34  ;;  %v3515_v51 = vadd.f32 %v3442_v56, %v9657_v10  ;;  %v3265_v53 = vpop.f32.mrf.mxu2 }
 0x283   : > { %v3806_v45 = vpack.c.bf16 %v3671_v26, %v3671_v26  ;;  %v3933_v48 = vpack.c.bf16 %v3767_v3, %v3767_v3 }
 0x284   : > { %v3551_v12 = vadd.f32 %v9780_v20, %v3515_v51  ;;  %v3446_v19 = vpop.f32.mrf.mxu0 }
 0x285   : > { %3838 = vst [vmem:[#allocation2 + $0x3c] sm:$0xf] %v3806_v45  ;;  %v3354_v41 = vpop.f32.mrf.mxu3  ;;  %v9833_v45 = vpop.f32.mrf.mxu1 }
 0x286   : > { %3965 = vst [vmem:[#allocation2 + $0x38] sm:$0xf] %v3933_v48  ;;  %v3583_v30 = vmax.f32 %v3551_v12, 0.0  ;;  %v3355_v2 = vadd.f32 %v3354_v41, %v3265_v53 }
 0x287   : > { %3307 = vmatmul.bf16.gmra.mxu2 %v6914_v22  ;;  %3485 = vmatmul.bf16.gmra.mxu0 %v6922_v28  ;;  %v6925_v28 = vld [vmem:[#allocation2 + $0x150] sm:$0xf] }
 0x288   : > { %v3615_v34 = vrot.slane %v3583_v30, 7  ;;  %v3711_v10 = vrot.slane %v3583_v30, 1  ;;  %v3871_v56 = vpack.c.bf16 %v3583_v30, %v3583_v30  ;;  %v3444_v39 = vadd.f32 %v3443_v23, %v3355_v2  ;;  %v7893_v30 = vld [vmem:[#allocation2 + $0x158] sm:$0xf0] }
 0x28a   : > { %v3670_v26 = vsel %vm11107_vm4, %v3614_v11, %v3615_v34  ;;  %v3766_v3 = vsel %vm11108_vm14, %v3710_v57, %v3711_v10  ;;  %3903 = vst [vmem:[#allocation2 + $0x4c] sm:$0xf] %v3871_v56  ;;  %v3516_v37 = vadd.f32 %v3444_v39, %v9665_v13  ;;  %3396 = vmatmul.bf16.gmra.mxu3 %v6918_v46  ;;  %v3268_v11 = vpop.f32.mrf.mxu2  ;;  %vm11117_vm4 = vmmov %vm11105_vm0 }
 0x28b   : > { %v3679_v51 = vsel %vm8942_vm5, %v3670_v26, 0.0  ;;  %v3774_v55 = vsel %vm9388_vm1, %v3766_v3, 0.0  ;;  %vm11111_vm1 = vmmov %vm11105_vm0  ;;  %v6933_v26 = vld [vmem:[#allocation2 + $0x158] sm:$0xf]  ;;  %v7894_v3 = vld [vmem:[#allocation2 + $0x160] sm:$0xf0] }
 0x28c   : > { %v3807_v23 = vpack.c.bf16 %v3679_v51, %v3679_v51  ;;  %v3934_v48 = vpack.c.bf16 %v3774_v55, %v3774_v55  ;;  %v3552_v33 = vadd.f32 %v9780_v20, %v3516_v37  ;;  %v3448_v53 = vpop.f32.mrf.mxu0  ;;  %vm11112_vm5 = vmmov %vm11106_vm3  ;;  %v7892_v51 = vld [vmem:[#allocation2 + $0x154] sm:$0xf] }
 0x28d   : > { %v3357_v4 = vpop.f32.mrf.mxu3  ;;  %vm11118_vm14 = vmmov %vm11106_vm3 }
 0x28e   : > { %3839 = vst [vmem:[#allocation2 + $0x48] sm:$0xf] %v3807_v23  ;;  %v3584_v57 = vmax.f32 %v3552_v33, 0.0  ;;  %v3358_v12 = vadd.f32 %v3357_v4, %v3268_v11  ;;  %v6934_v33 = vor.u32 %v7894_v3, %v6933_v26  ;;  %v7897_v26 = vld [vmem:[#allocation2 + $0x178] sm:$0xf0] }
 0x28f   : > { %3966 = vst [vmem:[#allocation2 + $0x44] sm:$0xf] %v3934_v48  ;;  %v6926_v48 = vor.u32 %v7893_v30, %v6925_v28 }
 0x290   : > { %v3616_v13 = vrot.slane %v3584_v57, 7  ;;  %v3712_v39 = vrot.slane %v3584_v57, 1  ;;  %v3872_v41 = vpack.c.bf16 %v3584_v57, %v3584_v57  ;;  %v3447_v22 = vadd.f32 %v3446_v19, %v3358_v12 }
 0x292   : > { %v3669_v2 = vsel %vm11111_vm1, %v3615_v34, %v3616_v13  ;;  %v3765_v46 = vsel %vm11112_vm5, %v3711_v10, %v3712_v39  ;;  %3904 = vst [vmem:[#allocation2 + $0x58] sm:$0xf] %v3872_v41  ;;  %v3517_v56 = vadd.f32 %v3447_v22, %v9678_v16  ;;  %v3270_v19 = vpop.f32.mrf.mxu2  ;;  %v9842_v34 = vpop.f32.mrf.mxu1  ;;  %v6930_v16 = vor.u32 %v7892_v51, %v6927_v17  ;;  %vm11123_vm1 = vmmov %vm11105_vm0 }
 0x293   : > { %v3808_v37 = vpack.c.bf16 %v3669_v2, %v3669_v2  ;;  %v3935_v50 = vpack.c.bf16 %v3765_v46, %v3765_v46  ;;  %v8018_v46 = vld [vmem:[#allocation8 + $0x138] sm:$0xff]  ;;  %vm11124_vm5 = vmmov %vm11106_vm3 }
 0x294   : > { %v3553_v55 = vadd.f32 %v9780_v20, %v3517_v56  ;;  %v3451_v4 = vpop.f32.mrf.mxu0  ;;  %v8026_v56 = vld [vmem:[#allocation8 + $0x178] sm:$0xff]  ;;  %4649 = vmatpush.bf16.msrb.mxu2 %v8018_v46  ;;  %v6945_v46 = vld [vmem:[#allocation2 + $0x170] sm:$0xf] }
 0x295   : > { %3840 = vst [vmem:[#allocation2 + $0x54] sm:$0xf] %v3808_v37  ;;  %v3359_v23 = vpop.f32.mrf.mxu3  ;;  %4738 = vmatpush.bf16.msrb.mxu3 %v8026_v56  ;;  %v8024_v37 = vld [vmem:[#allocation8 + $0x168] sm:$0xff] }
 0x296   : > { %3967 = vst [vmem:[#allocation2 + $0x50] sm:$0xf] %v3935_v50  ;;  %v3585_v10 = vmax.f32 %v3553_v55, 0.0  ;;  %v3360_v11 = vadd.f32 %v3359_v23, %v3270_v19  ;;  %v8017_v23 = vld [vmem:[#allocation8 + $0x130] sm:$0xff] }
 0x297   : > { %3312 = vmatmul.bf16.gmra.mxu2 %v6926_v48  ;;  %3490 = vmatmul.bf16.gmra.mxu0 %v6934_v33  ;;  %v8025_v48 = vld [vmem:[#allocation8 + $0x170] sm:$0xff]  ;;  %v2672_v33 = vadd.f32 %v9790_v27, %v9700_v32 }
 0x298   : > { %v3617_v57 = vrot.slane %v3585_v10, 7  ;;  %v3713_v12 = vrot.slane %v3585_v10, 1  ;;  %v3873_v41 = vpack.c.bf16 %v3585_v10, %v3585_v10  ;;  %v3449_v22 = vadd.f32 %v3448_v53, %v3360_v11  ;;  %v8008_v10 = vld [vmem:[#allocation8 + $0xe8] sm:$0xff]  ;;  %4650 = vmatpush.bf16.msrb.mxu2 %v8017_v23 }
 0x299   : > { %4739 = vmatpush.bf16.msrb.mxu3 %v8025_v48  ;;  %4562 = vmatpush.bf16.msra.mxu1 %v8008_v10  ;;  %v8023_v10 = vld [vmem:[#allocation8 + $0x160] sm:$0xff] }
 0x29a   : > { %v3668_v2 = vsel %vm11105_vm0, %v3616_v13, %v3617_v57  ;;  %v3764_v28 = vsel %vm11106_vm3, %v3712_v39, %v3713_v12  ;;  %3905 = vst [vmem:[#allocation2 + $0x64] sm:$0xf] %v3873_v41  ;;  %v3518_v30 = vadd.f32 %v3449_v22, %v9685_v25  ;;  %3401 = vmatmul.bf16.gmra.mxu3 %v6930_v16  ;;  %v3273_v13 = vpop.f32.mrf.mxu2  ;;  %v9856_v11 = vpop.f32.mrf.mxu1 }
 0x29b   : > { %v3681_v3 = vsel %vm9022_vm7, %v3668_v2, 0.0  ;;  %v3776_v53 = vsel %vm9407_vm12, %v3764_v28, 0.0  ;;  %v6937_v28 = vld [vmem:[#allocation2 + $0x168] sm:$0xf]  ;;  %vm11115_vm7 = vmmov %vm11105_vm0 }
 0x29c   : > { %v3809_v50 = vpack.c.bf16 %v3681_v3, %v3681_v3  ;;  %v3936_v51 = vpack.c.bf16 %v3776_v53, %v3776_v53  ;;  %v3554_v17 = vadd.f32 %v9780_v20, %v3518_v30  ;;  %v3453_v19 = vpop.f32.mrf.mxu0  ;;  %v7896_v30 = vld [vmem:[#allocation2 + $0x170] sm:$0xf0]  ;;  %vm11116_vm12 = vmmov %vm11106_vm3  ;;  %v8016_v3 = vld [vmem:[#allocation8 + $0x128] sm:$0xff] }
 0x29d   : > { %v3362_v39 = vpop.f32.mrf.mxu3  ;;  %4651 = vmatpush.bf16.msrb.mxu2 %v8016_v3  ;;  %4740 = vmatpush.bf16.msrb.mxu3 %v8024_v37 }
 0x29e   : > { %3841 = vst [vmem:[#allocation2 + $0x60] sm:$0xf] %v3809_v50  ;;  %v3586_v55 = vmax.f32 %v3554_v17, 0.0  ;;  %v3363_v25 = vadd.f32 %v3362_v39, %v3273_v13 }
 0x29f   : > { %3968 = vst [vmem:[#allocation2 + $0x5c] sm:$0xf] %v3936_v51  ;;  %v6939_v51 = vld [vmem:[#allocation2 + $0x174] sm:$0xf0] }
 0x2a0   : > { %v3618_v16 = vrot.slane %v3586_v55, 7  ;;  %v3714_v41 = vrot.slane %v3586_v55, 1  ;;  %v3874_v22 = vpack.c.bf16 %v3586_v55, %v3586_v55  ;;  %v3452_v2 = vadd.f32 %v3451_v4, %v3363_v25  ;;  %v7895_v4 = vld [vmem:[#allocation2 + $0x16c] sm:$0xf] }
 0x2a1   : > { %v6946_v55 = vor.u32 %v7897_v26, %v6945_v46  ;;  %v6942_v48 = vor.u32 %v7895_v4, %v6939_v51  ;;  %4741 = vmatpush.bf16.msrb.mxu3 %v8023_v10 }
 0x2a2   : > { %v3667_v56 = vsel %vm11115_vm7, %v3617_v57, %v3618_v16  ;;  %v3763_v32 = vsel %vm11116_vm12, %v3713_v12, %v3714_v41  ;;  %3906 = vst [vmem:[#allocation2 + $0x70] sm:$0xf] %v3874_v22  ;;  %v3519_v27 = vadd.f32 %v3452_v2, %v2672_v33  ;;  %v3275_v13 = vpop.f32.mrf.mxu2  ;;  %v6938_v57 = vor.u32 %v7896_v30, %v6937_v28  ;;  %v8015_v33 = vld [vmem:[#allocation8 + $0x120] sm:$0xff]  ;;  %v9865_v28 = vpop.f32.mrf.mxu1  ;;  %vm11133_vm7 = vmmov %vm11105_vm0 }
 0x2a3   : > { %v3810_v53 = vpack.c.bf16 %v3667_v56, %v3667_v56  ;;  %v3937_v50 = vpack.c.bf16 %v3763_v32, %v3763_v32  ;;  %v2674_v22 = vadd.f32 %v9804_v0, %v9704_v35  ;;  %4652 = vmatpush.bf16.msrb.mxu2 %v8015_v33  ;;  %v8014_v35 = vld [vmem:[#allocation8 + $0x118] sm:$0xff]  ;;  %vm11134_vm12 = vmmov %vm11106_vm3 }
 0x2a4   : > { %v3555_v17 = vadd.f32 %v9780_v20, %v3519_v27  ;;  %v3456_v23 = vpop.f32.mrf.mxu0  ;;  %v8022_v0 = vld [vmem:[#allocation8 + $0x158] sm:$0xff] }
 0x2a5   : > { %3842 = vst [vmem:[#allocation2 + $0x6c] sm:$0xf] %v3810_v53  ;;  %v3364_v39 = vpop.f32.mrf.mxu3  ;;  %4742 = vmatpush.bf16.msrb.mxu3 %v8022_v0 }
 0x2a6   : > { %3969 = vst [vmem:[#allocation2 + $0x68] sm:$0xf] %v3937_v50  ;;  %v3587_v12 = vmax.f32 %v3555_v17, 0.0  ;;  %v3365_v25 = vadd.f32 %v3364_v39, %v3275_v13 }
 0x2a7   : > { %3317 = vmatmul.bf16.gmra.mxu2 %v6938_v57  ;;  %3495 = vmatmul.bf16.gmra.mxu0 %v6946_v55  ;;  %v8013_v57 = vld [vmem:[#allocation8 + $0x110] sm:$0xff] }
 0x2a8   : > { %v3619_v2 = vrot.slane %v3587_v12, 7  ;;  %v3715_v56 = vrot.slane %v3587_v12, 1  ;;  %v3875_v32 = vpack.c.bf16 %v3587_v12, %v3587_v12  ;;  %v3454_v27 = vadd.f32 %v3453_v19, %v3365_v25  ;;  %4653 = vmatpush.bf16.msrb.mxu2 %v8014_v35  ;;  %v8021_v55 = vld [vmem:[#allocation8 + $0x150] sm:$0xff]  ;;  %v7900_v35 = vld [vmem:[#allocation2 + $0x190] sm:$0xf0] }
 0x2a9   : > { %v2677_v12 = vadd.f32 %v9816_v43, %v9708_v63  ;;  %4743 = vmatpush.bf16.msrb.mxu3 %v8021_v55  ;;  %v8012_v63 = vld [vmem:[#allocation8 + $0x108] sm:$0xff]  ;;  %v2679_v55 = vadd.f32 %v9833_v45, %v9712_v7 }
 0x2aa   : > { %v3666_v30 = vsel %vm11117_vm4, %v3618_v16, %v3619_v2  ;;  %v3762_v46 = vsel %vm11118_vm14, %v3714_v41, %v3715_v56  ;;  %3907 = vst [vmem:[#allocation2 + $0x7c] sm:$0xf] %v3875_v32  ;;  %v3520_v26 = vadd.f32 %v3454_v27, %v2674_v22  ;;  %3406 = vmatmul.bf16.gmra.mxu3 %v6942_v48  ;;  %v3278_v17 = vpop.f32.mrf.mxu2  ;;  %v6949_v22 = vld [vmem:[#allocation2 + $0x180] sm:$0xf]  ;;  %v7899_v32 = vld [vmem:[#allocation2 + $0x188] sm:$0xf0]  ;;  %v9882_v37 = vpop.f32.mrf.mxu1  ;;  %vm11139_vm14 = vmmov %vm11106_vm3 }
 0x2ab   : > { %v3683_v19 = vsel %vm9099_vm9, %v3666_v30, 0.0  ;;  %v3778_v53 = vsel %vm9422_vm10, %v3762_v46, 0.0  ;;  %v6957_v27 = vld [vmem:[#allocation2 + $0x188] sm:$0xf]  ;;  %vm11121_vm9 = vmmov %vm11105_vm0  ;;  %v8020_v43 = vld [vmem:[#allocation8 + $0x148] sm:$0xff] }
 0x2ac   : > { %v3811_v50 = vpack.c.bf16 %v3683_v19, %v3683_v19  ;;  %v3938_v4 = vpack.c.bf16 %v3778_v53, %v3778_v53  ;;  %v3556_v51 = vadd.f32 %v9780_v20, %v3520_v26  ;;  %v3458_v39 = vpop.f32.mrf.mxu0  ;;  %4654 = vmatpush.bf16.msrb.mxu2 %v8013_v57  ;;  %vm11122_vm10 = vmmov %vm11106_vm3  ;;  %v7898_v19 = vld [vmem:[#allocation2 + $0x184] sm:$0xf]  ;;  %v8019_v57 = vld [vmem:[#allocation8 + $0x140] sm:$0xff] }
 0x2ad   : > { %v3367_v16 = vpop.f32.mrf.mxu3  ;;  %4744 = vmatpush.bf16.msrb.mxu3 %v8020_v43 }
 0x2ae   : > { %3843 = vst [vmem:[#allocation2 + $0x78] sm:$0xf] %v3811_v50  ;;  %v3588_v41 = vmax.f32 %v3556_v51, 0.0  ;;  %v3368_v13 = vadd.f32 %v3367_v16, %v3278_v17 }
 0x2af   : > { %3970 = vst [vmem:[#allocation2 + $0x74] sm:$0xf] %v3938_v4  ;;  %v6950_v4 = vor.u32 %v7899_v32, %v6949_v22 }
 0x2b0   : > { %v3620_v25 = vrot.slane %v3588_v41, 7  ;;  %v3716_v48 = vrot.slane %v3588_v41, 1  ;;  %v3876_v33 = vpack.c.bf16 %v3588_v41, %v3588_v41  ;;  %v3457_v10 = vadd.f32 %v3456_v23, %v3368_v13  ;;  %v6951_v23 = vld [vmem:[#allocation2 + $0x18c] sm:$0xf0]  ;;  %4655 = vmatpush.bf16.msrb.mxu2 %v8012_v63 }
 0x2b1   : > { %v6954_v41 = vor.u32 %v7898_v19, %v6951_v23  ;;  %v8011_v13 = vld [vmem:[#allocation8 + $0x100] sm:$0xff]  ;;  %4745 = vmatpush.bf16.msrb.mxu3 %v8019_v57  ;;  %v2682_v23 = vadd.f32 %v9842_v34, %v9716_v15 }
 0x2b2   : > { %v3665_v30 = vsel %vm11121_vm9, %v3619_v2, %v3620_v25  ;;  %v3761_v46 = vsel %vm11122_vm10, %v3715_v56, %v3716_v48  ;;  %3908 = vst [vmem:[#allocation2 + $0x88] sm:$0xf] %v3876_v33  ;;  %v3521_v26 = vadd.f32 %v3457_v10, %v2677_v12  ;;  %v3280_v50 = vpop.f32.mrf.mxu2  ;;  %v6958_v56 = vor.u32 %v7900_v35, %v6957_v27  ;;  %vm11140_vm9 = vmmov %vm11105_vm0 }
 0x2b3   : > { %v3812_v0 = vpack.c.bf16 %v3665_v30, %v3665_v30  ;;  %v3939_v3 = vpack.c.bf16 %v3761_v46, %v3761_v46  ;;  %vm11141_vm10 = vmmov %vm11106_vm3 }
 0x2b4   : > { %v3557_v53 = vadd.f32 %v9780_v20, %v3521_v26  ;;  %v3461_v16 = vpop.f32.mrf.mxu0  ;;  %4656 = vmatpush.bf16.msrb.mxu2 %v8011_v13 }
 0x2b5   : > { %3844 = vst [vmem:[#allocation2 + $0x84] sm:$0xf] %v3812_v0  ;;  %v3369_v2 = vpop.f32.mrf.mxu3 }
 0x2b6   : > { %3971 = vst [vmem:[#allocation2 + $0x80] sm:$0xf] %v3939_v3  ;;  %v3589_v51 = vmax.f32 %v3557_v53, 0.0  ;;  %v3370_v17 = vadd.f32 %v3369_v2, %v3280_v50  ;;  %v9896_v3 = vpop.f32.mrf.mxu1  ;;  %v8007_v53 = vld [vmem:[#allocation8 + $0xe0] sm:$0xff] }
 0x2b7   : > { %3322 = vmatmul.bf16.gmra.mxu2 %v6950_v4  ;;  %3500 = vmatmul.bf16.gmra.mxu0 %v6958_v56 }
 0x2b8   : > { %v3621_v12 = vrot.slane %v3589_v51, 7  ;;  %v3717_v33 = vrot.slane %v3589_v51, 1  ;;  %v3877_v10 = vpack.c.bf16 %v3589_v51, %v3589_v51  ;;  %v3459_v30 = vadd.f32 %v3458_v39, %v3370_v17  ;;  %v6961_v51 = vld [vmem:[#allocation2 + $0x198] sm:$0xf]  ;;  %v7902_v17 = vld [vmem:[#allocation2 + $0x1a0] sm:$0xf0]  ;;  %4563 = vmatpush.bf16.msra.mxu1 %v8007_v53 }
 0x2b9   : > { %v6962_v46 = vor.u32 %v7902_v17, %v6961_v51 }
 0x2ba   : > { %v3664_v22 = vsel %vm11123_vm1, %v3620_v25, %v3621_v12  ;;  %v3760_v32 = vsel %vm11124_vm5, %v3716_v48, %v3717_v33  ;;  %3909 = vst [vmem:[#allocation2 + $0x94] sm:$0xf] %v3877_v10  ;;  %v3522_v27 = vadd.f32 %v3459_v30, %v2679_v55  ;;  %3411 = vmatmul.bf16.gmra.mxu3 %v6954_v41  ;;  %v3283_v43 = vpop.f32.mrf.mxu2  ;;  %v6969_v55 = vld [vmem:[#allocation2 + $0x1a0] sm:$0xf]  ;;  %v7903_v10 = vld [vmem:[#allocation2 + $0x1a8] sm:$0xf0] }
 0x2bb   : > { %v3685_v7 = vsel %vm9173_vm11, %v3664_v22, 0.0  ;;  %v3780_v26 = vsel %vm9445_vm8, %v3760_v32, 0.0  ;;  %vm11127_vm11 = vmmov %vm11105_vm0  ;;  %v7901_v30 = vld [vmem:[#allocation2 + $0x19c] sm:$0xf]  ;;  %v6963_v22 = vld [vmem:[#allocation2 + $0x1a4] sm:$0xf0] }
 0x2bc   : > { %v3813_v39 = vpack.c.bf16 %v3685_v7, %v3685_v7  ;;  %v3940_v35 = vpack.c.bf16 %v3780_v26, %v3780_v26  ;;  %v3558_v63 = vadd.f32 %v9780_v20, %v3522_v27  ;;  %v3463_v19 = vpop.f32.mrf.mxu0  ;;  %vm11128_vm8 = vmmov %vm11106_vm3  ;;  %v6970_v7 = vor.u32 %v7903_v10, %v6969_v55 }
 0x2bd   : > { %v3372_v0 = vpop.f32.mrf.mxu3 }
 0x2be   : > { %3845 = vst [vmem:[#allocation2 + $0x90] sm:$0xf] %v3813_v39  ;;  %v3590_v25 = vmax.f32 %v3558_v63, 0.0  ;;  %v3373_v48 = vadd.f32 %v3372_v0, %v3283_v43  ;;  %v2684_v39 = vadd.f32 %v9856_v11, %v9720_v31 }
 0x2bf   : > { %3972 = vst [vmem:[#allocation2 + $0x8c] sm:$0xf] %v3940_v35  ;;  %v9907_v35 = vpop.f32.mrf.mxu1 }
 0x2c0   : > { %v3622_v50 = vrot.slane %v3590_v25, 7  ;;  %v3718_v2 = vrot.slane %v3590_v25, 1  ;;  %v3878_v4 = vpack.c.bf16 %v3590_v25, %v3590_v25  ;;  %v3462_v56 = vadd.f32 %v3461_v16, %v3373_v48 }
 0x2c2   : > { %v3663_v41 = vsel %vm11127_vm11, %v3621_v12, %v3622_v50  ;;  %v3759_v13 = vsel %vm11128_vm8, %v3717_v33, %v3718_v2  ;;  %3910 = vst [vmem:[#allocation2 + $0xa0] sm:$0xf] %v3878_v4  ;;  %v3523_v57 = vadd.f32 %v3462_v56, %v2682_v23  ;;  %v3285_v16 = vpop.f32.mrf.mxu2  ;;  %v6966_v33 = vor.u32 %v7901_v30, %v6963_v22  ;;  %vm11146_vm11 = vmmov %vm11105_vm0 }
 0x2c3   : > { %v3814_v15 = vpack.c.bf16 %v3663_v41, %v3663_v41  ;;  %v3941_v34 = vpack.c.bf16 %v3759_v13, %v3759_v13  ;;  %vm11147_vm8 = vmmov %vm11106_vm3 }
 0x2c4   : > { %v3559_v32 = vadd.f32 %v9780_v20, %v3523_v57  ;;  %v3466_v26 = vpop.f32.mrf.mxu0 }
 0x2c5   : > { %3846 = vst [vmem:[#allocation2 + $0x9c] sm:$0xf] %v3814_v15  ;;  %v3374_v27 = vpop.f32.mrf.mxu3 }
 0x2c6   : > { %3973 = vst [vmem:[#allocation2 + $0x98] sm:$0xf] %v3941_v34  ;;  %v3591_v12 = vmax.f32 %v3559_v32, 0.0  ;;  %v3375_v45 = vadd.f32 %v3374_v27, %v3285_v16 }
 0x2c7   : > { %3327 = vmatmul.bf16.gmra.mxu2 %v6962_v46  ;;  %3505 = vmatmul.bf16.gmra.mxu0 %v6970_v7  ;;  %v9920_v22 = vpop.f32.mrf.mxu1 }
 0x2c8   : > { %v3623_v63 = vrot.slane %v3591_v12, 7  ;;  %v3719_v43 = vrot.slane %v3591_v12, 1  ;;  %v3879_v0 = vpack.c.bf16 %v3591_v12, %v3591_v12  ;;  %v3464_v25 = vadd.f32 %v3463_v19, %v3375_v45  ;;  %v7933_v45 = vld [vmem:[#allocation2 + $0x28] sm:$0xf0] }
 0x2ca   : > { %v3662_v48 = vsel %vm11105_vm0, %v3622_v50, %v3623_v63  ;;  %v3758_v23 = vsel %vm11106_vm3, %v3718_v2, %v3719_v43  ;;  %3911 = vst [vmem:[#allocation2 + $0xac] sm:$0xf] %v3879_v0  ;;  %v3524_v53 = vadd.f32 %v3464_v25, %v2684_v39  ;;  %3416 = vmatmul.bf16.gmra.mxu3 %v6966_v33  ;;  %v3288_v41 = vpop.f32.mrf.mxu2 }
 0x2cb   : > { %v3687_v31 = vsel %vm9245_vm13, %v3662_v48, 0.0  ;;  %v3782_v56 = vsel %vm9468_vm6, %v3758_v23, 0.0  ;;  %v2687_v2 = vadd.f32 %v9865_v28, %v9724_v60  ;;  %vm11131_vm13 = vmmov %vm11105_vm0  ;;  %v7071_v28 = vld [vmem:[#allocation2 + $0x24] sm:$0xf0] }
 0x2cc   : > { %v3815_v51 = vpack.c.bf16 %v3687_v31, %v3687_v31  ;;  %v3942_v17 = vpack.c.bf16 %v3782_v56, %v3782_v56  ;;  %v3560_v19 = vadd.f32 %v9780_v20, %v3524_v53  ;;  %v3468_v55 = vpop.f32.mrf.mxu0  ;;  %vm11132_vm6 = vmmov %vm11106_vm3 }
 0x2cd   : > { %v3377_v13 = vpop.f32.mrf.mxu3 }
 0x2ce   : > { %3847 = vst [vmem:[#allocation2 + $0xa8] sm:$0xf] %v3815_v51  ;;  %v3592_v50 = vmax.f32 %v3560_v19, 0.0  ;;  %v3378_v57 = vadd.f32 %v3377_v13, %v3288_v41  ;;  %v11136_v19 = vld [vmem:[#allocation49_spill] sm:$0xff] }
 0x2cf   : > { %3974 = vst [vmem:[#allocation2 + $0xa4] sm:$0xf] %v3942_v17  ;;  %vm11137_vm4 = vnez %v11136_v19  ;;  %v9943_v13 = vpop.f32.mrf.mxu1 }
 0x2d0   : > { %v3624_v10 = vrot.slane %v3592_v50, 7  ;;  %v3720_v15 = vrot.slane %v3592_v50, 1  ;;  %v3880_v34 = vpack.c.bf16 %v3592_v50, %v3592_v50  ;;  %v3467_v30 = vadd.f32 %v3466_v26, %v3378_v57  ;;  %v7931_v26 = vld [vmem:[#allocation2 + $0x1c] sm:$0xf] }
 0x2d1   : > { %v9929_v48 = vor.u32 %v7931_v26, %v7071_v28 }
 0x2d2   : > { %v3661_v32 = vsel %vm11131_vm13, %v3623_v63, %v3624_v10  ;;  %v3757_v16 = vsel %vm11132_vm6, %v3719_v43, %v3720_v15  ;;  %3912 = vst [vmem:[#allocation2 + $0xb8] sm:$0xf] %v3880_v34  ;;  %v3525_v27 = vadd.f32 %v3467_v30, %v2687_v2  ;;  %v3290_v60 = vpop.f32.mrf.mxu2  ;;  %v7077_v63 = vld [vmem:[#allocation2 + $0x20] sm:$0xf]  ;;  %v2689_v43 = vadd.f32 %v9882_v37, %v9727_v54 }
 0x2d3   : > { %v3816_v46 = vpack.c.bf16 %v3661_v32, %v3661_v32  ;;  %v3943_v7 = vpack.c.bf16 %v3757_v16, %v3757_v16  ;;  %v9931_v23 = vor.u32 %v7933_v45, %v7077_v63  ;;  %v2692_v32 = vadd.f32 %v9896_v3, %v9730_v21  ;;  %v8006_v16 = vld [vmem:[#allocation8 + $0xd8] sm:$0xff]  ;;  %v7083_v3 = vld [vmem:[#allocation2 + $0x3c] sm:$0xf0] }
 0x2d4   : > { %v3561_v12 = vadd.f32 %v9780_v20, %v3525_v27  ;;  %v3471_v25 = vpop.f32.mrf.mxu0  ;;  %4564 = vmatpush.bf16.msra.mxu1 %v8006_v16 }
 0x2d5   : > { %3848 = vst [vmem:[#allocation2 + $0xb4] sm:$0xf] %v3816_v46  ;;  %v3379_v33 = vpop.f32.mrf.mxu3 }
 0x2d6   : > { %3975 = vst [vmem:[#allocation2 + $0xb0] sm:$0xf] %v3943_v7  ;;  %v3593_v39 = vmax.f32 %v3561_v12, 0.0  ;;  %v3380_v0 = vadd.f32 %v3379_v33, %v3290_v60 }
 0x2d7   : > { %4657 = vmatmul.bf16.vlgmr.msrb.gmra.mxu2 %v9929_v48 }
 0x2d8   : > { %v3625_v53 = vrot.slane %v3593_v39, 7  ;;  %v3721_v4 = vrot.slane %v3593_v39, 1  ;;  %v3881_v31 = vpack.c.bf16 %v3593_v39, %v3593_v39  ;;  %v3469_v11 = vadd.f32 %v3468_v55, %v3380_v0  ;;  %v7936_v0 = vld [vmem:[#allocation2 + $0x40] sm:$0xf0] }
 0x2da   : > { %v3660_v56 = vsel %vm11133_vm7, %v3624_v10, %v3625_v53  ;;  %v3756_v51 = vsel %vm11134_vm12, %v3720_v15, %v3721_v4  ;;  %3913 = vst [vmem:[#allocation2 + $0xc4] sm:$0xf] %v3881_v31  ;;  %v3526_v17 = vadd.f32 %v3469_v11, %v2689_v43  ;;  %4746 = vmatmul.bf16.vlgmr.msrb.gmra.mxu3 %v9931_v23  ;;  %v3293_v2 = vpop.f32.mrf.mxu2  ;;  %v7934_v43 = vld [vmem:[#allocation2 + $0x34] sm:$0xf]  ;;  %vm11153_vm7 = vmmov %vm11105_vm0 }
 0x2db   : > { %v3689_v37 = vsel %vm9308_vm15, %v3660_v56, 0.0  ;;  %v3784_v41 = vsel %vm11137_vm4, %v3756_v51, 0.0  ;;  %vm11138_vm15 = vmmov %vm11105_vm0  ;;  %v7089_v56 = vld [vmem:[#allocation2 + $0x38] sm:$0xf]  ;;  %v9957_v51 = vor.u32 %v7934_v43, %v7083_v3 }
 0x2dc   : > { %v3817_v50 = vpack.c.bf16 %v3689_v37, %v3689_v37  ;;  %v3944_v57 = vpack.c.bf16 %v3784_v41, %v3784_v41  ;;  %v3562_v55 = vadd.f32 %v9780_v20, %v3526_v17  ;;  %v3473_v30 = vpop.f32.mrf.mxu0  ;;  %v9959_v17 = vor.u32 %v7936_v0, %v7089_v56  ;;  %v7937_v56 = vld [vmem:[#allocation2 + $0x4c] sm:$0xf]  ;;  %vm11154_vm12 = vmmov %vm11106_vm3 }
 0x2dd   : > { %v3382_v10 = vpop.f32.mrf.mxu3  ;;  %vm11156_vm4 = vmmov %vm11105_vm0 }
 0x2de   : > { %3849 = vst [vmem:[#allocation2 + $0xc0] sm:$0xf] %v3817_v50  ;;  %v3594_v15 = vmax.f32 %v3562_v55, 0.0  ;;  %v3383_v34 = vadd.f32 %v3382_v10, %v3293_v2  ;;  %v11144_v2 = vld [vmem:[#allocation50_spill] sm:$0xff] }
 0x2df   : > { %3976 = vst [vmem:[#allocation2 + $0xbc] sm:$0xf] %v3944_v57  ;;  %vm11145_vm5 = vnez %v11144_v2 }
 0x2e0   : > { %v3626_v27 = vrot.slane %v3594_v15, 7  ;;  %v3722_v46 = vrot.slane %v3594_v15, 1  ;;  %v3882_v7 = vpack.c.bf16 %v3594_v15, %v3594_v15  ;;  %v3472_v12 = vadd.f32 %v3471_v25, %v3383_v34  ;;  %v9953_v25 = vpop.f32.mrf.mxu1 }
 0x2e2   : > { %v3659_v60 = vsel %vm11138_vm15, %v3625_v53, %v3626_v27  ;;  %v3755_v28 = vsel %vm11139_vm14, %v3721_v4, %v3722_v46  ;;  %3914 = vst [vmem:[#allocation2 + $0xd0] sm:$0xf] %v3882_v7  ;;  %v3527_v45 = vadd.f32 %v3472_v12, %v2692_v32  ;;  %v3295_v21 = vpop.f32.mrf.mxu2  ;;  %v2694_v4 = vadd.f32 %v9907_v35, %v9733_v61  ;;  %v11142_v61 = vld [vmem:[#allocation14_spill] sm:$0xff]  ;;  %vm11157_vm15 = vmmov %vm11106_vm3 }
 0x2e3   : > { %v3818_v33 = vpack.c.bf16 %v3659_v60, %v3659_v60  ;;  %v3945_v26 = vpack.c.bf16 %v3755_v28, %v3755_v28  ;;  %vm11143_vm1 = vnez %v11142_v61  ;;  %v2697_v12 = vadd.f32 %v9920_v22, %v9736_v24  ;;  %v7095_v22 = vld [vmem:[#allocation2 + $0x54] sm:$0xf0] }
 0x2e4   : > { %v3563_v39 = vadd.f32 %v9780_v20, %v3527_v45  ;;  %v3476_v11 = vpop.f32.mrf.mxu0 }
 0x2e5   : > { %3850 = vst [vmem:[#allocation2 + $0xcc] sm:$0xf] %v3818_v33  ;;  %v3384_v63 = vpop.f32.mrf.mxu3 }
 0x2e6   : > { %3977 = vst [vmem:[#allocation2 + $0xc8] sm:$0xf] %v3945_v26  ;;  %v3595_v31 = vmax.f32 %v3563_v39, 0.0  ;;  %v3385_v53 = vadd.f32 %v3384_v63, %v3295_v21 }
 0x2e7   : > { %4662 = vmatmul.bf16.gmra.mxu2 %v9957_v51 }
 0x2e8   : > { %v3627_v54 = vrot.slane %v3595_v31, 7  ;;  %v3723_v37 = vrot.slane %v3595_v31, 1  ;;  %v3883_v19 = vpack.c.bf16 %v3595_v31, %v3595_v31  ;;  %v3474_v41 = vadd.f32 %v3473_v30, %v3385_v53  ;;  %v9974_v60 = vpop.f32.mrf.mxu1  ;;  %v7939_v31 = vld [vmem:[#allocation2 + $0x58] sm:$0xf0] }
 0x2ea   : > { %v3658_v50 = vsel %vm11140_vm9, %v3626_v27, %v3627_v54  ;;  %v3754_v57 = vsel %vm11141_vm10, %v3722_v46, %v3723_v37  ;;  %3915 = vst [vmem:[#allocation2 + $0xdc] sm:$0xf] %v3883_v19  ;;  %v3528_v55 = vadd.f32 %v3474_v41, %v2694_v4  ;;  %4751 = vmatmul.bf16.gmra.mxu3 %v9959_v17  ;;  %v3298_v32 = vpop.f32.mrf.mxu2  ;;  %vm11162_vm10 = vmmov %vm11105_vm0 }
 0x2eb   : > { %v3691_v35 = vsel %vm11143_vm1, %v3658_v50, 0.0  ;;  %v3786_v10 = vsel %vm11145_vm5, %v3754_v57, 0.0  ;;  %v9983_v41 = vor.u32 %v7937_v56, %v7095_v22  ;;  %vm11163_vm1 = vmmov %vm11106_vm3 }
 0x2ec   : > { %v3819_v15 = vpack.c.bf16 %v3691_v35, %v3691_v35  ;;  %v3946_v34 = vpack.c.bf16 %v3786_v10, %v3786_v10  ;;  %v3564_v30 = vadd.f32 %v9780_v20, %v3528_v55  ;;  %v3478_v46 = vpop.f32.mrf.mxu0  ;;  %vm11165_vm5 = vmmov %vm11105_vm0 }
 0x2ed   : > { %v3387_v16 = vpop.f32.mrf.mxu3  ;;  %11148 = vst [vmem:[#allocation22_spill] sm:$0xff] %v9983_v41 }
 0x2ee   : > { %3851 = vst [vmem:[#allocation2 + $0xd8] sm:$0xf] %v3819_v15  ;;  %v3596_v27 = vmax.f32 %v3564_v30, 0.0  ;;  %v3388_v7 = vadd.f32 %v3387_v16, %v3298_v32 }
 0x2ef   : > { %3978 = vst [vmem:[#allocation2 + $0xd4] sm:$0xf] %v3946_v34  ;;  %v11151_v34 = vld [vmem:[#allocation51_spill] sm:$0xff] }
 0x2f0   : > { %v3628_v28 = vrot.slane %v3596_v27, 7  ;;  %v3724_v45 = vrot.slane %v3596_v27, 1  ;;  %v3884_v33 = vpack.c.bf16 %v3596_v27, %v3596_v27  ;;  %v3477_v26 = vadd.f32 %v3476_v11, %v3388_v7  ;;  %v9988_v35 = vpop.f32.mrf.mxu1  ;;  %v10002_v27 = vld [vmem:[%s10853_s5] ss:$0 sm:$0xff] }
 0x2f1   : > { %vm11152_vm6 = vnez %v11151_v34 }
 0x2f2   : > { %v3657_v39 = vsel %vm11146_vm11, %v3627_v54, %v3628_v28  ;;  %v3753_v21 = vsel %vm11147_vm8, %v3723_v37, %v3724_v45  ;;  %3916 = vst [vmem:[#allocation2 + $0xe8] sm:$0xf] %v3884_v33  ;;  %v3529_v3 = vadd.f32 %v3477_v26, %v2697_v12  ;;  %v3300_v24 = vpop.f32.mrf.mxu2  ;;  %v7101_v54 = vld [vmem:[#allocation2 + $0x50] sm:$0xf]  ;;  %v2699_v37 = vadd.f32 %v9943_v13, %v9739_v49  ;;  %vm11166_vm11 = vmmov %vm11163_vm1 }
 0x2f3   : > { %v3820_v0 = vpack.c.bf16 %v3657_v39, %v3657_v39  ;;  %v3947_v63 = vpack.c.bf16 %v3753_v21, %v3753_v21  ;;  %v9985_v50 = vor.u32 %v7939_v31, %v7101_v54  ;;  %v11149_v13 = vld [vmem:[#allocation17_spill] sm:$0xff]  ;;  %v2702_v26 = vadd.f32 %v9953_v25, %v9742_v9  ;;  %v8005_v39 = vld [vmem:[#allocation8 + $0xd0] sm:$0xff] }
 0x2f4   : > { %v3565_v43 = vadd.f32 %v9780_v20, %v3529_v3  ;;  %v3481_v19 = vpop.f32.mrf.mxu0  ;;  %vm11150_vm13 = vnez %v11149_v13  ;;  %4565 = vmatpush.bf16.msra.mxu1 %v8005_v39 }
 0x2f5   : > { %3852 = vst [vmem:[#allocation2 + $0xe4] sm:$0xf] %v3820_v0  ;;  %v3389_v53 = vpop.f32.mrf.mxu3 }
 0x2f6   : > { %3979 = vst [vmem:[#allocation2 + $0xe0] sm:$0xf] %v3947_v63  ;;  %v3597_v11 = vmax.f32 %v3565_v43, 0.0  ;;  %v3390_v4 = vadd.f32 %v3389_v53, %v3300_v24 }
 0x2f7   : > { %4667 = vmatmul.bf16.gmra.mxu2 %v9983_v41 }
 0x2f8   : > { %v3629_v57 = vrot.slane %v3597_v11, 7  ;;  %v3725_v20 = vrot.slane %v3597_v11, 1  ;;  %v3885_v55 = vpack.c.bf16 %v3597_v11, %v3597_v11  ;;  %v3479_v61 = vadd.f32 %v3478_v46, %v3390_v4  ;;  %v2708_v56 = vpop.f32.mrf.mxu1  ;;  %v7107_v11 = vld [vmem:[#allocation2 + $0x6c] sm:$0xf0]  ;;  %v7942_v4 = vld [vmem:[#allocation2 + $0x70] sm:$0xf0] }
 0x2fa   : > { %v3656_v2 = vsel %vm11105_vm0, %v3628_v28, %v3629_v57  ;;  %v3752_v10 = vsel %vm11106_vm3, %v3724_v45, %v3725_v20  ;;  %3917 = vst [vmem:[#allocation2 + $0xf4] sm:$0xf] %v3885_v55  ;;  %v3530_v49 = vadd.f32 %v3479_v61, %v2699_v37  ;;  %4756 = vmatmul.bf16.gmra.mxu3 %v9985_v50  ;;  %v3303_v46 = vpop.f32.mrf.mxu2  ;;  %v7113_v61 = vld [vmem:[#allocation2 + $0x68] sm:$0xf]  ;;  %vm11171_vm3 = vmmov %vm11156_vm4 }
 0x2fb   : > { %v3693_v15 = vsel %vm11150_vm13, %v3656_v2, 0.0  ;;  %v3788_v30 = vsel %vm11152_vm6, %v3752_v10, 0.0  ;;  %v10016_v10 = vor.u32 %v7942_v4, %v7113_v61  ;;  %vm11172_vm13 = vmmov %vm11163_vm1 }
 0x2fc   : > { %v3821_v32 = vpack.c.bf16 %v3693_v15, %v3693_v15  ;;  %v3948_v16 = vpack.c.bf16 %v3788_v30, %v3788_v30  ;;  %v3566_v7 = vadd.f32 %v10002_v27, %v3530_v49  ;;  %v3483_v33 = vpop.f32.mrf.mxu0  ;;  %vm11174_vm6 = vmmov %vm11171_vm3 }
 0x2fd   : > { %v3392_v12 = vpop.f32.mrf.mxu3 }
 0x2fe   : > { %3853 = vst [vmem:[#allocation2 + $0xf0] sm:$0xf] %v3821_v32  ;;  %v3598_v28 = vmax.f32 %v3566_v7, 0.0  ;;  %v3393_v45 = vadd.f32 %v3392_v12, %v3303_v46  ;;  %v11160_v7 = vld [vmem:[#allocation52_spill] sm:$0xff] }
 0x2ff   : > { %3980 = vst [vmem:[#allocation2 + $0xec] sm:$0xf] %v3948_v16  ;;  %vm11161_vm9 = vnez %v11160_v7 }
 0x300   : > { %v3630_v21 = vrot.slane %v3598_v28, 7  ;;  %v3726_v3 = vrot.slane %v3598_v28, 1  ;;  %v3886_v0 = vpack.c.bf16 %v3598_v28, %v3598_v28  ;;  %v3482_v63 = vadd.f32 %v3481_v19, %v3393_v45  ;;  %v7940_v19 = vld [vmem:[#allocation2 + $0x64] sm:$0xf]  ;;  %v2711_v39 = vpop.f32.mrf.mxu1 }
 0x301   : > { %v10014_v2 = vor.u32 %v7940_v19, %v7107_v11  ;;  %v7958_v1 = vld [vmem:[#allocation2 + $0xf4] sm:$0xf] }
 0x302   : > { %v3655_v43 = vsel %vm11153_vm7, %v3629_v57, %v3630_v21  ;;  %v3751_v24 = vsel %vm11154_vm12, %v3725_v20, %v3726_v3  ;;  %3918 = vst [vmem:[#allocation2 + $0x100] sm:$0xf] %v3886_v0  ;;  %v3531_v22 = vadd.f32 %v3482_v63, %v2702_v26  ;;  %v3305_v25 = vpop.f32.mrf.mxu2  ;;  %v2704_v20 = vadd.f32 %v9974_v60, %v9745_v44  ;;  %v11158_v44 = vld [vmem:[#allocation19_spill] sm:$0xff]  ;;  %vm11175_vm7 = vmmov %vm11163_vm1 }
 0x303   : > { %v3822_v31 = vpack.c.bf16 %v3655_v43, %v3655_v43  ;;  %v3949_v53 = vpack.c.bf16 %v3751_v24, %v3751_v24  ;;  %11155 = vst [vmem:[#allocation27_spill] sm:$0xff] %v10014_v2  ;;  %vm11159_vm14 = vnez %v11158_v44  ;;  %v2707_v63 = vadd.f32 %v9988_v35, %v9748_v36  ;;  %v7945_v36 = vld [vmem:[#allocation2 + $0x88] sm:$0xf0] }
 0x304   : > { %v3567_v9 = vadd.f32 %v10002_v27, %v3531_v22  ;;  %v3486_v57 = vpop.f32.mrf.mxu0 }
 0x305   : > { %3854 = vst [vmem:[#allocation2 + $0xfc] sm:$0xf] %v3822_v31  ;;  %v3394_v54 = vpop.f32.mrf.mxu3 }
 0x306   : > { %3981 = vst [vmem:[#allocation2 + $0xf8] sm:$0xf] %v3949_v53  ;;  %v3599_v37 = vmax.f32 %v3567_v9, 0.0  ;;  %v3395_v55 = vadd.f32 %v3394_v54, %v3305_v25 }
 0x307   : > { %4672 = vmatmul.bf16.gmra.mxu2 %v10014_v2  ;;  %v7986_v2 = vld [vmem:[#allocation8 + $0x50] sm:$0xff] }
 0x308   : > { %v3631_v49 = vrot.slane %v3599_v37, 7  ;;  %v3727_v13 = vrot.slane %v3599_v37, 1  ;;  %v3887_v15 = vpack.c.bf16 %v3599_v37, %v3599_v37  ;;  %v3484_v34 = vadd.f32 %v3483_v33, %v3395_v55  ;;  %v7119_v37 = vld [vmem:[#allocation2 + $0x84] sm:$0xf0]  ;;  %v7943_v55 = vld [vmem:[#allocation2 + $0x7c] sm:$0xf] }
 0x30a   : > { %v3654_v30 = vsel %vm11156_vm4, %v3630_v21, %v3631_v49  ;;  %v3750_v32 = vsel %vm11157_vm15, %v3726_v3, %v3727_v13  ;;  %3919 = vst [vmem:[#allocation2 + $0x10c] sm:$0xf] %v3887_v15  ;;  %v3532_v16 = vadd.f32 %v3484_v34, %v2704_v20  ;;  %4761 = vmatmul.bf16.gmra.mxu3 %v10016_v10  ;;  %v3308_v33 = vpop.f32.mrf.mxu2  ;;  %vm11180_vm15 = vmmov %vm11171_vm3 }
 0x30b   : > { %v3695_v60 = vsel %vm11159_vm14, %v3654_v30, 0.0  ;;  %v3790_v46 = vsel %vm11161_vm9, %v3750_v32, 0.0  ;;  %v2709_v15 = vadd.f32 %v2708_v56, %v9751_v5  ;;  %v2713_v30 = vpop.f32.mrf.mxu1  ;;  %v11167_v5 = vld [vmem:[#allocation21_spill] sm:$0xff]  ;;  %vm11181_vm14 = vmmov %vm11163_vm1 }
 0x30c   : > { %v3823_v12 = vpack.c.bf16 %v3695_v60, %v3695_v60  ;;  %v3950_v28 = vpack.c.bf16 %v3790_v46, %v3790_v46  ;;  %v3568_v45 = vadd.f32 %v10002_v27, %v3532_v16  ;;  %v3488_v0 = vpop.f32.mrf.mxu0  ;;  %vm11168_vm8 = vnez %v11167_v5  ;;  %vm11183_vm9 = vmmov %vm11171_vm3 }
 0x30d   : > { %v3397_v26 = vpop.f32.mrf.mxu3 }
 0x30e   : > { %3855 = vst [vmem:[#allocation2 + $0x108] sm:$0xf] %v3823_v12  ;;  %v3600_v21 = vmax.f32 %v3568_v45, 0.0  ;;  %v3398_v3 = vadd.f32 %v3397_v26, %v3308_v33 }
 0x30f   : > { %3982 = vst [vmem:[#allocation2 + $0x104] sm:$0xf] %v3950_v28  ;;  %v11169_v28 = vld [vmem:[#allocation53_spill] sm:$0xff] }
 0x310   : > { %v3632_v43 = vrot.slane %v3600_v21, 7  ;;  %v3728_v24 = vrot.slane %v3600_v21, 1  ;;  %v3888_v22 = vpack.c.bf16 %v3600_v21, %v3600_v21  ;;  %v3487_v31 = vadd.f32 %v3486_v57, %v3398_v3 }
 0x311   : > { %vm11170_vm0 = vnez %v11169_v28 }
 0x312   : > { %v3653_v53 = vsel %vm11162_vm10, %v3631_v49, %v3632_v43  ;;  %v3749_v9 = vsel %vm11163_vm1, %v3727_v13, %v3728_v24  ;;  %3920 = vst [vmem:[#allocation2 + $0x118] sm:$0xf] %v3888_v22  ;;  %v3533_v25 = vadd.f32 %v3487_v31, %v2707_v63  ;;  %v3310_v19 = vpop.f32.mrf.mxu2  ;;  %v7125_v49 = vld [vmem:[#allocation2 + $0x80] sm:$0xf]  ;;  %v10037_v13 = vor.u32 %v7943_v55, %v7119_v37  ;;  %v8004_v31 = vld [vmem:[#allocation8 + $0xc8] sm:$0xff]  ;;  %vm11184_vm10 = vmmov %vm11163_vm1 }
 0x313   : > { %v3824_v11 = vpack.c.bf16 %v3653_v53, %v3653_v53  ;;  %v3951_v4 = vpack.c.bf16 %v3749_v9, %v3749_v9  ;;  %v10039_v34 = vor.u32 %v7945_v36, %v7125_v49  ;;  %v2712_v22 = vadd.f32 %v2711_v39, %v9754_v62  ;;  %4566 = vmatpush.bf16.msra.mxu1 %v8004_v31  ;;  %v7983_v36 = vld [vmem:[#allocation8 + $0x38] sm:$0xff]  ;;  %v7946_v49 = vld [vmem:[#allocation2 + $0x94] sm:$0xf] }
 0x314   : > { %v3569_v54 = vadd.f32 %v10002_v27, %v3533_v25  ;;  %v3491_v20 = vpop.f32.mrf.mxu0  ;;  %11164 = vst [vmem:[#allocation32_spill] sm:$0xff] %v10037_v13  ;;  %4987 = vmatpush.bf16.msrb.mxu0 %v7983_v36 }
 0x315   : > { %3856 = vst [vmem:[#allocation2 + $0x114] sm:$0xf] %v3824_v11  ;;  %v3399_v35 = vpop.f32.mrf.mxu3 }
 0x316   : > { %3983 = vst [vmem:[#allocation2 + $0x110] sm:$0xf] %v3951_v4  ;;  %v3601_v57 = vmax.f32 %v3569_v54, 0.0  ;;  %v3400_v61 = vadd.f32 %v3399_v35, %v3310_v19  ;;  %v2716_v4 = vpop.f32.mrf.mxu1 }
 0x317   : > { %4677 = vmatmul.bf16.gmra.mxu2 %v10037_v13  ;;  %v7165_v13 = vld [vmem:[#allocation2 + $0xd8] sm:$0xf] }
 0x318   : > { %v3633_v32 = vrot.slane %v3601_v57, 7  ;;  %v3729_v16 = vrot.slane %v3601_v57, 1  ;;  %v3889_v44 = vpack.c.bf16 %v3601_v57, %v3601_v57  ;;  %v3489_v60 = vadd.f32 %v3488_v0, %v3400_v61  ;;  %v7131_v57 = vld [vmem:[#allocation2 + $0x9c] sm:$0xf0]  ;;  %v7948_v61 = vld [vmem:[#allocation2 + $0xa0] sm:$0xf0] }
 0x31a   : > { %v3652_v7 = vsel %vm11165_vm5, %v3632_v43, %v3633_v32  ;;  %v3748_v46 = vsel %vm11166_vm11, %v3728_v24, %v3729_v16  ;;  %3921 = vst [vmem:[#allocation2 + $0x124] sm:$0xf] %v3889_v44  ;;  %v3534_v12 = vadd.f32 %v3489_v60, %v2709_v15  ;;  %4766 = vmatmul.bf16.gmra.mxu3 %v10039_v34  ;;  %v3313_v3 = vpop.f32.mrf.mxu2  ;;  %v7137_v60 = vld [vmem:[#allocation2 + $0x98] sm:$0xf]  ;;  %vm11188_vm11 = vmmov %vm11171_vm3 }
 0x31b   : > { %v3697_v56 = vsel %vm11168_vm8, %v3652_v7, 0.0  ;;  %v3792_v45 = vsel %vm11170_vm0, %v3748_v46, 0.0  ;;  %v2714_v7 = vadd.f32 %v2713_v30, %v9757_v52  ;;  %v10059_v46 = vor.u32 %v7946_v49, %v7131_v57  ;;  %v7981_v52 = vld [vmem:[#allocation8 + $0x28] sm:$0xff]  ;;  %v11176_v30 = vld [vmem:[#allocation24_spill] sm:$0xff]  ;;  %vm11189_vm8 = vmmov %vm11175_vm7 }
 0x31c   : > { %v3825_v33 = vpack.c.bf16 %v3697_v56, %v3697_v56  ;;  %v3952_v26 = vpack.c.bf16 %v3792_v45, %v3792_v45  ;;  %v3570_v21 = vadd.f32 %v10002_v27, %v3534_v12  ;;  %v3493_v24 = vpop.f32.mrf.mxu0  ;;  %v10061_v12 = vor.u32 %v7948_v61, %v7137_v60  ;;  %v7951_v60 = vld [vmem:[#allocation2 + $0xb8] sm:$0xf0]  ;;  %vm11191_vm0 = vmmov %vm11171_vm3 }
 0x31d   : > { %v3402_v0 = vpop.f32.mrf.mxu3  ;;  %11173 = vst [vmem:[#allocation26_spill] sm:$0xff] %v10059_v46  ;;  %vm11177_vm12 = vnez %v11176_v30  ;;  %vm11187_vm5 = vnez %v11076_v38 }
 0x31e   : > { %3857 = vst [vmem:[#allocation2 + $0x120] sm:$0xf] %v3825_v33  ;;  %v3602_v63 = vmax.f32 %v3570_v21, 0.0  ;;  %v3403_v43 = vadd.f32 %v3402_v0, %v3313_v3  ;;  %v11178_v0 = vld [vmem:[#allocation54_spill] sm:$0xff] }
 0x31f   : > { %3984 = vst [vmem:[#allocation2 + $0x11c] sm:$0xf] %v3952_v26  ;;  %vm11179_vm4 = vnez %v11178_v0 }
 0x320   : > { %v3634_v53 = vrot.slane %v3602_v63, 7  ;;  %v3730_v9 = vrot.slane %v3602_v63, 1  ;;  %v3890_v25 = vpack.c.bf16 %v3602_v63, %v3602_v63  ;;  %v3492_v11 = vadd.f32 %v3491_v20, %v3403_v43  ;;  %v2718_v43 = vpop.f32.mrf.mxu1 }
 0x322   : > { %v3651_v54 = vsel %vm11171_vm3, %v3633_v32, %v3634_v53  ;;  %v3747_v19 = vsel %vm11172_vm13, %v3729_v16, %v3730_v9  ;;  %3922 = vst [vmem:[#allocation2 + $0x130] sm:$0xf] %v3890_v25  ;;  %v3535_v37 = vadd.f32 %v3492_v11, %v2712_v22  ;;  %v3315_v39 = vpop.f32.mrf.mxu2  ;;  %v7982_v16 = vld [vmem:[#allocation8 + $0x30] sm:$0xff]  ;;  %vm11192_vm3 = vmmov %vm11175_vm7 }
 0x323   : > { %v3826_v35 = vpack.c.bf16 %v3651_v54, %v3651_v54  ;;  %v3953_v55 = vpack.c.bf16 %v3747_v19, %v3747_v19  ;;  %4988 = vmatpush.bf16.msrb.mxu0 %v7982_v16  ;;  %v7980_v54 = vld [vmem:[#allocation8 + $0x20] sm:$0xff]  ;;  %v2717_v19 = vadd.f32 %v2716_v4, %v9760_v6  ;;  %v7949_v16 = vld [vmem:[#allocation2 + $0xac] sm:$0xf] }
 0x324   : > { %v3571_v62 = vadd.f32 %v10002_v27, %v3535_v37  ;;  %v3496_v44 = vpop.f32.mrf.mxu0 }
 0x325   : > { %3858 = vst [vmem:[#allocation2 + $0x12c] sm:$0xf] %v3826_v35  ;;  %v3404_v20 = vpop.f32.mrf.mxu3 }
 0x326   : > { %3985 = vst [vmem:[#allocation2 + $0x128] sm:$0xf] %v3953_v55  ;;  %v3603_v15 = vmax.f32 %v3571_v62, 0.0  ;;  %v3405_v32 = vadd.f32 %v3404_v20, %v3315_v39  ;;  %v7979_v20 = vld [vmem:[#allocation8 + $0x18] sm:$0xff] }
 0x327   : > { %4682 = vmatmul.bf16.gmra.mxu2 %v10059_v46  ;;  %4989 = vmatpush.bf16.msrb.mxu0 %v7981_v52 }
 0x328   : > { %v3635_v5 = vrot.slane %v3603_v15, 7  ;;  %v3731_v56 = vrot.slane %v3603_v15, 1  ;;  %v3891_v28 = vpack.c.bf16 %v3603_v15, %v3603_v15  ;;  %v3494_v45 = vadd.f32 %v3493_v24, %v3405_v32  ;;  %v7143_v32 = vld [vmem:[#allocation2 + $0xb4] sm:$0xf0] }
 0x32a   : > { %v3650_v33 = vsel %vm11174_vm6, %v3634_v53, %v3635_v5  ;;  %v3746_v26 = vsel %vm11175_vm7, %v3730_v9, %v3731_v56  ;;  %3923 = vst [vmem:[#allocation2 + $0x13c] sm:$0xf] %v3891_v28  ;;  %v3536_v21 = vadd.f32 %v3494_v45, %v2714_v7  ;;  %4771 = vmatmul.bf16.gmra.mxu3 %v10061_v12  ;;  %v3318_v53 = vpop.f32.mrf.mxu2  ;;  %v2721_v7 = vpop.f32.mrf.mxu1  ;;  %v7149_v45 = vld [vmem:[#allocation2 + $0xb0] sm:$0xf]  ;;  %vm11196_vm7 = vmmov %vm11191_vm0 }
 0x32b   : > { %v3699_v3 = vsel %vm11177_vm12, %v3650_v33, 0.0  ;;  %v3794_v63 = vsel %vm11179_vm4, %v3746_v26, 0.0  ;;  %4990 = vmatpush.bf16.msrb.mxu0 %v7980_v54  ;;  %v2719_v33 = vadd.f32 %v2718_v43, %v9763_v42  ;;  %v10081_v26 = vor.u32 %v7949_v16, %v7143_v32  ;;  %v7977_v43 = vld [vmem:[#allocation8 + $0x8] sm:$0xff]  ;;  %vm11197_vm12 = vmmov %vm11192_vm3 }
 0x32c   : > { %v3827_v24 = vpack.c.bf16 %v3699_v3, %v3699_v3  ;;  %v3954_v22 = vpack.c.bf16 %v3794_v63, %v3794_v63  ;;  %v3572_v31 = vadd.f32 %v10002_v27, %v3536_v21  ;;  %v3498_v37 = vpop.f32.mrf.mxu0  ;;  %v10083_v21 = vor.u32 %v7951_v60, %v7149_v45  ;;  %v7155_v45 = vld [vmem:[#allocation2 + $0xcc] sm:$0xf0]  ;;  %vm11199_vm4 = vmmov %vm11191_vm0 }
 0x32d   : > { %v3407_v25 = vpop.f32.mrf.mxu3  ;;  %11182 = vst [vmem:[#allocation25_spill] sm:$0xff] %v10081_v26  ;;  %vm11195_vm6 = vnez %v11082_v18 }
 0x32e   : > { %3859 = vst [vmem:[#allocation2 + $0x138] sm:$0xf] %v3827_v24  ;;  %v3604_v9 = vmax.f32 %v3572_v31, 0.0  ;;  %v3408_v11 = vadd.f32 %v3407_v25, %v3318_v53  ;;  %v11185_v31 = vld [vmem:[#allocation29_spill] sm:$0xff] }
 0x32f   : > { %3986 = vst [vmem:[#allocation2 + $0x134] sm:$0xf] %v3954_v22  ;;  %4991 = vmatpush.bf16.msrb.mxu0 %v7979_v20  ;;  %vm11186_vm1 = vnez %v11185_v31 }
 0x330   : > { %v3636_v36 = vrot.slane %v3604_v9, 7  ;;  %v3732_v35 = vrot.slane %v3604_v9, 1  ;;  %v3892_v55 = vpack.c.bf16 %v3604_v9, %v3604_v9  ;;  %v3497_v62 = vadd.f32 %v3496_v44, %v3408_v11 }
 0x332   : > { %v3649_v39 = vsel %vm11180_vm15, %v3635_v5, %v3636_v36  ;;  %v3745_v57 = vsel %vm11181_vm14, %v3731_v56, %v3732_v35  ;;  %3924 = vst [vmem:[#allocation2 + $0x148] sm:$0xf] %v3892_v55  ;;  %v3537_v61 = vadd.f32 %v3497_v62, %v2717_v19  ;;  %v3320_v4 = vpop.f32.mrf.mxu2  ;;  %v7978_v56 = vld [vmem:[#allocation8 + $0x10] sm:$0xff]  ;;  %v7976_v55 = vld [vmem:[#allocation8] sm:$0xff]  ;;  %v2722_v62 = vadd.f32 %v2721_v7, %v9766_v14  ;;  %vm11200_vm15 = vmmov %vm11192_vm3 }
 0x333   : > { %v3828_v49 = vpack.c.bf16 %v3649_v39, %v3649_v39  ;;  %v3955_v15 = vpack.c.bf16 %v3745_v57, %v3745_v57  ;;  %4992 = vmatpush.bf16.msrb.mxu0 %v7978_v56  ;;  %v8003_v39 = vld [vmem:[#allocation8 + $0xc0] sm:$0xff]  ;;  %v2723_v57 = vpop.f32.mrf.mxu1 }
 0x334   : > { %v3573_v6 = vadd.f32 %v10002_v27, %v3537_v61  ;;  %v3501_v63 = vpop.f32.mrf.mxu0  ;;  %4567 = vmatpush.bf16.msra.mxu1 %v8003_v39  ;;  %v7954_v56 = vld [vmem:[#allocation2 + $0xd0] sm:$0xf0] }
 0x335   : > { %3860 = vst [vmem:[#allocation2 + $0x144] sm:$0xf] %v3828_v49  ;;  %v3409_v44 = vpop.f32.mrf.mxu3 }
 0x336   : > { %3987 = vst [vmem:[#allocation2 + $0x140] sm:$0xf] %v3955_v15  ;;  %v3605_v5 = vmax.f32 %v3573_v6, 0.0  ;;  %v3410_v28 = vadd.f32 %v3409_v44, %v3320_v4  ;;  %v7357_v15 = vld [vmem:[#allocation2] sm:$0xf] }
 0x337   : > { %4687 = vmatmul.bf16.gmra.mxu2 %v10081_v26  ;;  %4993 = vmatpush.bf16.msrb.mxu0 %v7977_v43  ;;  %v7929_v6 = vld [vmem:[#allocation2 + $0x8] sm:$0xf0] }
 0x338   : > { %v3637_v52 = vrot.slane %v3605_v5, 7  ;;  %v3733_v30 = vrot.slane %v3605_v5, 1  ;;  %v3893_v3 = vpack.c.bf16 %v3605_v5, %v3605_v5  ;;  %v3499_v0 = vadd.f32 %v3498_v37, %v3410_v28 }
 0x339   : > { %v7358_v4 = vor.u32 %v7929_v6, %v7357_v15 }
 0x33a   : > { %v3648_v24 = vsel %vm11183_vm9, %v3636_v36, %v3637_v52  ;;  %v3744_v22 = vsel %vm11184_vm10, %v3732_v35, %v3733_v30  ;;  %3925 = vst [vmem:[#allocation2 + $0x154] sm:$0xf] %v3893_v3  ;;  %v3538_v42 = vadd.f32 %v3499_v0, %v2719_v33  ;;  %4776 = vmatmul.bf16.gmra.mxu3 %v10083_v21  ;;  %v3323_v19 = vpop.f32.mrf.mxu2  ;;  %v7952_v3 = vld [vmem:[#allocation2 + $0xc4] sm:$0xf]  ;;  %vm11204_vm10 = vmmov %vm11191_vm0 }
 0x33b   : > { %v3701_v53 = vsel %vm11186_vm1, %v3648_v24, 0.0  ;;  %v3796_v25 = vsel %vm11187_vm5, %v3744_v22, 0.0  ;;  %4994 = vmatpush.bf16.msrb.mxu0 %v7976_v55  ;;  %v10103_v24 = vor.u32 %v7952_v3, %v7155_v45  ;;  %v7957_v45 = vld [vmem:[#allocation2 + $0xe8] sm:$0xf0]  ;;  %vm11203_vm9 = vnez %v11087_v59  ;;  %vm11206_vm1 = vmmov %vm11191_vm0 }
 0x33c   : > { %v3829_v9 = vpack.c.bf16 %v3701_v53, %v3701_v53  ;;  %v3956_v11 = vpack.c.bf16 %v3796_v25, %v3796_v25  ;;  %v3574_v54 = vadd.f32 %v10002_v27, %v3538_v42  ;;  %v3503_v7 = vpop.f32.mrf.mxu0  ;;  %v2726_v25 = vpop.f32.mrf.mxu1  ;;  %v11205_v59 = vrot.slane %v9784_v8, 7  ;;  %vm11207_vm5 = vmmov %vm11192_vm3 }
 0x33d   : > { %v3412_v37 = vpop.f32.mrf.mxu3  ;;  %11190 = vst [vmem:[#allocation31_spill] sm:$0xff] %v10103_v24 }
 0x33e   : > { %3861 = vst [vmem:[#allocation2 + $0x150] sm:$0xf] %v3829_v9  ;;  %v3606_v36 = vmax.f32 %v3574_v54, 0.0  ;;  %v3413_v35 = vadd.f32 %v3412_v37, %v3323_v19  ;;  %4995 = vmatmul.bf16.vlgmr.msrb.gmra.mxu0 %v7358_v4 }
 0x33f   : > { %3988 = vst [vmem:[#allocation2 + $0x14c] sm:$0xf] %v3956_v11 }
 0x340   : > { %v3638_v61 = vrot.slane %v3606_v36, 7  ;;  %v3734_v20 = vrot.slane %v3606_v36, 1  ;;  %v3894_v38 = vpack.c.bf16 %v3606_v36, %v3606_v36  ;;  %v3502_v49 = vadd.f32 %v3501_v63, %v3413_v35  ;;  %v7161_v63 = vld [vmem:[#allocation2 + $0xc8] sm:$0xf] }
 0x341   : > { %v10105_v22 = vor.u32 %v7954_v56, %v7161_v63 }
 0x342   : > { %v3647_v32 = vsel %vm11188_vm11, %v3637_v52, %v3638_v61  ;;  %v3743_v60 = vsel %vm11189_vm8, %v3733_v30, %v3734_v20  ;;  %3926 = vst [vmem:[#allocation2 + $0x160] sm:$0xf] %v3894_v38  ;;  %v3539_v14 = vadd.f32 %v3502_v49, %v2722_v62  ;;  %v3325_v28 = vpop.f32.mrf.mxu2  ;;  %v2724_v30 = vadd.f32 %v2723_v57, %v9769_v40  ;;  %v11193_v40 = vld [vmem:[#allocation34_spill] sm:$0xff]  ;;  %vm11209_vm11 = vmmov %vm11192_vm3 }
 0x343   : > { %v3830_v44 = vpack.c.bf16 %v3647_v32, %v3647_v32  ;;  %v3957_v16 = vpack.c.bf16 %v3743_v60, %v3743_v60  ;;  %vm11194_vm13 = vnez %v11193_v40  ;;  %v2727_v38 = vadd.f32 %v2726_v25, %v9772_v29  ;;  %v7991_v32 = vld [vmem:[#allocation8 + $0x78] sm:$0xff] }
 0x344   : > { %v3575_v5 = vadd.f32 %v10002_v27, %v3539_v14  ;;  %v3506_v39 = vpop.f32.mrf.mxu0  ;;  %5076 = vmatpush.bf16.msrb.mxu1 %v7991_v32  ;;  %v11210_v32 = vld [vmem:[#allocation13_spill] sm:$0xff] }
 0x345   : > { %3862 = vst [vmem:[#allocation2 + $0x15c] sm:$0xf] %v3830_v44  ;;  %v3414_v33 = vpop.f32.mrf.mxu3  ;;  %vm11211_vm8 = vnez %v11210_v32 }
 0x346   : > { %3989 = vst [vmem:[#allocation2 + $0x158] sm:$0xf] %v3957_v16  ;;  %v3607_v0 = vmax.f32 %v3575_v5, 0.0  ;;  %v3415_v52 = vadd.f32 %v3414_v33, %v3325_v28  ;;  %v7167_v28 = vld [vmem:[#allocation2 + $0xe4] sm:$0xf0] }
 0x347   : > { %4692 = vmatmul.bf16.gmra.mxu2 %v10103_v24  ;;  %v7955_v33 = vld [vmem:[#allocation2 + $0xdc] sm:$0xf] }
 0x348   : > { %v3639_v42 = vrot.slane %v3607_v0, 7  ;;  %v3735_v43 = vrot.slane %v3607_v0, 1  ;;  %v3895_v31 = vpack.c.bf16 %v3607_v0, %v3607_v0  ;;  %v3504_v53 = vadd.f32 %v3503_v7, %v3415_v52  ;;  %v2728_v7 = vpop.f32.mrf.mxu1  ;;  %v7173_v52 = vld [vmem:[#allocation2 + $0xe0] sm:$0xf] }
 0x349   : > { %v2729_v63 = vadd.f32 %v2728_v7, %v9775_v58  ;;  %v11201_v58 = vld [vmem:[#allocation38_spill] sm:$0xff] }
 0x34a   : > { %v3646_v9 = vsel %vm11191_vm0, %v3638_v61, %v3639_v42  ;;  %v3742_v11 = vsel %vm11192_vm3, %v3734_v20, %v3735_v43  ;;  %3927 = vst [vmem:[#allocation2 + $0x16c] sm:$0xf] %v3895_v31  ;;  %v3540_v54 = vadd.f32 %v3504_v53, %v2724_v30  ;;  %4781 = vmatmul.bf16.gmra.mxu3 %v10105_v22  ;;  %v3328_v62 = vpop.f32.mrf.mxu2 }
 0x34b   : > { %v3703_v19 = vsel %vm11194_vm13, %v3646_v9, 0.0  ;;  %v3798_v37 = vsel %vm11195_vm6, %v3742_v11, 0.0  ;;  %vm11202_vm14 = vnez %v11201_v58 }
 0x34c   : > { %v3831_v36 = vpack.c.bf16 %v3703_v19, %v3703_v19  ;;  %v3958_v35 = vpack.c.bf16 %v3798_v37, %v3798_v37  ;;  %v3576_v55 = vadd.f32 %v10002_v27, %v3540_v54  ;;  %v3508_v30 = vpop.f32.mrf.mxu0 }
 0x34d   : > { %v3417_v57 = vpop.f32.mrf.mxu3 }
 0x34e   : > { %3863 = vst [vmem:[#allocation2 + $0x168] sm:$0xf] %v3831_v36  ;;  %v3608_v61 = vmax.f32 %v3576_v55, 0.0  ;;  %v3418_v20 = vadd.f32 %v3417_v57, %v3328_v62 }
 0x34f   : > { %3990 = vst [vmem:[#allocation2 + $0x164] sm:$0xf] %v3958_v35 }
 0x350   : > { %v3640_v49 = vrot.slane %v3608_v61, 7  ;;  %v3736_v15 = vrot.slane %v3608_v61, 1  ;;  %v3896_v6 = vpack.c.bf16 %v3608_v61, %v3608_v61  ;;  %v3507_v4 = vadd.f32 %v3506_v39, %v3418_v20 }
 0x352   : > { %v3645_v18 = vsel %vm11196_vm7, %v3639_v42, %v3640_v49  ;;  %v3741_v60 = vsel %vm11197_vm12, %v3735_v43, %v3736_v15  ;;  %3928 = vst [vmem:[#allocation2 + $0x178] sm:$0xf] %v3896_v6  ;;  %v3541_v14 = vadd.f32 %v3507_v4, %v2727_v38  ;;  %v3330_v5 = vpop.f32.mrf.mxu2  ;;  %v10125_v42 = vor.u32 %v7955_v33, %v7167_v28 }
 0x353   : > { %v3832_v44 = vpack.c.bf16 %v3645_v18, %v3645_v18  ;;  %v3959_v16 = vpack.c.bf16 %v3741_v60, %v3741_v60  ;;  %v10127_v43 = vor.u32 %v7957_v45, %v7173_v52  ;;  %v11208_v6 = vrot.slane %v9784_v8, 1  ;;  %v7960_v8 = vld [vmem:[#allocation2 + $0x100] sm:$0xf0] }
 0x354   : > { %v3577_v29 = vadd.f32 %v10002_v27, %v3541_v14  ;;  %11198 = vst [vmem:[#allocation30_spill] sm:$0xff] %v10125_v42  ;;  %v7932_v52 = vld [vmem:[#allocation2 + $0x20] sm:$0xf0] }
 0x355   : > { %3864 = vst [vmem:[#allocation2 + $0x174] sm:$0xf] %v3832_v44  ;;  %v3419_v56 = vpop.f32.mrf.mxu3 }
 0x356   : > { %3991 = vst [vmem:[#allocation2 + $0x170] sm:$0xf] %v3959_v16  ;;  %v3609_v3 = vmax.f32 %v3577_v29, 0.0  ;;  %v3420_v0 = vadd.f32 %v3419_v56, %v3330_v5  ;;  %v7179_v5 = vld [vmem:[#allocation2 + $0xfc] sm:$0xf0] }
 0x357   : > { %4697 = vmatmul.bf16.gmra.mxu2 %v10125_v42  ;;  %v10164_v45 = vor.u32 %v7958_v1, %v7179_v5  ;;  %v7185_v56 = vld [vmem:[#allocation2 + $0xf8] sm:$0xf]  ;;  %v7969_v5 = vld [vmem:[#allocation2 + $0x148] sm:$0xf0]  ;;  %v7930_v42 = vld [vmem:[#allocation2 + $0x10] sm:$0xf0] }
 0x358   : > { %v3641_v31 = vrot.slane %v3609_v3, 7  ;;  %v3737_v53 = vrot.slane %v3609_v3, 1  ;;  %v3897_v25 = vpack.c.bf16 %v3609_v3, %v3609_v3  ;;  %v3509_v9 = vadd.f32 %v3508_v30, %v3420_v0  ;;  %v7990_v30 = vld [vmem:[#allocation8 + $0x70] sm:$0xff] }
 0x359   : > { %11212 = vst [vmem:[#allocation15_spill] sm:$0xff] %v10164_v45  ;;  %v10166_v47 = vor.u32 %v7960_v8, %v7185_v56  ;;  %5077 = vmatpush.bf16.msrb.mxu1 %v7990_v30  ;;  %v7967_v8 = vld [vmem:[#allocation2 + $0x13c] sm:$0xf]  ;;  %v7221_v56 = vld [vmem:[#allocation2 + $0x140] sm:$0xf] }
 0x35a   : > { %v3644_v11 = vsel %vm11199_vm4, %v3640_v49, %v3641_v31  ;;  %v3740_v54 = vsel %vm11200_vm15, %v3736_v15, %v3737_v53  ;;  %3929 = vst [vmem:[#allocation2 + $0x184] sm:$0xf] %v3897_v25  ;;  %v3542_v40 = vadd.f32 %v3509_v9, %v2729_v63  ;;  %4786 = vmatmul.bf16.gmra.mxu3 %v10127_v43  ;;  %v10140_v62 = vpop.f32.mrf.mxu2  ;;  %v7963_v9 = vld [vmem:[#allocation2 + $0x118] sm:$0xf0]  ;;  %v7941_v30 = vld [vmem:[#allocation2 + $0x68] sm:$0xf0] }
 0x35b   : > { %v3705_v19 = vsel %vm11202_vm14, %v3644_v11, 0.0  ;;  %v3800_v37 = vsel %vm11203_vm9, %v3740_v54, 0.0  ;;  %v7961_v11 = vld [vmem:[#allocation2 + $0x10c] sm:$0xf] }
 0x35c   : > { %v3833_v36 = vpack.c.bf16 %v3705_v19, %v3705_v19  ;;  %v3960_v35 = vpack.c.bf16 %v3800_v37, %v3800_v37  ;;  %v3578_v55 = vadd.f32 %v10002_v27, %v3542_v40  ;;  %v7197_v40 = vld [vmem:[#allocation2 + $0x110] sm:$0xf]  ;;  %v7935_v19 = vld [vmem:[#allocation2 + $0x38] sm:$0xf0] }
 0x35d   : > { %v10142_v39 = vpop.f32.mrf.mxu3  ;;  %v10180_v58 = vor.u32 %v7963_v9, %v7197_v40  ;;  %v7998_v40 = vld [vmem:[#allocation8 + $0xb0] sm:$0xff] }
 0x35e   : > { %3865 = vst [vmem:[#allocation2 + $0x180] sm:$0xf] %v3833_v36  ;;  %v3610_v57 = vmax.f32 %v3578_v55, 0.0 }
 0x35f   : > { %3992 = vst [vmem:[#allocation2 + $0x17c] sm:$0xf] %v3960_v35  ;;  %v7081_v35 = vld [vmem:[#allocation2 + $0x30] sm:$0xf] }
 0x360   : > { %v3642_v61 = vrot.slane %v3610_v57, 7  ;;  %v3738_v20 = vrot.slane %v3610_v57, 1  ;;  %v3898_v38 = vpack.c.bf16 %v3610_v57, %v3610_v57  ;;  %v7082_v55 = vor.u32 %v7935_v19, %v7081_v35  ;;  %v8081_v19 = vld [vmem:[#allocation8 + $0x1b0] sm:$0xff] }
 0x362   : > { %v3643_v49 = vsel %vm11204_vm10, %v3641_v31, %v3642_v61  ;;  %v3674_v15 = vsel %vm11206_vm1, %v3642_v61, %v11205_v59  ;;  %v3739_v27 = vsel %vm11207_vm5, %v3737_v53, %v3738_v20  ;;  %v3770_v4 = vsel %vm11209_vm11, %v3738_v20, %v11208_v6  ;;  %3930 = vst [vmem:[#allocation2 + $0x190] sm:$0xf] %v3898_v38  ;;  %v10160_v29 = vpop.f32.mrf.mxu2  ;;  %v7191_v53 = vld [vmem:[#allocation2 + $0x114] sm:$0xf0]  ;;  %v7203_v61 = vld [vmem:[#allocation2 + $0x12c] sm:$0xf0] }
 0x363   : > { %v3675_v18 = vsel %vm11211_vm8, %v3674_v15, 0.0  ;;  %v3802_v60 = vsel %vm9687_vm2, %v3770_v4, 0.0  ;;  %v3834_v14 = vpack.c.bf16 %v3643_v49, %v3643_v49  ;;  %v3961_v44 = vpack.c.bf16 %v3739_v27, %v3739_v27  ;;  %v7966_v38 = vld [vmem:[#allocation2 + $0x130] sm:$0xf0]  ;;  %v7964_v49 = vld [vmem:[#allocation2 + $0x124] sm:$0xf] }
 0x364   : > { %v3803_v16 = vpack.c.bf16 %v3675_v18, %v3675_v18  ;;  %v3962_v7 = vpack.c.bf16 %v3802_v60, %v3802_v60  ;;  %v10178_v54 = vor.u32 %v7961_v11, %v7191_v53  ;;  %v10192_v59 = vor.u32 %v7964_v49, %v7203_v61  ;;  %v7209_v15 = vld [vmem:[#allocation2 + $0x128] sm:$0xf]  ;;  %v7938_v6 = vld [vmem:[#allocation2 + $0x50] sm:$0xf0]  ;;  %v7105_v11 = vld [vmem:[#allocation2 + $0x60] sm:$0xf] }
 0x365   : > { %3866 = vst [vmem:[#allocation2 + $0x18c] sm:$0xf] %v3834_v14  ;;  %v10162_v28 = vpop.f32.mrf.mxu3  ;;  %v10194_v27 = vor.u32 %v7966_v38, %v7209_v15  ;;  %v7093_v18 = vld [vmem:[#allocation2 + $0x48] sm:$0xf]  ;;  %v7989_v14 = vld [vmem:[#allocation8 + $0x68] sm:$0xff]  ;;  %v7106_v35 = vor.u32 %v7941_v30, %v7105_v11 }
 0x366   : > { %3835 = vst [vmem:[#allocation2 + $0x18] sm:$0xf] %v3803_v16  ;;  %v7094_v60 = vor.u32 %v7938_v6, %v7093_v18  ;;  %5078 = vmatpush.bf16.msrb.mxu1 %v7989_v14  ;;  %v7215_v16 = vld [vmem:[#allocation2 + $0x144] sm:$0xf0]  ;;  %v8080_v61 = vld [vmem:[#allocation8 + $0x1a8] sm:$0xff]  ;;  %v8079_v18 = vld [vmem:[#allocation8 + $0x1a0] sm:$0xff] }
 0x367   : > { %3993 = vst [vmem:[#allocation2 + $0x188] sm:$0xf] %v3961_v44  ;;  %4702 = vmatmul.bf16.gmra.mxu2 %v10164_v45  ;;  %v10206_v1 = vor.u32 %v7967_v8, %v7215_v16  ;;  %v7227_v49 = vld [vmem:[#allocation2 + $0x15c] sm:$0xf0]  ;;  %v7972_v6 = vld [vmem:[#allocation2 + $0x160] sm:$0xf0] }
 0x368   : > { %3994 = vst [vmem:[#allocation2 + $0x194] sm:$0xf] %v3962_v7  ;;  %v7996_v14 = vld [vmem:[#allocation8 + $0xa0] sm:$0xff] }
 0x369   : > { %11213 = vst [vmem:[#allocation36_spill] sm:$0xff] %v10178_v54 }
 0x36a   : > { %4791 = vmatmul.bf16.gmra.mxu3 %v10166_v47  ;;  %v10170_v33 = vpop.f32.mrf.mxu2  ;;  %11214 = vst [vmem:[#allocation35_spill] sm:$0xff] %v10192_v59 }
 0x36b   : > { %11215 = vst [vmem:[#allocation40_spill] sm:$0xff] %v10194_v27 }
 0x36c   : > { %11216 = vst [vmem:[#allocation39_spill] sm:$0xff] %v10206_v1 }
 0x36d   : > { %v10172_v3 = vpop.f32.mrf.mxu3  ;;  %v7069_v0 = vld [vmem:[#allocation2 + $0x18] sm:$0xf] }
 0x36e   : > { %v7070_v63 = vor.u32 %v7932_v52, %v7069_v0  ;;  %v10208_v0 = vor.u32 %v7969_v5, %v7221_v56  ;;  %v7999_v52 = vld [vmem:[#allocation8 + $0xb8] sm:$0xff]  ;;  %v7233_v5 = vld [vmem:[#allocation2 + $0x158] sm:$0xf] }
 0x36f   : > { %5165 = vmatpush.bf16.msra.mxu2 %v7999_v52  ;;  %v10222_v8 = vor.u32 %v7972_v6, %v7233_v5  ;;  %v7995_v56 = vld [vmem:[#allocation8 + $0x98] sm:$0xff]  ;;  %v7993_v6 = vld [vmem:[#allocation8 + $0x88] sm:$0xff]  ;;  %v8075_v5 = vld [vmem:[#allocation8 + $0x180] sm:$0xff] }
 0x370   : > { %4568 = vmatmul.bf16.vlgmr.msra.gmra.mxu1 %v7070_v63  ;;  %5000 = vmatmul.bf16.gmra.mxu0 %v7070_v63  ;;  %11217 = vst [vmem:[#allocation43_spill] sm:$0xff] %v10208_v0  ;;  %v8082_v63 = vld [vmem:[#allocation8 + $0x1b8] sm:$0xff] }
 0x371   : > { %5767 = vmatpush.bf16.msra.mxu3 %v8082_v63  ;;  %11219 = vst [vmem:[#allocation16_spill] sm:$0xff] %v10222_v8  ;;  %v8078_v52 = vld [vmem:[#allocation8 + $0x198] sm:$0xff]  ;;  %v7944_v63 = vld [vmem:[#allocation2 + $0x80] sm:$0xf0] }
 0x372   : > { %v10174_v31 = vpop.f32.mrf.mxu2 }
 0x373   : > { %5166 = vmatpush.bf16.msra.mxu2 %v7998_v40  ;;  %v7117_v40 = vld [vmem:[#allocation2 + $0x78] sm:$0xf] }
 0x375   : > { %v10176_v25 = vpop.f32.mrf.mxu3  ;;  %5768 = vmatpush.bf16.msra.mxu3 %v8081_v19  ;;  %v8077_v19 = vld [vmem:[#allocation8 + $0x190] sm:$0xff] }
 0x377   : > { %4707 = vmatmul.bf16.gmra.mxu2 %v10178_v54  ;;  %v7141_v54 = vld [vmem:[#allocation2 + $0xa8] sm:$0xf] }
 0x379   : > { %5769 = vmatpush.bf16.msra.mxu3 %v8080_v61  ;;  %v7988_v61 = vld [vmem:[#allocation8 + $0x60] sm:$0xff] }
 0x37a   : > { %4796 = vmatmul.bf16.gmra.mxu3 %v10180_v58  ;;  %v10184_v37 = vpop.f32.mrf.mxu2  ;;  %5079 = vmatpush.bf16.msrb.mxu1 %v7988_v61  ;;  %v7129_v61 = vld [vmem:[#allocation2 + $0x90] sm:$0xf] }
 0x37d   : > { %v10186_v36 = vpop.f32.mrf.mxu3  ;;  %5770 = vmatpush.bf16.msra.mxu3 %v8079_v18 }
 0x380   : > { %4573 = vmatmul.bf16.gmra.mxu1 %v7082_v55  ;;  %5005 = vmatmul.bf16.gmra.mxu0 %v7082_v55  ;;  %v7997_v55 = vld [vmem:[#allocation8 + $0xa8] sm:$0xff] }
 0x381   : > { %5167 = vmatpush.bf16.msra.mxu2 %v7997_v55  ;;  %5771 = vmatpush.bf16.msra.mxu3 %v8078_v52  ;;  %v7994_v55 = vld [vmem:[#allocation8 + $0x90] sm:$0xff]  ;;  %v7973_v52 = vld [vmem:[#allocation2 + $0x16c] sm:$0xf] }
 0x382   : > { %v10188_v57 = vpop.f32.mrf.mxu2 }
 0x385   : > { %v10190_v20 = vpop.f32.mrf.mxu3  ;;  %5168 = vmatpush.bf16.msra.mxu2 %v7996_v14  ;;  %5772 = vmatpush.bf16.msra.mxu3 %v8077_v19  ;;  %v7975_v14 = vld [vmem:[#allocation2 + $0x178] sm:$0xf0] }
 0x386   : > { %v7947_v19 = vld [vmem:[#allocation2 + $0x98] sm:$0xf0] }
 0x387   : > { %4712 = vmatmul.bf16.gmra.mxu2 %v10192_v59 }
 0x389   : > { %5169 = vmatpush.bf16.msra.mxu2 %v7995_v56  ;;  %v7992_v56 = vld [vmem:[#allocation8 + $0x80] sm:$0xff] }
 0x38a   : > { %4801 = vmatmul.bf16.gmra.mxu3 %v10194_v27  ;;  %v10198_v4 = vpop.f32.mrf.mxu2 }
 0x38d   : > { %v10200_v32 = vpop.f32.mrf.mxu3  ;;  %5170 = vmatpush.bf16.msra.mxu2 %v7994_v55 }
 0x390   : > { %4578 = vmatmul.bf16.gmra.mxu1 %v7094_v60  ;;  %5010 = vmatmul.bf16.gmra.mxu0 %v7094_v60  ;;  %v7970_v60 = vld [vmem:[#allocation2 + $0x154] sm:$0xf] }
 0x391   : > { %v10220_v16 = vor.u32 %v7970_v60, %v7227_v49  ;;  %v8076_v49 = vld [vmem:[#allocation8 + $0x188] sm:$0xff]  ;;  %5171 = vmatpush.bf16.msra.mxu2 %v7993_v6  ;;  %v7251_v6 = vld [vmem:[#allocation2 + $0x18c] sm:$0xf0] }
 0x392   : > { %v10202_v44 = vpop.f32.mrf.mxu2  ;;  %v7239_v60 = vld [vmem:[#allocation2 + $0x174] sm:$0xf0]  ;;  %5773 = vmatpush.bf16.msra.mxu3 %v8076_v49  ;;  %v7130_v49 = vor.u32 %v7947_v19, %v7129_v61  ;;  %v7987_v61 = vld [vmem:[#allocation8 + $0x58] sm:$0xff] }
 0x393   : > { %11218 = vst [vmem:[#allocation42_spill] sm:$0xff] %v10220_v16  ;;  %5080 = vmatpush.bf16.msrb.mxu1 %v7987_v61 }
 0x395   : > { %v10204_v7 = vpop.f32.mrf.mxu3  ;;  %5172 = vmatpush.bf16.msra.mxu2 %v7992_v56  ;;  %v7950_v56 = vld [vmem:[#allocation2 + $0xb0] sm:$0xf0] }
 0x396   : > { %5774 = vmatpush.bf16.msra.mxu3 %v8075_v5  ;;  %v7142_v45 = vor.u32 %v7950_v56, %v7141_v54  ;;  %v7953_v54 = vld [vmem:[#allocation2 + $0xc8] sm:$0xf0] }
 0x397   : > { %4717 = vmatmul.bf16.gmra.mxu2 %v10206_v1  ;;  %5081 = vmatpush.bf16.msrb.mxu1 %v7986_v2 }
 0x39a   : > { %4806 = vmatmul.bf16.gmra.mxu3 %v10208_v0  ;;  %v10212_v53 = vpop.f32.mrf.mxu2 }
 0x39d   : > { %v10214_v9 = vpop.f32.mrf.mxu3 }
 0x3a0   : > { %4583 = vmatmul.bf16.gmra.mxu1 %v7106_v35  ;;  %5015 = vmatmul.bf16.gmra.mxu0 %v7106_v35  ;;  %v7118_v35 = vor.u32 %v7944_v63, %v7117_v40  ;;  %v10234_v63 = vor.u32 %v7973_v52, %v7239_v60  ;;  %v7245_v40 = vld [vmem:[#allocation2 + $0x170] sm:$0xf]  ;;  %v8002_v52 = vld [vmem:[#allocation2 + $0x190] sm:$0xf0] }
 0x3a2   : > { %v10216_v38 = vpop.f32.mrf.mxu2  ;;  %11220 = vst [vmem:[#allocation41_spill] sm:$0xff] %v10234_v63 }
 0x3a5   : > { %v10218_v15 = vpop.f32.mrf.mxu3 }
 0x3a7   : > { %4722 = vmatmul.bf16.gmra.mxu2 %v10220_v16 }
 0x3aa   : > { %4811 = vmatmul.bf16.gmra.mxu3 %v10222_v8  ;;  %v10226_v30 = vpop.f32.mrf.mxu2 }
 0x3ad   : > { %v10228_v11 = vpop.f32.mrf.mxu3 }
 0x3b0   : > { %4588 = vmatmul.bf16.gmra.mxu1 %v7118_v35  ;;  %5020 = vmatmul.bf16.gmra.mxu0 %v7118_v35  ;;  %v10236_v35 = vor.u32 %v7975_v14, %v7245_v40  ;;  %v7257_v14 = vld [vmem:[#allocation2 + $0x188] sm:$0xf]  ;;  %v8000_v40 = vld [vmem:[#allocation2 + $0x184] sm:$0xf] }
 0x3b1   : > { %v7258_v5 = vor.u32 %v8002_v52, %v7257_v14  ;;  %v7465_v14 = vld [vmem:[#allocation2 + $0x30] sm:$0xf] }
 0x3b2   : > { %v10230_v18 = vpop.f32.mrf.mxu2  ;;  %11221 = vst [vmem:[#allocation18_spill] sm:$0xff] %v10236_v35 }
 0x3b5   : > { %v10232_v16 = vpop.f32.mrf.mxu3 }
 0x3b7   : > { %4727 = vmatmul.bf16.gmra.mxu2 %v10234_v63  ;;  %v7254_v63 = vor.u32 %v8000_v40, %v7251_v6  ;;  %v8028_v6 = vld [vmem:[#allocation2 + $0x38] sm:$0xf0] }
 0x3ba   : > { %4816 = vmatmul.bf16.gmra.mxu3 %v10236_v35  ;;  %v10240_v55 = vpop.f32.mrf.mxu2  ;;  %v8031_v35 = vld [vmem:[#allocation2 + $0x50] sm:$0xf0] }
 0x3bb   : > { %v4996_v40 = vpop.f32.mrf.mxu0 }
 0x3bd   : > { %v10242_v1 = vpop.f32.mrf.mxu3 }
 0x3c0   : > { %4593 = vmatmul.bf16.gmra.mxu1 %v7130_v49  ;;  %5025 = vmatmul.bf16.gmra.mxu0 %v7130_v49  ;;  %v7365_v49 = vld [vmem:[#allocation2 + $0x8] sm:$0xf] }
 0x3c1   : > { %v7366_v26 = vor.u32 %v7930_v42, %v7365_v49  ;;  %v7477_v42 = vld [vmem:[#allocation2 + $0x48] sm:$0xf] }
 0x3c2   : > { %v10244_v60 = vpop.f32.mrf.mxu2 }
 0x3c3   : > { %v4998_v61 = vpop.f32.mrf.mxu0 }
 0x3c5   : > { %v10246_v59 = vpop.f32.mrf.mxu3 }
 0x3c7   : > { %4732 = vmatmul.bf16.gmra.mxu2 %v7254_v63  ;;  %v7466_v63 = vor.u32 %v8028_v6, %v7465_v14  ;;  %v7478_v6 = vor.u32 %v8031_v35, %v7477_v42  ;;  %v8034_v42 = vld [vmem:[#allocation2 + $0x68] sm:$0xf0] }
 0x3ca   : > { %4821 = vmatmul.bf16.gmra.mxu3 %v7258_v5  ;;  %v10248_v19 = vpop.f32.mrf.mxu2  ;;  %v7153_v5 = vld [vmem:[#allocation2 + $0xc0] sm:$0xf] }
 0x3cd   : > { %v10250_v24 = vpop.f32.mrf.mxu3 }
 0x3d0   : > { %4598 = vmatmul.bf16.gmra.mxu1 %v7142_v45  ;;  %5030 = vmatmul.bf16.gmra.mxu0 %v7142_v45  ;;  %v7154_v45 = vor.u32 %v7953_v54, %v7153_v5 }
 0x3d2   : > { %v10252_v52 = vpop.f32.mrf.mxu2 }
 0x3d5   : > { %v10254_v56 = vpop.f32.mrf.mxu3 }
 0x3d7   : > { %5173 = vmatmul.bf16.vlgmr.msra.gmra.mxu2 %v7366_v26  ;;  %v7956_v26 = vld [vmem:[#allocation2 + $0xe0] sm:$0xf0] }
 0x3da   : > { %5775 = vmatmul.bf16.vlgmr.msra.gmra.mxu3 %v7466_v63  ;;  %v10256_v46 = vpop.f32.mrf.mxu2 }
 0x3dd   : > { %v10258_v49 = vpop.f32.mrf.mxu3 }
 0x3e0   : > { %4603 = vmatmul.bf16.gmra.mxu1 %v7154_v45  ;;  %5035 = vmatmul.bf16.gmra.mxu0 %v7154_v45  ;;  %v7166_v45 = vor.u32 %v7956_v26, %v7165_v13 }
 0x3e2   : > { %v10261_v14 = vpop.f32.mrf.mxu2 }
 0x3e5   : > { %v10265_v0 = vpop.f32.mrf.mxu3 }
 0x3e7   : > { %5178 = vmatmul.bf16.gmra.mxu2 %v9931_v23 }
 0x3ea   : > { %5780 = vmatmul.bf16.gmra.mxu3 %v7478_v6  ;;  %v10270_v27 = vpop.f32.mrf.mxu2 }
 0x3ed   : > { %v4569_v63 = vpop.f32.mrf.mxu1  ;;  %v5001_v5 = vpop.f32.mrf.mxu0 }
 0x3ee   : > { %v4659_v54 = vadd.f32 %v10140_v62, %v4569_v63  ;;  %v7489_v62 = vld [vmem:[#allocation2 + $0x60] sm:$0xf]  ;;  %v7959_v63 = vld [vmem:[#allocation2 + $0xf8] sm:$0xf0]  ;;  %v10276_v2 = vpop.f32.mrf.mxu3 }
 0x3ef   : > { %v7490_v26 = vor.u32 %v8034_v42, %v7489_v62 }
 0x3f0   : > { %v4748_v8 = vadd.f32 %v10142_v39, %v4659_v54  ;;  %4608 = vmatmul.bf16.gmra.mxu1 %v7166_v45  ;;  %5040 = vmatmul.bf16.gmra.mxu0 %v7166_v45 }
 0x3f2   : > { %v10267_v35 = vadd.f32 %v4996_v40, %v4748_v8  ;;  %v7177_v40 = vld [vmem:[#allocation2 + $0xf0] sm:$0xf] }
 0x3f3   : > { %v7178_v45 = vor.u32 %v7959_v63, %v7177_v40 }
 0x3f5   : > { %v4571_v23 = vpop.f32.mrf.mxu1  ;;  %v5003_v41 = vpop.f32.mrf.mxu0 }
 0x3f6   : > { %v4661_v6 = vadd.f32 %v10160_v29, %v4571_v23 }
 0x3f7   : > { %5183 = vmatmul.bf16.gmra.mxu2 %v9959_v17 }
 0x3f8   : > { %v4750_v13 = vadd.f32 %v10162_v28, %v4661_v6  ;;  %v10280_v28 = vpop.f32.mrf.mxu2  ;;  %v10284_v6 = vpop.f32.mrf.mxu3 }
 0x3fa   : > { %5785 = vmatmul.bf16.gmra.mxu3 %v7490_v26  ;;  %v10274_v39 = vadd.f32 %v4998_v61, %v4750_v13  ;;  %v8037_v61 = vld [vmem:[#allocation2 + $0x80] sm:$0xf0]  ;;  %v7501_v26 = vld [vmem:[#allocation2 + $0x78] sm:$0xf] }
 0x3fd   : > { %v4574_v8 = vpop.f32.mrf.mxu1  ;;  %v5006_v29 = vpop.f32.mrf.mxu0 }
 0x3fe   : > { %v4664_v54 = vadd.f32 %v10170_v33, %v4574_v8  ;;  %v7502_v8 = vor.u32 %v8037_v61, %v7501_v26 }
 0x400   : > { %v4753_v23 = vadd.f32 %v10172_v3, %v4664_v54  ;;  %4613 = vmatmul.bf16.gmra.mxu1 %v7178_v45  ;;  %5045 = vmatmul.bf16.gmra.mxu0 %v7178_v45  ;;  %v10291_v63 = vpop.f32.mrf.mxu2  ;;  %v7189_v54 = vld [vmem:[#allocation2 + $0x108] sm:$0xf] }
 0x402   : > { %v10282_v42 = vadd.f32 %v5001_v5, %v4753_v23  ;;  %v7962_v5 = vld [vmem:[#allocation2 + $0x110] sm:$0xf0] }
 0x404   : > { %11222 = vst [vmem:[#allocation44_spill] sm:$0xff] %v10282_v42  ;;  %v7190_v42 = vor.u32 %v7962_v5, %v7189_v54  ;;  %v7201_v54 = vld [vmem:[#allocation2 + $0x120] sm:$0xf] }
 0x405   : > { %v4576_v17 = vpop.f32.mrf.mxu1  ;;  %v5008_v13 = vpop.f32.mrf.mxu0 }
 0x406   : > { %v4666_v62 = vadd.f32 %v10174_v31, %v4576_v17  ;;  %v10294_v31 = vpop.f32.mrf.mxu3 }
 0x407   : > { %5188 = vmatmul.bf16.gmra.mxu2 %v9985_v50 }
 0x408   : > { %v4755_v33 = vadd.f32 %v10176_v25, %v4666_v62  ;;  %v7985_v25 = vld [vmem:[#allocation8 + $0x48] sm:$0xff] }
 0x409   : > { %5082 = vmatpush.bf16.msrb.mxu1 %v7985_v25  ;;  %v8040_v62 = vld [vmem:[#allocation2 + $0x98] sm:$0xf0] }
 0x40a   : > { %5790 = vmatmul.bf16.gmra.mxu3 %v7502_v8  ;;  %v10289_v3 = vadd.f32 %v5003_v41, %v4755_v33  ;;  %v10299_v41 = vpop.f32.mrf.mxu2 }
 0x40d   : > { %v4579_v40 = vpop.f32.mrf.mxu1  ;;  %v5011_v23 = vpop.f32.mrf.mxu0 }
 0x40e   : > { %v4669_v45 = vadd.f32 %v10184_v37, %v4579_v40  ;;  %v7513_v37 = vld [vmem:[#allocation2 + $0x90] sm:$0xf] }
 0x40f   : > { %v7514_v5 = vor.u32 %v8040_v62, %v7513_v37 }
 0x410   : > { %v4758_v17 = vadd.f32 %v10186_v36, %v4669_v45  ;;  %4618 = vmatmul.bf16.gmra.mxu1 %v7190_v42  ;;  %5050 = vmatmul.bf16.gmra.mxu0 %v7190_v42  ;;  %v10304_v36 = vpop.f32.mrf.mxu3 }
 0x412   : > { %v10297_v50 = vadd.f32 %v5006_v29, %v4758_v17  ;;  %v7965_v29 = vld [vmem:[#allocation2 + $0x128] sm:$0xf0] }
 0x413   : > { %v7202_v25 = vor.u32 %v7965_v29, %v7201_v54 }
 0x415   : > { %v4581_v61 = vpop.f32.mrf.mxu1  ;;  %v5013_v33 = vpop.f32.mrf.mxu0 }
 0x416   : > { %v4671_v26 = vadd.f32 %v10188_v57, %v4581_v61  ;;  %v10309_v57 = vpop.f32.mrf.mxu2 }
 0x417   : > { %5193 = vmatmul.bf16.gmra.mxu2 %v10016_v10 }
 0x418   : > { %v4760_v8 = vadd.f32 %v10190_v20, %v4671_v26  ;;  %v8090_v20 = vld [vmem:[#allocation8 + $0x1f8] sm:$0xff]  ;;  %v10314_v62 = vpop.f32.mrf.mxu3  ;;  %v8043_v26 = vld [vmem:[#allocation2 + $0xb0] sm:$0xf0] }
 0x419   : > { %5856 = vmatpush.bf16.msra.mxu0 %v8090_v20 }
 0x41a   : > { %5795 = vmatmul.bf16.gmra.mxu3 %v7514_v5  ;;  %v10306_v42 = vadd.f32 %v5008_v13, %v4760_v8  ;;  %v7525_v5 = vld [vmem:[#allocation2 + $0xa8] sm:$0xf] }
 0x41d   : > { %v4584_v40 = vpop.f32.mrf.mxu1  ;;  %v5016_v17 = vpop.f32.mrf.mxu0 }
 0x41e   : > { %v4674_v45 = vadd.f32 %v10198_v4, %v4584_v40  ;;  %v8089_v4 = vld [vmem:[#allocation8 + $0x1f0] sm:$0xff]  ;;  %v7526_v40 = vor.u32 %v8043_v26, %v7525_v5  ;;  %v10318_v54 = vpop.f32.mrf.mxu2  ;;  %v8087_v26 = vld [vmem:[#allocation8 + $0x1e0] sm:$0xff] }
 0x41f   : > { %5857 = vmatpush.bf16.msra.mxu0 %v8089_v4  ;;  %v7984_v4 = vld [vmem:[#allocation8 + $0x40] sm:$0xff] }
 0x420   : > { %v4763_v61 = vadd.f32 %v10200_v32, %v4674_v45  ;;  %4623 = vmatmul.bf16.gmra.mxu1 %v7202_v25  ;;  %5055 = vmatmul.bf16.gmra.mxu0 %v7202_v25  ;;  %v8088_v32 = vld [vmem:[#allocation8 + $0x1e8] sm:$0xff]  ;;  %v7968_v45 = vld [vmem:[#allocation2 + $0x140] sm:$0xf0] }
 0x421   : > { %5083 = vmatpush.bf16.msrb.mxu1 %v7984_v4 }
 0x422   : > { %v10312_v10 = vadd.f32 %v5011_v23, %v4763_v61  ;;  %v7213_v61 = vld [vmem:[#allocation2 + $0x138] sm:$0xf] }
 0x423   : > { %5858 = vmatpush.bf16.msra.mxu0 %v8088_v32 }
 0x425   : > { %v4586_v13 = vpop.f32.mrf.mxu1  ;;  %v5018_v8 = vpop.f32.mrf.mxu0 }
 0x426   : > { %v4676_v37 = vadd.f32 %v10202_v44, %v4586_v13  ;;  %v10323_v44 = vpop.f32.mrf.mxu3  ;;  %v10329_v5 = vpop.f32.mrf.mxu2 }
 0x427   : > { %5198 = vmatmul.bf16.gmra.mxu2 %v10039_v34  ;;  %5859 = vmatpush.bf16.msra.mxu0 %v8087_v26  ;;  %v8086_v34 = vld [vmem:[#allocation8 + $0x1d8] sm:$0xff]  ;;  %v7971_v26 = vld [vmem:[#allocation2 + $0x158] sm:$0xf0] }
 0x428   : > { %v4765_v29 = vadd.f32 %v10204_v7, %v4676_v37  ;;  %v7214_v7 = vor.u32 %v7968_v45, %v7213_v61  ;;  %v8085_v45 = vld [vmem:[#allocation8 + $0x1d0] sm:$0xff] }
 0x42a   : > { %5800 = vmatmul.bf16.gmra.mxu3 %v7526_v40  ;;  %v10321_v23 = vadd.f32 %v5013_v33, %v4765_v29  ;;  %v8046_v40 = vld [vmem:[#allocation2 + $0xc8] sm:$0xf0] }
 0x42b   : > { %5860 = vmatpush.bf16.msra.mxu0 %v8086_v34 }
 0x42c   : > { %11223 = vst [vmem:[#allocation20_spill] sm:$0xff] %v10321_v23  ;;  %v8083_v23 = vld [vmem:[#allocation8 + $0x1c0] sm:$0xff] }
 0x42d   : > { %v4589_v25 = vpop.f32.mrf.mxu1  ;;  %v5021_v13 = vpop.f32.mrf.mxu0 }
 0x42e   : > { %v4679_v20 = vadd.f32 %v10212_v53, %v4589_v25  ;;  %v7537_v25 = vld [vmem:[#allocation2 + $0xc0] sm:$0xf]  ;;  %v10332_v61 = vpop.f32.mrf.mxu3 }
 0x42f   : > { %5861 = vmatpush.bf16.msra.mxu0 %v8085_v45 }
 0x430   : > { %v4768_v37 = vadd.f32 %v10214_v9, %v4679_v20  ;;  %4628 = vmatmul.bf16.gmra.mxu1 %v7214_v7  ;;  %5060 = vmatmul.bf16.gmra.mxu0 %v7214_v7  ;;  %v7538_v20 = vor.u32 %v8046_v40, %v7537_v25 }
 0x432   : > { %v10327_v33 = vadd.f32 %v5016_v17, %v4768_v37  ;;  %v8084_v17 = vld [vmem:[#allocation8 + $0x1c8] sm:$0xff]  ;;  %v10338_v37 = vpop.f32.mrf.mxu2 }
 0x433   : > { %5862 = vmatpush.bf16.msra.mxu0 %v8084_v17 }
 0x434   : > { %11224 = vst [vmem:[#allocation45_spill] sm:$0xff] %v10327_v33 }
 0x435   : > { %v4591_v29 = vpop.f32.mrf.mxu1  ;;  %v5023_v32 = vpop.f32.mrf.mxu0 }
 0x436   : > { %v4681_v53 = vadd.f32 %v10216_v38, %v4591_v29  ;;  %v7225_v38 = vld [vmem:[#allocation2 + $0x150] sm:$0xf] }
 0x437   : > { %5203 = vmatmul.bf16.gmra.mxu2 %v10061_v12  ;;  %v7226_v33 = vor.u32 %v7971_v26, %v7225_v38  ;;  %5863 = vmatpush.bf16.msra.mxu0 %v8083_v23  ;;  %v10342_v12 = vpop.f32.mrf.mxu3  ;;  %v7974_v23 = vld [vmem:[#allocation2 + $0x170] sm:$0xf0]  ;;  %v7237_v26 = vld [vmem:[#allocation2 + $0x168] sm:$0xf] }
 0x438   : > { %v4770_v9 = vadd.f32 %v10218_v15, %v4681_v53  ;;  %v8049_v53 = vld [vmem:[#allocation2 + $0xe0] sm:$0xf0]  ;;  %v7238_v38 = vor.u32 %v7974_v23, %v7237_v26 }
 0x43a   : > { %5805 = vmatmul.bf16.gmra.mxu3 %v7538_v20  ;;  %v10336_v7 = vadd.f32 %v5018_v8, %v4770_v9  ;;  %v10347_v9 = vpop.f32.mrf.mxu2 }
 0x43d   : > { %v4594_v4 = vpop.f32.mrf.mxu1  ;;  %v5026_v29 = vpop.f32.mrf.mxu0 }
 0x43e   : > { %v4684_v34 = vadd.f32 %v10226_v30, %v4594_v4  ;;  %v7549_v30 = vld [vmem:[#allocation2 + $0xd8] sm:$0xf] }
 0x43f   : > { %v7550_v17 = vor.u32 %v8049_v53, %v7549_v30 }
 0x440   : > { %v4773_v15 = vadd.f32 %v10228_v11, %v4684_v34  ;;  %4633 = vmatmul.bf16.gmra.mxu1 %v7226_v33  ;;  %5065 = vmatmul.bf16.gmra.mxu0 %v7226_v33  ;;  %v10353_v33 = vpop.f32.mrf.mxu3 }
 0x442   : > { %v10344_v8 = vadd.f32 %v5021_v13, %v4773_v15  ;;  %v10357_v15 = vpop.f32.mrf.mxu2 }
 0x445   : > { %v4596_v40 = vpop.f32.mrf.mxu1  ;;  %v5028_v25 = vpop.f32.mrf.mxu0 }
 0x446   : > { %v4686_v45 = vadd.f32 %v10230_v18, %v4596_v40  ;;  %v8052_v40 = vld [vmem:[#allocation2 + $0xf8] sm:$0xf0] }
 0x447   : > { %5208 = vmatmul.bf16.gmra.mxu2 %v10083_v21 }
 0x448   : > { %v4775_v20 = vadd.f32 %v10232_v16, %v4686_v45  ;;  %v8098_v16 = vld [vmem:[#allocation8 + $0x238] sm:$0xff]  ;;  %v10361_v53 = vpop.f32.mrf.mxu3 }
 0x449   : > { %5945 = vmatpush.bf16.msra.mxu1 %v8098_v16 }
 0x44a   : > { %5810 = vmatmul.bf16.gmra.mxu3 %v7550_v17  ;;  %v10351_v11 = vadd.f32 %v5023_v32, %v4775_v20  ;;  %v10368_v23 = vpop.f32.mrf.mxu2 }
 0x44d   : > { %v4599_v13 = vpop.f32.mrf.mxu1  ;;  %v5031_v18 = vpop.f32.mrf.mxu0 }
 0x44e   : > { %v4689_v4 = vadd.f32 %v10240_v55, %v4599_v13  ;;  %v7561_v55 = vld [vmem:[#allocation2 + $0xf0] sm:$0xf]  ;;  %v7467_v13 = vld [vmem:[#allocation2 + $0x3c] sm:$0xf0] }
 0x44f   : > { %v7562_v17 = vor.u32 %v8052_v40, %v7561_v55 }
 0x450   : > { %v4778_v34 = vadd.f32 %v10242_v1, %v4689_v4  ;;  %4638 = vmatmul.bf16.gmra.mxu1 %v7238_v38  ;;  %5070 = vmatmul.bf16.gmra.mxu0 %v7238_v38  ;;  %v7249_v4 = vld [vmem:[#allocation2 + $0x180] sm:$0xf]  ;;  %v8027_v38 = vld [vmem:[#allocation2 + $0x34] sm:$0xf] }
 0x452   : > { %v10359_v21 = vadd.f32 %v5026_v29, %v4778_v34  ;;  %v8001_v29 = vld [vmem:[#allocation2 + $0x188] sm:$0xf0] }
 0x453   : > { %v7250_v16 = vor.u32 %v8001_v29, %v7249_v4  ;;  %v7479_v4 = vld [vmem:[#allocation2 + $0x54] sm:$0xf0] }
 0x454   : > { %11225 = vst [vmem:[#allocation23_spill] sm:$0xff] %v10359_v21  ;;  %v10371_v21 = vpop.f32.mrf.mxu3 }
 0x455   : > { %v4601_v32 = vpop.f32.mrf.mxu1  ;;  %v5033_v30 = vpop.f32.mrf.mxu0 }
 0x456   : > { %v4691_v45 = vadd.f32 %v10244_v60, %v4601_v32  ;;  %v7470_v32 = vor.u32 %v8027_v38, %v7467_v13  ;;  %v7928_v13 = vld [vmem:[#allocation2 + $0x4] sm:$0xf] }
 0x457   : > { %5213 = vmatmul.bf16.gmra.mxu2 %v10105_v22 }
 0x458   : > { %v4780_v20 = vadd.f32 %v10246_v59, %v4691_v45  ;;  %v8055_v45 = vld [vmem:[#allocation2 + $0x110] sm:$0xf0] }
 0x45a   : > { %5815 = vmatmul.bf16.gmra.mxu3 %v7562_v17  ;;  %v10366_v1 = vadd.f32 %v5028_v25, %v4780_v20  ;;  %v10376_v25 = vpop.f32.mrf.mxu2  ;;  %v7573_v17 = vld [vmem:[#allocation2 + $0x108] sm:$0xf] }
 0x45b   : > { %v7574_v29 = vor.u32 %v8055_v45, %v7573_v17  ;;  %v8058_v17 = vld [vmem:[#allocation2 + $0x128] sm:$0xf0] }
 0x45d   : > { %v4604_v26 = vpop.f32.mrf.mxu1  ;;  %v5036_v60 = vpop.f32.mrf.mxu0 }
 0x45e   : > { %v4694_v34 = vadd.f32 %v10248_v19, %v4604_v26  ;;  %v7359_v26 = vld [vmem:[#allocation2 + $0xc] sm:$0xf0] }
 0x45f   : > { %v7362_v38 = vor.u32 %v7928_v13, %v7359_v26 }
 0x460   : > { %v4783_v59 = vadd.f32 %v10250_v24, %v4694_v34  ;;  %4643 = vmatmul.bf16.gmra.mxu1 %v7250_v16  ;;  %5864 = vmatmul.bf16.vlgmr.msra.gmra.mxu0 %v7470_v32  ;;  %v10381_v24 = vpop.f32.mrf.mxu3  ;;  %v8030_v16 = vld [vmem:[#allocation2 + $0x4c] sm:$0xf] }
 0x462   : > { %v10374_v22 = vadd.f32 %v5031_v18, %v4783_v59  ;;  %v7482_v59 = vor.u32 %v8030_v16, %v7479_v4 }
 0x465   : > { %v4606_v40 = vpop.f32.mrf.mxu1  ;;  %v5038_v20 = vpop.f32.mrf.mxu0 }
 0x466   : > { %v4696_v55 = vadd.f32 %v10252_v52, %v4606_v40  ;;  %v10386_v40 = vpop.f32.mrf.mxu2 }
 0x467   : > { %5218 = vmatmul.bf16.gmra.mxu2 %v10127_v43  ;;  %v8097_v43 = vld [vmem:[#allocation8 + $0x230] sm:$0xff] }
 0x468   : > { %v4785_v19 = vadd.f32 %v10254_v56, %v4696_v55  ;;  %5946 = vmatpush.bf16.msra.mxu1 %v8097_v43  ;;  %v8061_v43 = vld [vmem:[#allocation2 + $0x140] sm:$0xf0] }
 0x46a   : > { %5820 = vmatmul.bf16.gmra.mxu3 %v7574_v29  ;;  %v10383_v18 = vadd.f32 %v5033_v30, %v4785_v19  ;;  %v10391_v30 = vpop.f32.mrf.mxu3 }
 0x46d   : > { %v4609_v34 = vpop.f32.mrf.mxu1  ;;  %v5041_v32 = vpop.f32.mrf.mxu0 }
 0x46e   : > { %v4699_v52 = vadd.f32 %v10256_v46, %v4609_v34  ;;  %v7585_v46 = vld [vmem:[#allocation2 + $0x120] sm:$0xf]  ;;  %v10395_v4 = vpop.f32.mrf.mxu2  ;;  %v8033_v34 = vld [vmem:[#allocation2 + $0x64] sm:$0xf] }
 0x46f   : > { %v7586_v26 = vor.u32 %v8058_v17, %v7585_v46 }
 0x470   : > { %v4788_v56 = vadd.f32 %v10258_v49, %v4699_v52  ;;  %5084 = vmatmul.bf16.vlgmr.msrb.gmra.mxu1 %v7362_v38  ;;  %5869 = vmatmul.bf16.gmra.mxu0 %v7482_v59 }
 0x472   : > { %v10389_v45 = vadd.f32 %v5036_v60, %v4788_v56  ;;  %v7491_v60 = vld [vmem:[#allocation2 + $0x6c] sm:$0xf0]  ;;  %v10400_v16 = vpop.f32.mrf.mxu3 }
 0x473   : > { %v7494_v59 = vor.u32 %v8033_v34, %v7491_v60  ;;  %v8036_v60 = vld [vmem:[#allocation2 + $0x7c] sm:$0xf] }
 0x475   : > { %v4611_v55 = vpop.f32.mrf.mxu1  ;;  %v5043_v29 = vpop.f32.mrf.mxu0 }
 0x476   : > { %v4701_v19 = vadd.f32 %v10261_v14, %v4611_v55 }
 0x477   : > { %5223 = vmatmul.bf16.gmra.mxu2 %v10166_v47  ;;  %v10407_v47 = vpop.f32.mrf.mxu2 }
 0x478   : > { %v4790_v13 = vadd.f32 %v10265_v0, %v4701_v19  ;;  %v7597_v19 = vld [vmem:[#allocation2 + $0x138] sm:$0xf] }
 0x47a   : > { %5825 = vmatmul.bf16.gmra.mxu3 %v7586_v26  ;;  %v10398_v49 = vadd.f32 %v5038_v20, %v4790_v13  ;;  %v10410_v46 = vpop.f32.mrf.mxu3  ;;  %v7598_v13 = vor.u32 %v8061_v43, %v7597_v19 }
 0x47d   : > { %v4614_v38 = vpop.f32.mrf.mxu1  ;;  %v5046_v14 = vpop.f32.mrf.mxu0 }
 0x47e   : > { %v4704_v52 = vadd.f32 %v10270_v27, %v4614_v38 }
 0x480   : > { %v4793_v56 = vadd.f32 %v10276_v2, %v4704_v52  ;;  %5089 = vmatmul.bf16.gmra.mxu1 %v9929_v48  ;;  %5874 = vmatmul.bf16.gmra.mxu0 %v7494_v59  ;;  %v7503_v2 = vld [vmem:[#allocation2 + $0x84] sm:$0xf0] }
 0x482   : > { %v10405_v0 = vadd.f32 %v5041_v32, %v4793_v56  ;;  %v10416_v32 = vpop.f32.mrf.mxu2  ;;  %v10421_v59 = vpop.f32.mrf.mxu3  ;;  %v8064_v56 = vld [vmem:[#allocation2 + $0x158] sm:$0xf0] }
 0x485   : > { %v4616_v20 = vpop.f32.mrf.mxu1  ;;  %v5048_v17 = vpop.f32.mrf.mxu0 }
 0x486   : > { %v4706_v55 = vadd.f32 %v10280_v28, %v4616_v20  ;;  %v7506_v28 = vor.u32 %v8036_v60, %v7503_v2 }
 0x487   : > { %5228 = vmatmul.bf16.gmra.mxu2 %v10180_v58 }
 0x488   : > { %v4795_v27 = vadd.f32 %v10284_v6, %v4706_v55  ;;  %v8096_v6 = vld [vmem:[#allocation8 + $0x228] sm:$0xff] }
 0x489   : > { %5947 = vmatpush.bf16.msra.mxu1 %v8096_v6 }
 0x48a   : > { %5830 = vmatmul.bf16.gmra.mxu3 %v7598_v13  ;;  %v10414_v48 = vadd.f32 %v5043_v29, %v4795_v27  ;;  %v10426_v43 = vpop.f32.mrf.mxu2  ;;  %v11226_v27 = vld [vmem:[#allocation40_spill] sm:$0xff]  ;;  %v7515_v13 = vld [vmem:[#allocation2 + $0x9c] sm:$0xf0]  ;;  %v10432_v2 = vpop.f32.mrf.mxu3 }
 0x48d   : > { %v4619_v26 = vpop.f32.mrf.mxu1  ;;  %v5051_v34 = vpop.f32.mrf.mxu0 }
 0x48e   : > { %v4709_v38 = vadd.f32 %v10291_v63, %v4619_v26  ;;  %v7609_v63 = vld [vmem:[#allocation2 + $0x150] sm:$0xf]  ;;  %v8039_v26 = vld [vmem:[#allocation2 + $0x94] sm:$0xf] }
 0x48f   : > { %v7610_v19 = vor.u32 %v8064_v56, %v7609_v63  ;;  %v7621_v63 = vld [vmem:[#allocation2 + $0x168] sm:$0xf] }
 0x490   : > { %v4798_v52 = vadd.f32 %v10294_v31, %v4709_v38  ;;  %5094 = vmatmul.bf16.gmra.mxu1 %v9957_v51  ;;  %5879 = vmatmul.bf16.gmra.mxu0 %v7506_v28  ;;  %v11227_v28 = vld [vmem:[#allocation22_spill] sm:$0xff] }
 0x492   : > { %v10423_v58 = vadd.f32 %v5046_v14, %v4798_v52  ;;  %v10441_v56 = vpop.f32.mrf.mxu3 }
 0x495   : > { %v4621_v29 = vpop.f32.mrf.mxu1  ;;  %v5053_v31 = vpop.f32.mrf.mxu0 }
 0x496   : > { %v4711_v20 = vadd.f32 %v10299_v41, %v4621_v29  ;;  %v7518_v41 = vor.u32 %v8039_v26, %v7515_v13  ;;  %v8067_v29 = vld [vmem:[#allocation2 + $0x170] sm:$0xf0]  ;;  %v8042_v26 = vld [vmem:[#allocation2 + $0xac] sm:$0xf] }
 0x497   : > { %5233 = vmatmul.bf16.gmra.mxu2 %v11226_v27 }
 0x498   : > { %v4800_v55 = vadd.f32 %v10304_v36, %v4711_v20  ;;  %v10437_v36 = vpop.f32.mrf.mxu2 }
 0x49a   : > { %5835 = vmatmul.bf16.gmra.mxu3 %v7610_v19  ;;  %v10430_v51 = vadd.f32 %v5048_v17, %v4800_v55  ;;  %v7622_v55 = vor.u32 %v8067_v29, %v7621_v63  ;;  %v11228_v19 = vld [vmem:[#allocation43_spill] sm:$0xff] }
 0x49d   : > { %v4624_v14 = vpop.f32.mrf.mxu1  ;;  %v5056_v6 = vpop.f32.mrf.mxu0 }
 0x49e   : > { %v4714_v60 = vadd.f32 %v10309_v57, %v4624_v14 }
 0x4a0   : > { %v4803_v38 = vadd.f32 %v10314_v62, %v4714_v60  ;;  %5099 = vmatmul.bf16.gmra.mxu1 %v11227_v28  ;;  %5884 = vmatmul.bf16.gmra.mxu0 %v7518_v41  ;;  %v10448_v27 = vpop.f32.mrf.mxu2  ;;  %v8095_v28 = vld [vmem:[#allocation8 + $0x220] sm:$0xff] }
 0x4a1   : > { %5948 = vmatpush.bf16.msra.mxu1 %v8095_v28  ;;  %v11231_v28 = vld [vmem:[#allocation32_spill] sm:$0xff] }
 0x4a2   : > { %v10439_v52 = vadd.f32 %v5051_v34, %v4803_v38  ;;  %v7527_v34 = vld [vmem:[#allocation2 + $0xb4] sm:$0xf0]  ;;  %v10451_v38 = vpop.f32.mrf.mxu3 }
 0x4a3   : > { %v7530_v41 = vor.u32 %v8042_v26, %v7527_v34  ;;  %v11230_v34 = vld [vmem:[#allocation16_spill] sm:$0xff] }
 0x4a5   : > { %v4626_v17 = vpop.f32.mrf.mxu1  ;;  %v5058_v13 = vpop.f32.mrf.mxu0 }
 0x4a6   : > { %v4716_v20 = vadd.f32 %v10318_v54, %v4626_v17 }
 0x4a7   : > { %5238 = vmatmul.bf16.gmra.mxu2 %v11228_v19 }
 0x4a8   : > { %v4805_v57 = vadd.f32 %v10323_v44, %v4716_v20  ;;  %v11229_v44 = vld [vmem:[#allocation27_spill] sm:$0xff]  ;;  %v10457_v17 = vpop.f32.mrf.mxu2  ;;  %v8070_v20 = vld [vmem:[#allocation2 + $0x188] sm:$0xf0] }
 0x4aa   : > { %5840 = vmatmul.bf16.gmra.mxu3 %v7622_v55  ;;  %v10446_v62 = vadd.f32 %v5053_v31, %v4805_v57 }
 0x4ad   : > { %v4629_v14 = vpop.f32.mrf.mxu1  ;;  %v5061_v57 = vpop.f32.mrf.mxu0 }
 0x4ae   : > { %v4719_v60 = vadd.f32 %v10329_v5, %v4629_v14  ;;  %v7633_v5 = vld [vmem:[#allocation2 + $0x180] sm:$0xf] }
 0x4af   : > { %v7634_v19 = vor.u32 %v8070_v20, %v7633_v5 }
 0x4b0   : > { %v4808_v54 = vadd.f32 %v10332_v61, %v4719_v60  ;;  %5104 = vmatmul.bf16.gmra.mxu1 %v11229_v44  ;;  %5889 = vmatmul.bf16.gmra.mxu0 %v7530_v41  ;;  %v10462_v61 = vpop.f32.mrf.mxu3  ;;  %v8045_v60 = vld [vmem:[#allocation2 + $0xc4] sm:$0xf]  ;;  %v10467_v44 = vpop.f32.mrf.mxu2 }
 0x4b2   : > { %v10455_v31 = vadd.f32 %v5056_v6, %v4808_v54  ;;  %v7539_v6 = vld [vmem:[#allocation2 + $0xcc] sm:$0xf0] }
 0x4b3   : > { %v7542_v54 = vor.u32 %v8045_v60, %v7539_v6  ;;  %v8048_v6 = vld [vmem:[#allocation2 + $0xdc] sm:$0xf] }
 0x4b5   : > { %v4631_v29 = vpop.f32.mrf.mxu1 }
 0x4b6   : > { %v4721_v63 = vadd.f32 %v10338_v37, %v4631_v29 }
 0x4b7   : > { %5243 = vmatmul.bf16.gmra.mxu2 %v11230_v34  ;;  %v7551_v34 = vld [vmem:[#allocation2 + $0xe4] sm:$0xf0] }
 0x4b8   : > { %v4810_v55 = vadd.f32 %v10342_v12, %v4721_v63  ;;  %v5063_v12 = vpop.f32.mrf.mxu0  ;;  %v10475_v5 = vpop.f32.mrf.mxu2  ;;  %v7554_v60 = vor.u32 %v8048_v6, %v7551_v34  ;;  %v11234_v6 = vld [vmem:[#allocation25_spill] sm:$0xff] }
 0x4ba   : > { %5845 = vmatmul.bf16.gmra.mxu3 %v7634_v19  ;;  %v10464_v14 = vadd.f32 %v5058_v13, %v4810_v55  ;;  %v11232_v55 = vld [vmem:[#allocation18_spill] sm:$0xff] }
 0x4bd   : > { %v4634_v26 = vpop.f32.mrf.mxu1 }
 0x4be   : > { %v4724_v41 = vadd.f32 %v10347_v9, %v4634_v26 }
 0x4c0   : > { %v4813_v37 = vadd.f32 %v10353_v33, %v4724_v41  ;;  %5109 = vmatmul.bf16.gmra.mxu1 %v11231_v28  ;;  %5894 = vmatmul.bf16.gmra.mxu0 %v7542_v54  ;;  %v5066_v19 = vpop.f32.mrf.mxu0  ;;  %v11233_v41 = vld [vmem:[#allocation26_spill] sm:$0xff] }
 0x4c2   : > { %v10471_v29 = vadd.f32 %v5061_v57, %v4813_v37 }
 0x4c5   : > { %v4636_v20 = vpop.f32.mrf.mxu1 }
 0x4c6   : > { %v4726_v13 = vadd.f32 %v10357_v15, %v4636_v20  ;;  %v8094_v15 = vld [vmem:[#allocation8 + $0x218] sm:$0xff] }
 0x4c7   : > { %5248 = vmatmul.bf16.gmra.mxu2 %v11232_v55  ;;  %5949 = vmatpush.bf16.msra.mxu1 %v8094_v15 }
 0x4c8   : > { %v4815_v63 = vadd.f32 %v10361_v53, %v4726_v13  ;;  %v5068_v54 = vpop.f32.mrf.mxu0  ;;  %v7563_v13 = vld [vmem:[#allocation2 + $0xfc] sm:$0xf0] }
 0x4ca   : > { %v10478_v9 = vadd.f32 %v5063_v12, %v4815_v63  ;;  %v8051_v63 = vld [vmem:[#allocation2 + $0xf4] sm:$0xf] }
 0x4cb   : > { %v7566_v55 = vor.u32 %v8051_v63, %v7563_v13  ;;  %v11236_v63 = vld [vmem:[#allocation44_spill] sm:$0xff] }
 0x4cd   : > { %v4639_v33 = vpop.f32.mrf.mxu1 }
 0x4ce   : > { %v4729_v26 = vadd.f32 %v10368_v23, %v4639_v33 }
 0x4d0   : > { %v4818_v57 = vadd.f32 %v10371_v21, %v4729_v26  ;;  %5114 = vmatmul.bf16.gmra.mxu1 %v11233_v41  ;;  %5899 = vmatmul.bf16.gmra.mxu0 %v7554_v60  ;;  %v5071_v34 = vpop.f32.mrf.mxu0  ;;  %v7575_v41 = vld [vmem:[#allocation2 + $0x114] sm:$0xf0] }
 0x4d2   : > { %v10483_v53 = vadd.f32 %v5066_v19, %v4818_v57 }
 0x4d5   : > { %v4641_v37 = vpop.f32.mrf.mxu1 }
 0x4d6   : > { %v4731_v28 = vadd.f32 %v10376_v25, %v4641_v37  ;;  %v11235_v37 = vld [vmem:[#allocation31_spill] sm:$0xff] }
 0x4d8   : > { %v4820_v12 = vadd.f32 %v10381_v24, %v4731_v28  ;;  %v5073_v60 = vpop.f32.mrf.mxu0  ;;  %v8093_v28 = vld [vmem:[#allocation8 + $0x210] sm:$0xff] }
 0x4d9   : > { %5950 = vmatpush.bf16.msra.mxu1 %v8093_v28 }
 0x4da   : > { %v10487_v20 = vadd.f32 %v5068_v54, %v4820_v12 }
 0x4dd   : > { %v4644_v23 = vpop.f32.mrf.mxu1 }
 0x4de   : > { %v4734_v21 = vadd.f32 %v10386_v40, %v4644_v23  ;;  %v8054_v40 = vld [vmem:[#allocation2 + $0x10c] sm:$0xf]  ;;  %v8057_v23 = vld [vmem:[#allocation2 + $0x124] sm:$0xf] }
 0x4e0   : > { %v4823_v33 = vadd.f32 %v10391_v30, %v4734_v21  ;;  %5119 = vmatmul.bf16.gmra.mxu1 %v11234_v6  ;;  %5904 = vmatmul.bf16.gmra.mxu0 %v7566_v55  ;;  %v7578_v30 = vor.u32 %v8054_v40, %v7575_v41  ;;  %v7599_v6 = vld [vmem:[#allocation2 + $0x144] sm:$0xf0]  ;;  %v11238_v41 = vld [vmem:[#allocation15_spill] sm:$0xff] }
 0x4e2   : > { %v10492_v19 = vadd.f32 %v5071_v34, %v4823_v33  ;;  %v11237_v34 = vld [vmem:[#allocation30_spill] sm:$0xff] }
 0x4e5   : > { %v4646_v26 = vpop.f32.mrf.mxu1 }
 0x4e6   : > { %v4736_v25 = vadd.f32 %v10395_v4, %v4646_v26 }
 0x4e8   : > { %v4825_v24 = vadd.f32 %v10400_v16, %v4736_v25  ;;  %v7587_v16 = vld [vmem:[#allocation2 + $0x12c] sm:$0xf0]  ;;  %v8060_v25 = vld [vmem:[#allocation2 + $0x13c] sm:$0xf] }
 0x4e9   : > { %v7590_v55 = vor.u32 %v8057_v23, %v7587_v16 }
 0x4ea   : > { %v10496_v57 = vadd.f32 %v5073_v60, %v4825_v24  ;;  %v10512_v24 = vpop.f32.mrf.mxu0  ;;  %v7602_v60 = vor.u32 %v8060_v25, %v7599_v6  ;;  %v11241_v25 = vld [vmem:[#allocation45_spill] sm:$0xff] }
 0x4ed   : > { %v5085_v15 = vpop.f32.mrf.mxu1 }
 0x4ee   : > { %v10499_v54 = vadd.f32 %v5085_v15, %v10267_v35  ;;  %v8092_v15 = vld [vmem:[#allocation8 + $0x208] sm:$0xff] }
 0x4ef   : > { %5951 = vmatpush.bf16.msra.mxu1 %v8092_v15  ;;  %v8091_v15 = vld [vmem:[#allocation8 + $0x200] sm:$0xff] }
 0x4f0   : > { %5124 = vmatmul.bf16.gmra.mxu1 %v11235_v37  ;;  %5909 = vmatmul.bf16.gmra.mxu0 %v7578_v30  ;;  %v7611_v37 = vld [vmem:[#allocation2 + $0x15c] sm:$0xf0] }
 0x4f3   : > { %5952 = vmatpush.bf16.msra.mxu1 %v8091_v15  ;;  %v11245_v15 = vld [vmem:[#allocation42_spill] sm:$0xff] }
 0x4f5   : > { %v5087_v12 = vpop.f32.mrf.mxu1 }
 0x4f6   : > { %v10503_v4 = vadd.f32 %v5087_v12, %v10274_v39  ;;  %v8063_v12 = vld [vmem:[#allocation2 + $0x154] sm:$0xf] }
 0x4fd   : > { %v5090_v13 = vpop.f32.mrf.mxu1 }
 0x4fe   : > { %v10506_v21 = vadd.f32 %v5090_v13, %v11236_v63  ;;  %v11239_v13 = vld [vmem:[#allocation36_spill] sm:$0xff] }
 0x500   : > { %5129 = vmatmul.bf16.gmra.mxu1 %v11237_v34  ;;  %5914 = vmatmul.bf16.gmra.mxu0 %v7590_v55  ;;  %v11240_v55 = vld [vmem:[#allocation20_spill] sm:$0xff] }
 0x505   : > { %v5092_v35 = vpop.f32.mrf.mxu1 }
 0x506   : > { %v10510_v33 = vadd.f32 %v5092_v35, %v10289_v3  ;;  %v10521_v3 = vpop.f32.mrf.mxu0 }
 0x50d   : > { %v5095_v26 = vpop.f32.mrf.mxu1 }
 0x50e   : > { %v10515_v39 = vadd.f32 %v5095_v26, %v10297_v50  ;;  %v7614_v50 = vor.u32 %v8063_v12, %v7611_v37  ;;  %v10527_v23 = vpop.f32.mrf.mxu0  ;;  %v8066_v26 = vld [vmem:[#allocation2 + $0x16c] sm:$0xf]  ;;  %v7635_v12 = vld [vmem:[#allocation2 + $0x18c] sm:$0xf0] }
 0x510   : > { %5134 = vmatmul.bf16.gmra.mxu1 %v11238_v41  ;;  %5919 = vmatmul.bf16.gmra.mxu0 %v7602_v60  ;;  %v11242_v41 = vld [vmem:[#allocation35_spill] sm:$0xff] }
 0x515   : > { %v5097_v40 = vpop.f32.mrf.mxu1 }
 0x516   : > { %v10519_v30 = vadd.f32 %v5097_v40, %v10306_v42  ;;  %v7623_v42 = vld [vmem:[#allocation2 + $0x174] sm:$0xf0]  ;;  %v10532_v35 = vpop.f32.mrf.mxu0 }
 0x51d   : > { %v5100_v28 = vpop.f32.mrf.mxu1 }
 0x51e   : > { %v10524_v16 = vadd.f32 %v5100_v28, %v10312_v10  ;;  %v7626_v10 = vor.u32 %v8066_v26, %v7623_v42  ;;  %v10538_v37 = vpop.f32.mrf.mxu0  ;;  %v11243_v42 = vld [vmem:[#allocation39_spill] sm:$0xff] }
 0x520   : > { %5139 = vmatmul.bf16.gmra.mxu1 %v11239_v13  ;;  %5924 = vmatmul.bf16.gmra.mxu0 %v7614_v50  ;;  %v8069_v13 = vld [vmem:[#allocation2 + $0x184] sm:$0xf] }
 0x525   : > { %v5102_v63 = vpop.f32.mrf.mxu1 }
 0x526   : > { %v10530_v34 = vadd.f32 %v5102_v63, %v11240_v55  ;;  %v7638_v55 = vor.u32 %v8069_v13, %v7635_v12  ;;  %v11247_v13 = vld [vmem:[#allocation41_spill] sm:$0xff] }
 0x52d   : > { %v5105_v6 = vpop.f32.mrf.mxu1 }
 0x52e   : > { %v10535_v60 = vadd.f32 %v5105_v6, %v11241_v25  ;;  %v10546_v6 = vpop.f32.mrf.mxu0 }
 0x530   : > { %5144 = vmatmul.bf16.gmra.mxu1 %v11242_v41  ;;  %5929 = vmatmul.bf16.gmra.mxu0 %v7626_v10  ;;  %v11244_v41 = vld [vmem:[#allocation23_spill] sm:$0xff] }
 0x535   : > { %v5107_v40 = vpop.f32.mrf.mxu1 }
 0x536   : > { %v10541_v28 = vadd.f32 %v5107_v40, %v10336_v7 }
 0x53d   : > { %v5110_v50 = vpop.f32.mrf.mxu1 }
 0x53e   : > { %v10544_v63 = vadd.f32 %v5110_v50, %v10344_v8 }
 0x540   : > { %5149 = vmatmul.bf16.gmra.mxu1 %v11243_v42  ;;  %5934 = vmatmul.bf16.gmra.mxu0 %v7638_v55  ;;  %v8029_v42 = vld [vmem:[#allocation2 + $0x40] sm:$0xf0] }
 0x545   : > { %v5112_v26 = vpop.f32.mrf.mxu1 }
 0x546   : > { %v10550_v25 = vadd.f32 %v5112_v26, %v10351_v11 }
 0x54d   : > { %v5115_v10 = vpop.f32.mrf.mxu1 }
 0x54e   : > { %v10553_v7 = vadd.f32 %v5115_v10, %v11244_v41  ;;  %v7473_v10 = vld [vmem:[#allocation2 + $0x38] sm:$0xf] }
 0x550   : > { %5154 = vmatmul.bf16.gmra.mxu1 %v11245_v15  ;;  %v7474_v15 = vor.u32 %v8029_v42, %v7473_v10  ;;  %v7497_v42 = vld [vmem:[#allocation2 + $0x68] sm:$0xf] }
 0x555   : > { %v5117_v40 = vpop.f32.mrf.mxu1 }
 0x556   : > { %v10557_v8 = vadd.f32 %v5117_v40, %v10366_v1 }
 0x55d   : > { %v5120_v12 = vpop.f32.mrf.mxu1 }
 0x55e   : > { %v10560_v50 = vadd.f32 %v5120_v12, %v10374_v22  ;;  %v8032_v22 = vld [vmem:[#allocation2 + $0x58] sm:$0xf0] }
 0x560   : > { %11246 = vst [vmem:[#allocation46_spill] sm:$0xff] %v10560_v50  ;;  %5159 = vmatmul.bf16.gmra.mxu1 %v11247_v13  ;;  %v7485_v50 = vld [vmem:[#allocation2 + $0x50] sm:$0xf] }
 0x565   : > { %v5122_v55 = vpop.f32.mrf.mxu1 }
 0x566   : > { %v10564_v11 = vadd.f32 %v5122_v55, %v10383_v18  ;;  %v7486_v18 = vor.u32 %v8032_v22, %v7485_v50  ;;  %v7509_v50 = vld [vmem:[#allocation2 + $0x80] sm:$0xf] }
 0x568   : > { %11248 = vst [vmem:[#allocation28_spill] sm:$0xff] %v10564_v11 }
 0x56d   : > { %v5125_v26 = vpop.f32.mrf.mxu1 }
 0x56e   : > { %v10567_v41 = vadd.f32 %v5125_v26, %v10389_v45  ;;  %v8035_v45 = vld [vmem:[#allocation2 + $0x70] sm:$0xf0] }
 0x570   : > { %5953 = vmatmul.bf16.vlgmr.msra.gmra.mxu1 %v7474_v15 }
 0x575   : > { %v5127_v1 = vpop.f32.mrf.mxu1 }
 0x576   : > { %v10570_v40 = vadd.f32 %v5127_v1, %v10398_v49  ;;  %v7498_v49 = vor.u32 %v8035_v45, %v7497_v42  ;;  %v7521_v45 = vld [vmem:[#allocation2 + $0x98] sm:$0xf] }
 0x57d   : > { %v5130_v12 = vpop.f32.mrf.mxu1 }
 0x57e   : > { %v10573_v13 = vadd.f32 %v5130_v12, %v10405_v0  ;;  %v8038_v0 = vld [vmem:[#allocation2 + $0x88] sm:$0xf0] }
 0x580   : > { %5958 = vmatmul.bf16.gmra.mxu1 %v7486_v18 }
 0x585   : > { %v5132_v55 = vpop.f32.mrf.mxu1 }
 0x586   : > { %v10576_v11 = vadd.f32 %v5132_v55, %v10414_v48  ;;  %v7510_v48 = vor.u32 %v8038_v0, %v7509_v50  ;;  %v7533_v0 = vld [vmem:[#allocation2 + $0xb0] sm:$0xf] }
 0x58d   : > { %v5135_v26 = vpop.f32.mrf.mxu1 }
 0x58e   : > { %v10579_v10 = vadd.f32 %v5135_v26, %v10423_v58  ;;  %v8041_v58 = vld [vmem:[#allocation2 + $0xa0] sm:$0xf0] }
 0x590   : > { %5963 = vmatmul.bf16.gmra.mxu1 %v7498_v49 }
 0x595   : > { %v5137_v15 = vpop.f32.mrf.mxu1 }
 0x596   : > { %v10582_v1 = vadd.f32 %v5137_v15, %v10430_v51  ;;  %v7522_v51 = vor.u32 %v8041_v58, %v7521_v45  ;;  %v7545_v58 = vld [vmem:[#allocation2 + $0xc8] sm:$0xf] }
 0x59d   : > { %v5140_v12 = vpop.f32.mrf.mxu1 }
 0x59e   : > { %v10585_v22 = vadd.f32 %v5140_v12, %v10439_v52  ;;  %v8044_v52 = vld [vmem:[#allocation2 + $0xb8] sm:$0xf0] }
 0x5a0   : > { %5968 = vmatmul.bf16.gmra.mxu1 %v7510_v48 }
 0x5a5   : > { %v5142_v18 = vpop.f32.mrf.mxu1 }
 0x5a6   : > { %v10588_v55 = vadd.f32 %v5142_v18, %v10446_v62  ;;  %v7534_v62 = vor.u32 %v8044_v52, %v7533_v0  ;;  %v7557_v52 = vld [vmem:[#allocation2 + $0xe0] sm:$0xf] }
 0x5ad   : > { %v5145_v26 = vpop.f32.mrf.mxu1 }
 0x5ae   : > { %v10591_v42 = vadd.f32 %v5145_v26, %v10455_v31  ;;  %v8047_v31 = vld [vmem:[#allocation2 + $0xd0] sm:$0xf0] }
 0x5b0   : > { %5973 = vmatmul.bf16.gmra.mxu1 %v7522_v51 }
 0x5b5   : > { %v5147_v49 = vpop.f32.mrf.mxu1 }
 0x5b6   : > { %v10594_v15 = vadd.f32 %v5147_v49, %v10464_v14  ;;  %v7546_v14 = vor.u32 %v8047_v31, %v7545_v58  ;;  %v10616_v31 = vpop.f32.mrf.mxu0 }
 0x5bd   : > { %v5150_v12 = vpop.f32.mrf.mxu1 }
 0x5be   : > { %v10597_v50 = vadd.f32 %v5150_v12, %v10471_v29  ;;  %v8050_v29 = vld [vmem:[#allocation2 + $0xe8] sm:$0xf0] }
 0x5c0   : > { %5978 = vmatmul.bf16.gmra.mxu1 %v7534_v62 }
 0x5c5   : > { %v5152_v48 = vpop.f32.mrf.mxu1 }
 0x5c6   : > { %v10600_v18 = vadd.f32 %v5152_v48, %v10478_v9  ;;  %v7558_v9 = vor.u32 %v8050_v29, %v7557_v52  ;;  %v10624_v52 = vpop.f32.mrf.mxu0 }
 0x5cd   : > { %v5155_v26 = vpop.f32.mrf.mxu1 }
 0x5ce   : > { %v10603_v45 = vadd.f32 %v5155_v26, %v10483_v53  ;;  %v10614_v53 = vpop.f32.mrf.mxu3  ;;  %v8053_v26 = vld [vmem:[#allocation2 + $0x100] sm:$0xf0] }
 0x5d0   : > { %5983 = vmatmul.bf16.gmra.mxu1 %v7546_v14  ;;  %v7569_v14 = vld [vmem:[#allocation2 + $0xf8] sm:$0xf] }
 0x5d1   : > { %v7570_v29 = vor.u32 %v8053_v26, %v7569_v14 }
 0x5d5   : > { %v5157_v51 = vpop.f32.mrf.mxu1 }
 0x5d6   : > { %v10606_v49 = vadd.f32 %v5157_v51, %v10487_v20  ;;  %v5866_v20 = vadd.f32 %v10512_v24, %v10410_v46  ;;  %v10631_v46 = vld [vmem:[%s10854_s6] ss:$0 sm:$0xff]  ;;  %v8165_v24 = vld [vmem:[%s8766_s13] sm:$0xff]  }
 0x5d7   : > { %v8167_v14 = vunpack.c.h.bf16 %v8165_v24 }
 0x5dd   : > { %v5160_v12 = vpop.f32.mrf.mxu1 }
 0x5de   : > { %v10609_v0 = vadd.f32 %v5160_v12, %v10492_v19  ;;  %v5175_v19 = vadd.f32 %v10407_v47, %v10499_v54  ;;  %v5177_v47 = vadd.f32 %v10416_v32, %v10503_v4  ;;  %v7581_v4 = vld [vmem:[#allocation2 + $0x110] sm:$0xf] }
 0x5e0   : > { %11249 = vst [vmem:[#allocation47_spill] sm:$0xff] %v10609_v0  ;;  %5988 = vmatmul.bf16.gmra.mxu1 %v7558_v9  ;;  %v5868_v9 = vadd.f32 %v10521_v3, %v10421_v59  ;;  %v8056_v59 = vld [vmem:[#allocation2 + $0x118] sm:$0xf0]  ;;  %v10642_v0 = vpop.f32.mrf.mxu0 }
 0x5e5   : > { %v5162_v62 = vpop.f32.mrf.mxu1 }
 0x5e6   : > { %v10612_v48 = vadd.f32 %v5162_v62, %v10496_v57  ;;  %v10622_v57 = vpop.f32.mrf.mxu3 }
 0x5e8   : > { %11250 = vst [vmem:[#allocation33_spill] sm:$0xff] %v10612_v48 }
 0x5ed   : > { %v5954_v58 = vpop.f32.mrf.mxu1 }
 0x5ee   : > { %v5955_v51 = vadd.f32 %v5954_v58, %v5866_v20  ;;  %v8166_v20 = vunpack.c.l.bf16 %v8165_v24  ;;  %v10638_v3 = vpop.f32.mrf.mxu3 }
 0x5f0   : > { %v6034_v12 = vadd.f32 %v5955_v51, %v5175_v19  ;;  %5993 = vmatmul.bf16.gmra.mxu1 %v7570_v29  ;;  %v5871_v51 = vadd.f32 %v10527_v23, %v10432_v2  ;;  %v5873_v23 = vadd.f32 %v10532_v35, %v10441_v56  ;;  %v8059_v35 = vld [vmem:[#allocation2 + $0x130] sm:$0xf0] }
 0x5f2   : > { %v6070_v26 = vadd.f32 %v10631_v46, %v6034_v12  ;;  %v5180_v12 = vadd.f32 %v10426_v43, %v10506_v21  ;;  %v5182_v43 = vadd.f32 %v10437_v36, %v10510_v33 }
 0x5f4   : > { %v6166_v29 = vadd.f32 %v8166_v20, %v6070_v26 }
 0x5f5   : > { %v5956_v62 = vpop.f32.mrf.mxu1 }
 0x5f6   : > { %v5957_v54 = vadd.f32 %v5956_v62, %v5868_v9  ;;  %v7582_v62 = vor.u32 %v8056_v59, %v7581_v4  ;;  %v10656_v20 = vpop.f32.mrf.mxu3  ;;  %v7593_v4 = vld [vmem:[#allocation2 + $0x128] sm:$0xf] }
 0x5f8   : > { %v6035_v58 = vadd.f32 %v5957_v54, %v5177_v47  ;;  %v10646_v47 = vpop.f32.mrf.mxu2  ;;  %v8323_v54 = vld [vmem:[%s8766_s13 + $0x8] sm:$0xff]  }
 0x5f9   : > { %v8171_v59 = vunpack.c.h.bf16 %v8323_v54 }
 0x5fa   : > { %v6071_v19 = vadd.f32 %v10631_v46, %v6035_v58 }
 0x5fc   : > { %v6167_v48 = vadd.f32 %v8167_v14, %v6071_v19  ;;  %v8170_v14 = vunpack.c.l.bf16 %v8323_v54 }
 0x5fd   : > { %v5959_v32 = vpop.f32.mrf.mxu1 }
 0x5fe   : > { %v8231_v9 = vpack.c.bf16 %v6167_v48, %v6166_v29  ;;  %v5960_v24 = vadd.f32 %v5959_v32, %v5871_v51  ;;  %v10660_v48 = vpop.f32.mrf.mxu0  ;;  %v5876_v29 = vadd.f32 %v10538_v37, %v10451_v38  ;;  %v5878_v38 = vadd.f32 %v10546_v6, %v10462_v61  ;;  %v8324_v37 = vld [vmem:[%s8766_s13 + $0x10] sm:$0xff]  }
 0x600   : > { %8232 = vst [vmem:[%s10650_s20] sm:$0xff] %v8231_v9   ;;  %v6036_v2 = vadd.f32 %v5960_v24, %v5180_v12  ;;  %5998 = vmatmul.bf16.gmra.mxu1 %v7582_v62  ;;  %v10663_v51 = vpop.f32.mrf.mxu2  ;;  %v5185_v12 = vadd.f32 %v10448_v27, %v10515_v39  ;;  %v7594_v62 = vor.u32 %v8059_v35, %v7593_v4 }
 0x601   : > { %v5187_v27 = vadd.f32 %v10457_v17, %v10519_v30  ;;  %v7605_v30 = vld [vmem:[#allocation2 + $0x140] sm:$0xf] }
 0x602   : > { %v6072_v58 = vadd.f32 %v10631_v46, %v6036_v2  ;;  %v10670_v2 = vpop.f32.mrf.mxu3 }
 0x604   : > { %v6168_v32 = vadd.f32 %v8170_v14, %v6072_v58  ;;  %v8174_v58 = vunpack.c.l.bf16 %v8324_v37 }
 0x605   : > { %v5961_v26 = vpop.f32.mrf.mxu1 }
 0x606   : > { %v5962_v21 = vadd.f32 %v5961_v26, %v5873_v23  ;;  %v10673_v54 = vpop.f32.mrf.mxu0 }
 0x608   : > { %v6037_v19 = vadd.f32 %v5962_v21, %v5182_v43  ;;  %v10675_v26 = vpop.f32.mrf.mxu2 }
 0x60a   : > { %v6073_v56 = vadd.f32 %v10631_v46, %v6037_v19  ;;  %v8175_v19 = vunpack.c.h.bf16 %v8324_v37  ;;  %v8325_v37 = vld [vmem:[%s8766_s13 + $0x18] sm:$0xff]  }
 0x60c   : > { %v6169_v36 = vadd.f32 %v8171_v59, %v6073_v56  ;;  %v10683_v59 = vpop.f32.mrf.mxu3 }
 0x60d   : > { %v5964_v33 = vpop.f32.mrf.mxu1 }
 0x60e   : > { %v8236_v9 = vpack.c.bf16 %v6169_v36, %v6168_v32  ;;  %v5965_v24 = vadd.f32 %v5964_v33, %v5876_v29  ;;  %v10686_v35 = vpop.f32.mrf.mxu0  ;;  %v8062_v29 = vld [vmem:[#allocation2 + $0x148] sm:$0xf0]  ;;  %v5881_v36 = vadd.f32 %v10616_v31, %v10614_v53  ;;  %v5192_v53 = vadd.f32 %v10475_v5, %v10530_v34 }
 0x60f   : > { %v7606_v4 = vor.u32 %v8062_v29, %v7605_v30  ;;  %v5886_v5 = vadd.f32 %v10642_v0, %v10638_v3  ;;  %v7645_v30 = vld [vmem:[#allocation2 + $0x198] sm:$0xf]  ;;  %v8326_v3 = vld [vmem:[%s8766_s13 + $0x20] sm:$0xff]  }
 0x610   : > { %8338 = vst [vmem:[%s10650_s20 + $0x8] sm:$0xff] %v8236_v9   ;;  %v6038_v23 = vadd.f32 %v5965_v24, %v5185_v12  ;;  %6003 = vmatmul.bf16.gmra.mxu1 %v7594_v62  ;;  %v10688_v32 = vpop.f32.mrf.mxu2  ;;  %v5190_v9 = vadd.f32 %v10467_v44, %v10524_v16  ;;  %v5883_v62 = vadd.f32 %v10624_v52, %v10622_v57  ;;  %v8178_v44 = vunpack.c.l.bf16 %v8325_v37  ;;  %v8065_v57 = vld [vmem:[#allocation2 + $0x160] sm:$0xf0] }
 0x612   : > { %v6074_v21 = vadd.f32 %v10631_v46, %v6038_v23 }
 0x614   : > { %v6170_v61 = vadd.f32 %v8174_v58, %v6074_v21  ;;  %v10695_v24 = vpop.f32.mrf.mxu3  ;;  %v8179_v21 = vunpack.c.h.bf16 %v8325_v37 }
 0x615   : > { %v5966_v43 = vpop.f32.mrf.mxu1 }
 0x616   : > { %v5967_v39 = vadd.f32 %v5966_v43, %v5878_v38  ;;  %v10699_v38 = vpop.f32.mrf.mxu0 }
 0x618   : > { %v6039_v14 = vadd.f32 %v5967_v39, %v5187_v27  ;;  %v10704_v27 = vpop.f32.mrf.mxu2 }
 0x61a   : > { %v6075_v56 = vadd.f32 %v10631_v46, %v6039_v14 }
 0x61c   : > { %v6171_v6 = vadd.f32 %v8175_v19, %v6075_v56  ;;  %v7617_v56 = vld [vmem:[#allocation2 + $0x158] sm:$0xf]  ;;  %v10708_v29 = vpop.f32.mrf.mxu3 }
 0x61d   : > { %v5969_v17 = vpop.f32.mrf.mxu1 }
 0x61e   : > { %v8241_v33 = vpack.c.bf16 %v6171_v6, %v6170_v61  ;;  %v5970_v12 = vadd.f32 %v5969_v17, %v5881_v36  ;;  %v7618_v61 = vor.u32 %v8065_v57, %v7617_v56  ;;  %v10712_v6 = vpop.f32.mrf.mxu0  ;;  %v8073_v36 = vld [vmem:[#allocation2 + $0x1a0] sm:$0xf0] }
 0x620   : > { %8339 = vst [vmem:[%s10650_s20 + $0x10] sm:$0xff] %v8241_v33   ;;  %6008 = vmatmul.bf16.gmra.mxu1 %v7606_v4  ;;  %v6040_v23 = vadd.f32 %v5970_v12, %v5190_v9  ;;  %v10715_v33 = vpop.f32.mrf.mxu2  ;;  %v7646_v4 = vor.u32 %v8073_v36, %v7645_v30  ;;  %v5195_v12 = vadd.f32 %v10646_v47, %v10535_v60  ;;  %v8182_v60 = vunpack.c.l.bf16 %v8326_v3 }
 0x621   : > { %v5888_v9 = vadd.f32 %v10660_v48, %v10656_v20  ;;  %v5893_v30 = vadd.f32 %v10686_v35, %v10683_v59 }
 0x622   : > { %v6076_v39 = vadd.f32 %v10631_v46, %v6040_v23  ;;  %5850 = vmatmul.bf16.gmra.mxu3 %v7646_v4  ;;  %v5197_v23 = vadd.f32 %v10663_v51, %v10541_v28  ;;  %v8068_v28 = vld [vmem:[#allocation2 + $0x178] sm:$0xf0] }
 0x624   : > { %v6172_v52 = vadd.f32 %v8178_v44, %v6076_v39  ;;  %v10724_v39 = vpop.f32.mrf.mxu3 }
 0x625   : > { %v5971_v43 = vpop.f32.mrf.mxu1 }
 0x626   : > { %v5972_v31 = vadd.f32 %v5971_v43, %v5883_v62  ;;  %v8072_v43 = vld [vmem:[#allocation2 + $0x19c] sm:$0xf] }
 0x628   : > { %v6041_v16 = vadd.f32 %v5972_v31, %v5192_v53  ;;  %v7647_v53 = vld [vmem:[#allocation2 + $0x1a4] sm:$0xf0]  ;;  %v10730_v48 = vpop.f32.mrf.mxu2 }
 0x629   : > { %v7650_v31 = vor.u32 %v8072_v43, %v7647_v53 }
 0x62a   : > { %v6077_v58 = vadd.f32 %v10631_v46, %v6041_v16  ;;  %v8183_v16 = vunpack.c.h.bf16 %v8326_v3 }
 0x62b   : > { %5939 = vmatmul.bf16.gmra.mxu0 %v7650_v31 }
 0x62c   : > { %v6173_v14 = vadd.f32 %v8179_v21, %v6077_v58  ;;  %v10727_v21 = vpop.f32.mrf.mxu0 }
 0x62d   : > { %v5974_v19 = vpop.f32.mrf.mxu1 }
 0x62e   : > { %v8246_v34 = vpack.c.bf16 %v6173_v14, %v6172_v52  ;;  %v5975_v17 = vadd.f32 %v5974_v19, %v5886_v5  ;;  %v7629_v52 = vld [vmem:[#allocation2 + $0x170] sm:$0xf]  ;;  %v5891_v14 = vadd.f32 %v10673_v54, %v10670_v2  ;;  %v5202_v2 = vadd.f32 %v10688_v32, %v10550_v25 }
 0x62f   : > { %v7630_v56 = vor.u32 %v8068_v28, %v7629_v52  ;;  %v5896_v25 = vadd.f32 %v10699_v38, %v10695_v24  ;;  %v5207_v52 = vadd.f32 %v10715_v33, %v10557_v8  ;;  %v5901_v8 = vadd.f32 %v10727_v21, %v10724_v39 }
 0x630   : > { %8340 = vst [vmem:[%s10650_s20 + $0x18] sm:$0xff] %v8246_v34   ;;  %6013 = vmatmul.bf16.gmra.mxu1 %v7618_v61  ;;  %v6042_v0 = vadd.f32 %v5975_v17, %v5195_v12  ;;  %v5813_v34 = vpop.f32.mrf.mxu3  ;;  %v5200_v61 = vadd.f32 %v10675_v26, %v10544_v63  ;;  %v5211_v4 = vpop.f32.mrf.mxu2  ;;  %v8327_v12 = vld [vmem:[%s8766_s13 + $0x28] sm:$0xff]   ;;  %v7641_v26 = vld [vmem:[#allocation2 + $0x188] sm:$0xf] }
 0x631   : > { %v8186_v3 = vunpack.c.l.bf16 %v8327_v12 }
 0x632   : > { %v6078_v44 = vadd.f32 %v10631_v46, %v6042_v0 }
 0x634   : > { %v6174_v51 = vadd.f32 %v8182_v60, %v6078_v44  ;;  %v5902_v17 = vpop.f32.mrf.mxu0 }
 0x635   : > { %v5976_v62 = vpop.f32.mrf.mxu1 }
 0x636   : > { %v5977_v37 = vadd.f32 %v5976_v62, %v5888_v9 }
 0x638   : > { %v6043_v47 = vadd.f32 %v5977_v37, %v5197_v23  ;;  %v8187_v23 = vunpack.c.h.bf16 %v8327_v12  ;;  %v8071_v37 = vld [vmem:[#allocation2 + $0x190] sm:$0xf0]  ;;  %v5816_v59 = vpop.f32.mrf.mxu3  ;;  %v5214_v60 = vpop.f32.mrf.mxu2 }
 0x639   : > { %v7642_v44 = vor.u32 %v8071_v37, %v7641_v26  ;;  %v8329_v26 = vld [vmem:[%s8766_s13 + $0x38] sm:$0xff]  }
 0x63a   : > { %v6079_v20 = vadd.f32 %v10631_v46, %v6043_v47  ;;  %v8194_v21 = vunpack.c.l.bf16 %v8329_v26 }
 0x63c   : > { %v6175_v58 = vadd.f32 %v8183_v16, %v6079_v20  ;;  %v5905_v53 = vpop.f32.mrf.mxu0  ;;  %v5205_v16 = vadd.f32 %v10704_v27, %v10553_v7  ;;  %v5898_v20 = vadd.f32 %v10712_v6, %v10708_v29  ;;  %v7653_v7 = vld [vmem:[#allocation2 + $0x1a0] sm:$0xf]  ;;  %v8074_v27 = vld [vmem:[#allocation2 + $0x1a8] sm:$0xf0] }
 0x63d   : > { %v5979_v57 = vpop.f32.mrf.mxu1 }
 0x63e   : > { %v8251_v19 = vpack.c.bf16 %v6175_v58, %v6174_v51  ;;  %v5980_v5 = vadd.f32 %v5979_v57, %v5891_v14  ;;  %v8328_v51 = vld [vmem:[%s8766_s13 + $0x30] sm:$0xff]  }
 0x640   : > { %8341 = vst [vmem:[%s10650_s20 + $0x20] sm:$0xff] %v8251_v19   ;;  %6018 = vmatmul.bf16.gmra.mxu1 %v7630_v56  ;;  %v6044_v36 = vadd.f32 %v5980_v5, %v5200_v61  ;;  %v5818_v57 = vpop.f32.mrf.mxu3  ;;  %v8190_v19 = vunpack.c.l.bf16 %v8328_v51  ;;  %v8191_v5 = vunpack.c.h.bf16 %v8328_v51  ;;  %v5216_v61 = vpop.f32.mrf.mxu2 }
 0x642   : > { %v6080_v0 = vadd.f32 %v10631_v46, %v6044_v36  ;;  %v7654_v36 = vor.u32 %v8074_v27, %v7653_v7  ;;  %v5217_v7 = vadd.f32 %v5216_v61, %v10570_v40 }
 0x644   : > { %v6176_v35 = vadd.f32 %v8186_v3, %v6080_v0  ;;  %v5907_v38 = vpop.f32.mrf.mxu0  ;;  %v11251_v0 = vld [vmem:[#allocation46_spill] sm:$0xff] }
 0x645   : > { %v5981_v9 = vpop.f32.mrf.mxu1  ;;  %v5210_v3 = vadd.f32 %v10730_v48, %v11251_v0 }
 0x646   : > { %v5982_v54 = vadd.f32 %v5981_v9, %v5893_v30 }
 0x648   : > { %v6045_v62 = vadd.f32 %v5982_v54, %v5202_v2  ;;  %v5821_v9 = vpop.f32.mrf.mxu3 }
 0x64a   : > { %v6081_v63 = vadd.f32 %v10631_v46, %v6045_v62  ;;  %v5219_v62 = vpop.f32.mrf.mxu2 }
 0x64b   : > { %v5220_v61 = vadd.f32 %v5219_v62, %v10573_v13 }
 0x64c   : > { %v6177_v43 = vadd.f32 %v8187_v23, %v6081_v63  ;;  %v5910_v54 = vpop.f32.mrf.mxu0  ;;  %v5903_v23 = vadd.f32 %v5902_v17, %v5813_v34 }
 0x64d   : > { %v5984_v31 = vpop.f32.mrf.mxu1 }
 0x64e   : > { %v8256_v32 = vpack.c.bf16 %v6177_v43, %v6176_v35  ;;  %v5985_v47 = vadd.f32 %v5984_v31, %v5896_v25  ;;  %v11252_v35 = vld [vmem:[#allocation28_spill] sm:$0xff] }
 0x64f   : > { %v5212_v43 = vadd.f32 %v5211_v4, %v11252_v35  ;;  %v5215_v4 = vadd.f32 %v5214_v60, %v10567_v41 }
 0x650   : > { %8342 = vst [vmem:[%s10650_s20 + $0x28] sm:$0xff] %v8256_v32   ;;  %6023 = vmatmul.bf16.gmra.mxu1 %v7642_v44  ;;  %v6046_v28 = vadd.f32 %v5985_v47, %v5205_v16  ;;  %v8195_v32 = vunpack.c.h.bf16 %v8329_v26  ;;  %v5823_v44 = vpop.f32.mrf.mxu3 }
 0x652   : > { %v6082_v14 = vadd.f32 %v10631_v46, %v6046_v28  ;;  %v5221_v34 = vpop.f32.mrf.mxu2  ;;  %v5906_v28 = vadd.f32 %v5905_v53, %v5816_v59 }
 0x653   : > { %v5222_v26 = vadd.f32 %v5221_v34, %v10576_v11 }
 0x654   : > { %v6178_v6 = vadd.f32 %v8190_v19, %v6082_v14  ;;  %v5912_v16 = vpop.f32.mrf.mxu0 }
 0x655   : > { %v5986_v58 = vpop.f32.mrf.mxu1  ;;  %v5913_v0 = vadd.f32 %v5912_v16, %v5823_v44 }
 0x656   : > { %v5987_v24 = vadd.f32 %v5986_v58, %v5898_v20 }
 0x658   : > { %v6047_v56 = vadd.f32 %v5987_v24, %v5207_v52  ;;  %v5826_v52 = vpop.f32.mrf.mxu3  ;;  %v5908_v24 = vadd.f32 %v5907_v38, %v5818_v57 }
 0x65a   : > { %v6083_v29 = vadd.f32 %v10631_v46, %v6047_v56  ;;  %v8330_v56 = vld [vmem:[%s8766_s13 + $0x40] sm:$0xff]  }
 0x65b   : > { %v8199_v53 = vunpack.c.h.bf16 %v8330_v56 }
 0x65c   : > { %v6179_v30 = vadd.f32 %v8191_v5, %v6083_v29  ;;  %v5915_v19 = vpop.f32.mrf.mxu0  ;;  %v5224_v29 = vpop.f32.mrf.mxu2 }
 0x65d   : > { %v5989_v12 = vpop.f32.mrf.mxu1  ;;  %v5916_v44 = vadd.f32 %v5915_v19, %v5826_v52 }
 0x65e   : > { %v8261_v33 = vpack.c.bf16 %v6179_v30, %v6178_v6  ;;  %v5990_v2 = vadd.f32 %v5989_v12, %v5901_v8  ;;  %v8198_v30 = vunpack.c.l.bf16 %v8330_v56  ;;  %v5911_v12 = vadd.f32 %v5910_v54, %v5821_v9 }
 0x660   : > { %8343 = vst [vmem:[%s10650_s20 + $0x30] sm:$0xff] %v8261_v33   ;;  %6028 = vmatmul.bf16.gmra.mxu1 %v7654_v36  ;;  %v6048_v63 = vadd.f32 %v5990_v2, %v5210_v3  ;;  %v5828_v38 = vpop.f32.mrf.mxu3 }
 0x662   : > { %v6084_v39 = vadd.f32 %v10631_v46, %v6048_v63 }
 0x664   : > { %v6180_v48 = vadd.f32 %v8194_v21, %v6084_v39  ;;  %v5917_v33 = vpop.f32.mrf.mxu0  ;;  %v5226_v40 = vpop.f32.mrf.mxu2 }
 0x665   : > { %v5991_v37 = vpop.f32.mrf.mxu1  ;;  %v5918_v34 = vadd.f32 %v5917_v33, %v5828_v38 }
 0x666   : > { %v5992_v31 = vadd.f32 %v5991_v37, %v5903_v23  ;;  %v8331_v23 = vld [vmem:[%s8766_s13 + $0x48] sm:$0xff]  }
 0x667   : > { %v8203_v54 = vunpack.c.h.bf16 %v8331_v23 }
 0x668   : > { %v6049_v25 = vadd.f32 %v5992_v31, %v5212_v43  ;;  %v5831_v35 = vpop.f32.mrf.mxu3  ;;  %v8202_v31 = vunpack.c.l.bf16 %v8331_v23 }
 0x66a   : > { %v6085_v47 = vadd.f32 %v10631_v46, %v6049_v25 }
 0x66c   : > { %v6181_v20 = vadd.f32 %v8195_v32, %v6085_v47  ;;  %v5920_v39 = vpop.f32.mrf.mxu0  ;;  %v5229_v25 = vpop.f32.mrf.mxu2 }
 0x66d   : > { %v5994_v17 = vpop.f32.mrf.mxu1 }
 0x66e   : > { %v8266_v51 = vpack.c.bf16 %v6181_v20, %v6180_v48  ;;  %v5995_v58 = vadd.f32 %v5994_v17, %v5906_v28  ;;  %v5225_v48 = vadd.f32 %v5224_v29, %v10579_v10 }
 0x670   : > { %8344 = vst [vmem:[%s10650_s20 + $0x38] sm:$0xff] %v8266_v51   ;;  %v6050_v14 = vadd.f32 %v5995_v58, %v5215_v4  ;;  %v5833_v11 = vpop.f32.mrf.mxu3  ;;  %v8332_v51 = vld [vmem:[%s8766_s13 + $0x50] sm:$0xff]   ;;  %v5227_v4 = vadd.f32 %v5226_v40, %v10582_v1  ;;  %v5230_v1 = vadd.f32 %v5229_v25, %v10585_v22 }
 0x671   : > { %v8206_v56 = vunpack.c.l.bf16 %v8332_v51  ;;  %v8207_v19 = vunpack.c.h.bf16 %v8332_v51 }
 0x672   : > { %v6086_v6 = vadd.f32 %v10631_v46, %v6050_v14 }
 0x674   : > { %v6182_v41 = vadd.f32 %v8198_v30, %v6086_v6  ;;  %v5922_v20 = vpop.f32.mrf.mxu0  ;;  %v5231_v28 = vpop.f32.mrf.mxu2  ;;  %v5921_v30 = vadd.f32 %v5920_v39, %v5831_v35 }
 0x675   : > { %v5996_v5 = vpop.f32.mrf.mxu1 }
 0x676   : > { %v5997_v27 = vadd.f32 %v5996_v5, %v5908_v24 }
 0x678   : > { %v6051_v59 = vadd.f32 %v5997_v27, %v5217_v7  ;;  %v5836_v7 = vpop.f32.mrf.mxu3 }
 0x67a   : > { %v6087_v36 = vadd.f32 %v10631_v46, %v6051_v59 }
 0x67c   : > { %v6183_v60 = vadd.f32 %v8199_v53, %v6087_v36  ;;  %v5925_v29 = vpop.f32.mrf.mxu0  ;;  %v5234_v53 = vpop.f32.mrf.mxu2 }
 0x67d   : > { %v5999_v57 = vpop.f32.mrf.mxu1  ;;  %v5926_v35 = vadd.f32 %v5925_v29, %v5836_v7  ;;  %v8335_v7 = vld [vmem:[%s8766_s13 + $0x68] sm:$0xff]  }
 0x67e   : > { %v8271_v8 = vpack.c.bf16 %v6183_v60, %v6182_v41  ;;  %v6000_v2 = vadd.f32 %v5999_v57, %v5911_v12  ;;  %v5923_v41 = vadd.f32 %v5922_v20, %v5833_v11  ;;  %v8333_v57 = vld [vmem:[%s8766_s13 + $0x58] sm:$0xff]  }
 0x680   : > { %8345 = vst [vmem:[%s10650_s20 + $0x40] sm:$0xff] %v8271_v8   ;;  %v6052_v3 = vadd.f32 %v6000_v2, %v5220_v61  ;;  %v5838_v12 = vpop.f32.mrf.mxu3  ;;  %v5232_v8 = vadd.f32 %v5231_v28, %v10588_v55  ;;  %v8210_v61 = vunpack.c.l.bf16 %v8333_v57 }
 0x682   : > { %v6088_v43 = vadd.f32 %v10631_v46, %v6052_v3  ;;  %v8211_v3 = vunpack.c.h.bf16 %v8333_v57 }
 0x684   : > { %v6184_v13 = vadd.f32 %v8202_v31, %v6088_v43  ;;  %v5927_v2 = vpop.f32.mrf.mxu0  ;;  %v5236_v23 = vpop.f32.mrf.mxu2 }
 0x685   : > { %v6001_v63 = vpop.f32.mrf.mxu1 }
 0x686   : > { %v6002_v37 = vadd.f32 %v6001_v63, %v5913_v0 }
 0x688   : > { %v6053_v9 = vadd.f32 %v6002_v37, %v5222_v26  ;;  %v5841_v31 = vpop.f32.mrf.mxu3 }
 0x68a   : > { %v6089_v21 = vadd.f32 %v10631_v46, %v6053_v9 }
 0x68c   : > { %v6185_v62 = vadd.f32 %v8203_v54, %v6089_v21  ;;  %v5930_v55 = vpop.f32.mrf.mxu0  ;;  %v5235_v54 = vadd.f32 %v5234_v53, %v10591_v42  ;;  %v5239_v39 = vpop.f32.mrf.mxu2  ;;  %v5928_v21 = vadd.f32 %v5927_v2, %v5838_v12 }
 0x68d   : > { %v6004_v32 = vpop.f32.mrf.mxu1 }
 0x68e   : > { %v8276_v47 = vpack.c.bf16 %v6185_v62, %v6184_v13  ;;  %v6005_v16 = vadd.f32 %v6004_v32, %v5916_v44  ;;  %v8334_v13 = vld [vmem:[%s8766_s13 + $0x60] sm:$0xff]   ;;  %v5237_v32 = vadd.f32 %v5236_v23, %v10594_v15  ;;  %v5240_v15 = vadd.f32 %v5239_v39, %v10597_v50 }
 0x690   : > { %8346 = vst [vmem:[%s10650_s20 + $0x48] sm:$0xff] %v8276_v47   ;;  %v6054_v17 = vadd.f32 %v6005_v16, %v5225_v48  ;;  %v8214_v16 = vunpack.c.l.bf16 %v8334_v13  ;;  %v8215_v48 = vunpack.c.h.bf16 %v8334_v13  ;;  %v5843_v20 = vpop.f32.mrf.mxu3 }
 0x692   : > { %v6090_v14 = vadd.f32 %v10631_v46, %v6054_v17 }
 0x694   : > { %v6186_v10 = vadd.f32 %v8206_v56, %v6090_v14  ;;  %v5932_v17 = vpop.f32.mrf.mxu0  ;;  %v5241_v51 = vpop.f32.mrf.mxu2 }
 0x695   : > { %v6006_v58 = vpop.f32.mrf.mxu1 }
 0x696   : > { %v6007_v24 = vadd.f32 %v6006_v58, %v5918_v34 }
 0x698   : > { %v6055_v52 = vadd.f32 %v6007_v24, %v5227_v4  ;;  %v5931_v4 = vadd.f32 %v5930_v55, %v5841_v31  ;;  %v5846_v56 = vpop.f32.mrf.mxu3 }
 0x69a   : > { %v6091_v5 = vadd.f32 %v10631_v46, %v6055_v52  ;;  %v5933_v52 = vadd.f32 %v5932_v17, %v5843_v20 }
 0x69c   : > { %v6187_v27 = vadd.f32 %v8207_v19, %v6091_v5  ;;  %v5935_v5 = vpop.f32.mrf.mxu0 }
 0x69d   : > { %v6009_v6 = vpop.f32.mrf.mxu1  ;;  %v5936_v57 = vadd.f32 %v5935_v5, %v5846_v56 }
 0x69e   : > { %v8281_v59 = vpack.c.bf16 %v6187_v27, %v6186_v10  ;;  %v6010_v36 = vadd.f32 %v6009_v6, %v5921_v30  ;;  %v5242_v27 = vadd.f32 %v5241_v51, %v10600_v18  ;;  %v5244_v6 = vpop.f32.mrf.mxu2 }
 0x69f   : > { %v5245_v2 = vadd.f32 %v5244_v6, %v10603_v45 }
 0x6a0   : > { %8347 = vst [vmem:[%s10650_s20 + $0x50] sm:$0xff] %v8281_v59   ;;  %v6056_v60 = vadd.f32 %v6010_v36, %v5230_v1  ;;  %v8218_v59 = vunpack.c.l.bf16 %v8335_v7  ;;  %v8219_v36 = vunpack.c.h.bf16 %v8335_v7  ;;  %v5848_v12 = vpop.f32.mrf.mxu3 }
 0x6a2   : > { %v6092_v40 = vadd.f32 %v10631_v46, %v6056_v60 }
 0x6a4   : > { %v6188_v22 = vadd.f32 %v8210_v61, %v6092_v40 }
 0x6a5   : > { %v6011_v38 = vpop.f32.mrf.mxu1 }
 0x6a6   : > { %v6012_v33 = vadd.f32 %v6011_v38, %v5923_v41  ;;  %v5246_v18 = vpop.f32.mrf.mxu2 }
 0x6a7   : > { %v5247_v23 = vadd.f32 %v5246_v18, %v10606_v49 }
 0x6a8   : > { %v6057_v0 = vadd.f32 %v6012_v33, %v5232_v8  ;;  %v5937_v8 = vpop.f32.mrf.mxu0 }
 0x6a9   : > { %v5938_v40 = vadd.f32 %v5937_v8, %v5848_v12 }
 0x6aa   : > { %v6093_v63 = vadd.f32 %v10631_v46, %v6057_v0  ;;  %v8336_v0 = vld [vmem:[%s8766_s13 + $0x70] sm:$0xff]  }
 0x6ab   : > { %v8223_v31 = vunpack.c.h.bf16 %v8336_v0 }
 0x6ac   : > { %v6189_v26 = vadd.f32 %v8211_v3, %v6093_v63 }
 0x6ad   : > { %v6014_v37 = vpop.f32.mrf.mxu1 }
 0x6ae   : > { %v8286_v43 = vpack.c.bf16 %v6189_v26, %v6188_v22  ;;  %v6015_v9 = vadd.f32 %v6014_v37, %v5926_v35  ;;  %v5851_v22 = vpop.f32.mrf.mxu3  ;;  %v8222_v35 = vunpack.c.l.bf16 %v8336_v0  ;;  %v5249_v45 = vpop.f32.mrf.mxu2 }
 0x6b0   : > { %8348 = vst [vmem:[%s10650_s20 + $0x58] sm:$0xff] %v8286_v43   ;;  %v6058_v25 = vadd.f32 %v6015_v9, %v5235_v54  ;;  %v5940_v26 = vpop.f32.mrf.mxu0 }
 0x6b1   : > { %v5941_v54 = vadd.f32 %v5940_v26, %v5851_v22 }
 0x6b2   : > { %v6094_v47 = vadd.f32 %v10631_v46, %v6058_v25 }
 0x6b4   : > { %v6190_v42 = vadd.f32 %v8214_v16, %v6094_v47 }
 0x6b5   : > { %v6016_v62 = vpop.f32.mrf.mxu1 }
 0x6b6   : > { %v6017_v44 = vadd.f32 %v6016_v62, %v5928_v21  ;;  %v5853_v13 = vpop.f32.mrf.mxu3 }
 0x6b8   : > { %v6059_v11 = vadd.f32 %v6017_v44, %v5237_v32  ;;  %v5942_v62 = vpop.f32.mrf.mxu0  ;;  %v11253_v32 = vld [vmem:[#allocation47_spill] sm:$0xff] }
 0x6b9   : > { %v5250_v44 = vadd.f32 %v5249_v45, %v11253_v32  ;;  %v5943_v47 = vadd.f32 %v5942_v62, %v5853_v13 }
 0x6ba   : > { %v6095_v34 = vadd.f32 %v10631_v46, %v6059_v11  ;;  %v5251_v11 = vpop.f32.mrf.mxu2 }
 0x6bc   : > { %v6191_v28 = vadd.f32 %v8215_v48, %v6095_v34  ;;  %v8337_v48 = vld [vmem:[%s8766_s13 + $0x78] sm:$0xff]   ;;  %v11254_v34 = vld [vmem:[#allocation33_spill] sm:$0xff]  ;;  %s6277_s13 = sshll.u32 %s6274_s12, 4  ;;  %s6278_s13 = int_to_ptr.hbm [resolvable:$true] %s6277_s13 }
 0x6bd   : > { %v6019_v58 = vpop.f32.mrf.mxu1  ;;  %v5252_v17 = vadd.f32 %v5251_v11, %v11254_v34  ;;  %v8226_v51 = vunpack.c.l.bf16 %v8337_v48  ;;  %s8550_s21 = sshra.s32 %s6278_s13, 4  ;;  %s8551_s21 = int_to_ptr.hbm [resolvable:$true] %s8550_s21 }
 0x6be   : > { %v8291_v24 = vpack.c.bf16 %v6191_v28, %v6190_v42  ;;  %v6020_v14 = vadd.f32 %v6019_v58, %v5931_v4  ;;  %v8227_v4 = vunpack.c.h.bf16 %v8337_v48  ;;  %s8552_s29 = scalar_lea.hbm %s8551_s21, 128  ;;  %p8557_p11 = scmp.lt.s32.totalorder %s8551_s21, %s10855_s7 }
 0x6bf   : > { %p8553_p1 = scmp.ne.s32.totalorder %s8551_s21, %s8552_s29  ;;  %p8558_p2 = scmp.lt.s32.totalorder %s8556_s16, %s8552_s29 }
 0x6c0   : > { %8349 = vst [vmem:[%s10650_s20 + $0x60] sm:$0xff] %v8291_v24   ;;  %v6060_v19 = vadd.f32 %v6020_v14, %v5240_v15 }
 0x6c1   : > { %p8554_p4 = pnand %p8553_p1, %p8727_p3  ;;  %p8559_p9 = por %p8558_p2, %p8557_p11 }
 0x6c2   : > { %v6096_v30 = vadd.f32 %v10631_v46, %v6060_v19 }
 0x6c3   : > { %p8555_p8 = pneg %p8554_p4 }
 0x6c4   : > { %v6192_v50 = vadd.f32 %v8218_v59, %v6096_v30 }
 0x6c5   : > { %v6021_v10 = vpop.f32.mrf.mxu1  ;;  %p8560_p10 = pnand %p8559_p9, %p8555_p8 }
 0x6c6   : > { %v6022_v29 = vadd.f32 %v6021_v10, %v5933_v52 }
 0x6c8   : > { %v6061_v53 = vadd.f32 %v6022_v29, %v5242_v27 }
 0x6ca   : > { %v6097_v1 = vadd.f32 %v10631_v46, %v6061_v53 }
 0x6cc   : > { %v6193_v41 = vadd.f32 %v8219_v36, %v6097_v1 }
 0x6cd   : > { %v6024_v60 = vpop.f32.mrf.mxu1 }
 0x6ce   : > { %v8296_v38 = vpack.c.bf16 %v6193_v41, %v6192_v50  ;;  %v6025_v33 = vadd.f32 %v6024_v60, %v5936_v57 }
 0x6d0   : > { %8350 = vst [vmem:[%s10650_s20 + $0x68] sm:$0xff] %v8296_v38   ;;  %v6062_v61 = vadd.f32 %v6025_v33, %v5245_v2 }
 0x6d2   : > { %v6098_v37 = vadd.f32 %v10631_v46, %v6062_v61 }
 0x6d4   : > { %v6194_v55 = vadd.f32 %v8222_v35, %v6098_v37 }
 0x6d5   : > { %v6026_v3 = vpop.f32.mrf.mxu1 }
 0x6d6   : > { %v6027_v63 = vadd.f32 %v6026_v3, %v5938_v40 }
 0x6d8   : > { %v6063_v43 = vadd.f32 %v6027_v63, %v5247_v23 }
 0x6da   : > { %v6099_v9 = vadd.f32 %v10631_v46, %v6063_v43 }
 0x6dc   : > { %v6195_v39 = vadd.f32 %v8223_v31, %v6099_v9 }
 0x6dd   : > { %v6029_v21 = vpop.f32.mrf.mxu1 }
 0x6de   : > { %v8301_v25 = vpack.c.bf16 %v6195_v39, %v6194_v55  ;;  %v6030_v49 = vadd.f32 %v6029_v21, %v5941_v54 }
 0x6e0   : > { %8351 = vst [vmem:[%s10650_s20 + $0x70] sm:$0xff] %v8301_v25   ;;  %v6064_v16 = vadd.f32 %v6030_v49, %v5250_v44 }
 0x6e2   : > { %v6100_v28 = vadd.f32 %v10631_v46, %v6064_v16 }
 0x6e4   : > { %v6196_v14 = vadd.f32 %v8226_v51, %v6100_v28 }
 0x6e5   : > { %v6031_v20 = vpop.f32.mrf.mxu1 }
 0x6e6   : > { %v6032_v42 = vadd.f32 %v6031_v20, %v5943_v47 }
 0x6e8   : > { %v6065_v58 = vadd.f32 %v6032_v42, %v5252_v17 }
 0x6ea   : > { %v6101_v24 = vadd.f32 %v10631_v46, %v6065_v58 }
 0x6ec   : > { %v6197_v15 = vadd.f32 %v8227_v4, %v6101_v24 }
 0x6ee   : > { %v8306_v56 = vpack.c.bf16 %v6197_v15, %v6196_v14 }
 0x6f0   : > { %8352 = vst [vmem:[%s10650_s20 + $0x78] sm:$0xff] %v8306_v56  }
 0x6f1   : > { %8563 = shalt.err (!%p8560_p10)
}
 0x6f2   : > { %s8613_s14 = smov 64   ;;  %s8614_s20 = smov 4  }
 0x6f3   : > { %8379 = dma.vmem_to_hbm [thread:$0]  (%p8727_p3), %s6276_s28, 2048, %s6278_s13, %s6263_s18, %s8613_s14, %s8613_s14, %s8614_s20  }
 0x6f4 PF: > { %s6292_s1 = sand.u32 1, %s8594_s24   ;;  %p11255_p12 = scmp.ge.s32.totalorder %s8606_s27, 2 }
 0x6f5   : > { %s6293_s19 = scalar_lea.sflag [#allocation5], %s6292_s1 }
 0x6f6   : > { %p8393_p13 = pnand %p11255_p12, %p8690_p6 }
 0x6f8   : > { %p8394_p0 = pneg %p8393_p13 }
 0x6fa   : > { %8589 = dma.done.wait (%p8394_p0), %s6293_s19, 2048  }
 0x6fb   : > { %8591 = vsyncadd (%p8394_p0), %s6293_s19, 4294965248  ;;  %p21_p5 = scmp.ge.s32.totalorder %s8717_s22, 4   ;;  %s11256_s24 = smov %s8598_s25 }
 0x6fc   : > { %s11257_s25 = smov %s8602_s26  ;;  %s11258_s26 = smov %s8733_s10 }
 0x6fd   : > { %s11259_s27 = smov %s8717_s22  ;;  %23 = sbr.rel (!%p21_p5) target bundleno = 8 (0x8), region = 105 }
 0x702   :  { %6299 = vsyncpa [#allocation4], 1 }
 0x703   :  { %6301 = vsyncpa [#allocation4 + $0x1], 1 }
 0x704   :  { %6302 = vsyncpa [#allocation7], 1 }
 0x705   :  { %6303 = vsyncpa [#allocation5], 1 }
 0x706   :  { %6305 = vsyncpa [#allocation5 + $0x1], 1 }

</bundles_post_ra>
